<compile_context>
chip_gen: v7x
topology: tpu7x:2x2x1
jax: 0.10.0
libtpu: 0.0.40
codegen_flags: <defaults>
</compile_context>

<pallas_src>
import functools

import jax
import jax.numpy as jnp
from jax.experimental import pallas as pl
from jax.experimental.pallas import tpu as pltpu

BN_EPS = 1e-5


def _round_up(v, m):
    return (v + m - 1) // m * m


# ----------------------------- Pallas kernel --------------------------------

def _conv_kernel(x_ref, w_ref, b_ref, *rest, offsets, apply_act, has_skip):
    # x_ref: (1, Cin, L_in) bf16   -- zero-padded, row-flattened image (+slack)
    # w_ref: (Cout, T*Cin) bf16    -- per-tap weights stacked along K
    # b_ref: (Cout, 1) f32
    # if apply_act: scale (Cin,1), shift (Cin,1), mask (1, L_in)   (all f32)
    # if has_skip:  skip (1, Cout, L_out) bf16   (fused residual add)
    # o_ref: (1, Cout, L_out) bf16  -- spatial (H*Wp) on lanes -> lane-dense stores
    i = 0
    if apply_act:
        scale_ref, shift_ref, mask_ref = rest[0], rest[1], rest[2]
        i = 3
    skip_ref = rest[i] if has_skip else None
    o_ref = rest[-1]

    L_out = o_ref.shape[-1]
    xt = x_ref[0].astype(jnp.float32)                       # (Cin, L_in)
    if apply_act:
        # Fused BatchNorm (folded scale/shift) + ReLU.  The mask re-zeroes the conv's
        # zero-padding ring, which the affine+ReLU would otherwise corrupt.
        xt = jnp.maximum(xt * scale_ref[...] + shift_ref[...], 0.0) * mask_ref[...]

    # In-kernel 9-tap (or 1-tap) gather: each tap is a contiguous shifted window of the
    # flattened padded rows; stack taps along sublanes to fatten the contracting dim.
    windows = [xt[:, off:off + L_out] for off in offsets]
    rhs = windows[0] if len(windows) == 1 else jnp.concatenate(windows, axis=0)

    acc = jnp.dot(w_ref[...], rhs.astype(jnp.bfloat16),
                  preferred_element_type=jnp.float32)        # (Cout, L_out) f32
    acc = acc + b_ref[...]
    if has_skip:
        acc = acc + skip_ref[0].astype(jnp.float32)
    o_ref[0] = acc.astype(o_ref.dtype)


# ------------------------------ Pallas wrapper -------------------------------

def _conv_call(x_flat, w_mat, bias, *, offsets, L_out,
               scale=None, shift=None, mask=None, skip=None):
    """x_flat: (N, Cin, L_in) bf16; w_mat: (Cout, T*Cin) bf16; bias: (Cout,) f32."""
    N, Cin, L_in = x_flat.shape
    Cout, Kd = w_mat.shape
    apply_act = scale is not None
    has_skip = skip is not None

    in_specs = [
        pl.BlockSpec((1, Cin, L_in), lambda n: (n, 0, 0)),
        pl.BlockSpec((Cout, Kd), lambda n: (0, 0)),
        pl.BlockSpec((Cout, 1), lambda n: (0, 0)),
    ]
    args = [x_flat, w_mat, bias.reshape(Cout, 1).astype(jnp.float32)]
    if apply_act:
        in_specs += [
            pl.BlockSpec((Cin, 1), lambda n: (0, 0)),
            pl.BlockSpec((Cin, 1), lambda n: (0, 0)),
            pl.BlockSpec((1, L_in), lambda n: (0, 0)),
        ]
        args += [scale.reshape(Cin, 1).astype(jnp.float32),
                 shift.reshape(Cin, 1).astype(jnp.float32),
                 mask.reshape(1, L_in).astype(jnp.float32)]
    if has_skip:
        in_specs.append(pl.BlockSpec((1, Cout, L_out), lambda n: (n, 0, 0)))
        args.append(skip)

    kernel = functools.partial(_conv_kernel, offsets=tuple(offsets),
                               apply_act=apply_act, has_skip=has_skip)
    return pl.pallas_call(
        kernel,
        out_shape=jax.ShapeDtypeStruct((N, Cout, L_out), jnp.bfloat16),
        grid=(N,),
        in_specs=in_specs,
        out_specs=pl.BlockSpec((1, Cout, L_out), lambda n: (n, 0, 0)),
        compiler_params=pltpu.CompilerParams(
            dimension_semantics=("parallel",),
            vmem_limit_bytes=32 * 1024 * 1024,
        ),
    )(*args)


def conv2d_3x3(x, w, b, *, bn=None, skip=None):
    """x: (N,Cin,H,W); w: (Cout,Cin,3,3) torch layout; stride 1, zero-pad 1.
    bn=(scale, shift) fuses BN+ReLU on the input; skip fuses a residual add."""
    N, Cin, H, W = x.shape
    Cout = w.shape[0]
    Hp, Wp = H + 2, W + 2
    L_out = H * Wp                                   # valid cols 0..W-1; 2 garbage cols/row
    L_in = _round_up(Hp * Wp + 2, 128)               # slack so every shifted window is in-bounds
    offsets = tuple(dy * Wp + dx for dy in range(3) for dx in range(3))

    xpad = jnp.pad(x.astype(jnp.bfloat16), ((0, 0), (0, 0), (1, 1), (1, 1)))
    xflat = xpad.reshape(N, Cin, Hp * Wp)
    xflat = jnp.pad(xflat, ((0, 0), (0, 0), (0, L_in - Hp * Wp)))

    # w_mat[co, (dy*3+dx)*Cin + ci] = w[co, ci, dy, dx]  (matches window stacking order)
    w_mat = jnp.transpose(w, (0, 2, 3, 1)).reshape(Cout, 9 * Cin).astype(jnp.bfloat16)

    scale = shift = mask = None
    if bn is not None:
        scale, shift = bn
        j = jnp.arange(L_in, dtype=jnp.int32)
        rowi, coli = j // Wp, j % Wp
        mask = ((rowi >= 1) & (rowi <= H) & (coli >= 1) & (coli <= W)).astype(jnp.float32)

    skip_flat = None
    if skip is not None:
        skip_flat = jnp.pad(skip.astype(jnp.bfloat16), ((0, 0), (0, 0), (0, 0), (0, 2)))
        skip_flat = skip_flat.reshape(N, Cout, L_out)

    out = _conv_call(xflat, w_mat, b, offsets=offsets, L_out=L_out,
                     scale=scale, shift=shift, mask=mask, skip=skip_flat)
    return out.reshape(N, Cout, H, Wp)[:, :, :, :W]


def conv2d_1x1(x, w, b):
    N, Cin, H, W = x.shape
    Cout = w.shape[0]
    L = H * W
    x_flat = x.astype(jnp.bfloat16).reshape(N, Cin, L)
    w_mat = w.reshape(Cout, Cin).astype(jnp.bfloat16)
    out = _conv_call(x_flat, w_mat, b, offsets=(0,), L_out=L)
    return out.reshape(N, Cout, H, W)


def bn_fold(x, gamma, beta):
    """BatchNorm2d (train-mode batch stats) folded to per-channel scale/shift (XLA reduction)."""
    xf = x.astype(jnp.float32)
    mean = jnp.mean(xf, axis=(0, 2, 3))
    var = jnp.var(xf, axis=(0, 2, 3))
    scale = gamma * jax.lax.rsqrt(var + BN_EPS)
    return scale, beta - mean * scale


def upsample_nearest_2x(x):  # (N,C,H,W) -> (N,C,2H,2W), glue layout op
    return jnp.repeat(jnp.repeat(x, 2, axis=2), 2, axis=3)


# ------------------------------ Parameters -----------------------------------

def spectral_normalize(w, key, n_iter=1, eps=1e-12):
    """One-power-iteration spectral norm (deterministic u), like nn.utils.spectral_norm."""
    cout = w.shape[0]
    w_mat = w.reshape(cout, -1)
    u = jax.random.normal(key, (cout,), jnp.float32)
    u = u / (jnp.linalg.norm(u) + eps)
    v = u
    for _ in range(n_iter):
        v = w_mat.T @ u
        v = v / (jnp.linalg.norm(v) + eps)
        u = w_mat @ v
        u = u / (jnp.linalg.norm(u) + eps)
    sigma = u @ (w_mat @ v)
    return w / sigma


def init_params(key, c):
    keys = iter(jax.random.split(key, 40))

    def conv_w(cout, cin, kh, kw):
        return 0.1 * jax.random.normal(next(keys), (cout, cin, kh, kw), jnp.float32)

    def conv_b(cout):
        return 0.05 * jax.random.normal(next(keys), (cout,), jnp.float32)

    def sn(w):
        return spectral_normalize(w, next(keys))

    def res_block():
        return dict(
            c1_w=sn(conv_w(c, c, 1, 1)), c1_b=conv_b(c),
            c2_w=sn(conv_w(c, c, 3, 3)), c2_b=conv_b(c),
            c3_w=sn(conv_w(c, c, 3, 3)), c3_b=conv_b(c),
            bn1_g=jnp.ones((c,), jnp.float32), bn1_b=jnp.zeros((c,), jnp.float32),
            bn2_g=jnp.ones((c,), jnp.float32), bn2_b=jnp.zeros((c,), jnp.float32),
        )

    return dict(
        conv_w=sn(conv_w(c, c, 3, 3)), conv_b=conv_b(c),
        gb=res_block(),
        gu=res_block(),
    )


# ------------------------------ Forward ---------------------------------------

@jax.jit
def sequence_gru_forward(x_nchw, params):
    x = x_nchw                                                  # channels-first throughout
    # self.conv : spectral-normed 3x3 conv (no activation)
    x = conv2d_3x3(x, params["conv_w"], params["conv_b"])

    # --- GBlock (pre-activation residual) ---
    gb = params["gb"]
    skip = conv2d_1x1(x, gb["c1_w"], gb["c1_b"])
    h = conv2d_3x3(x, gb["c2_w"], gb["c2_b"],
                   bn=bn_fold(x, gb["bn1_g"], gb["bn1_b"]))      # fused BN+ReLU+conv
    x = conv2d_3x3(h, gb["c3_w"], gb["c3_b"],
                   bn=bn_fold(h, gb["bn2_g"], gb["bn2_b"]), skip=skip)

    # --- GBlockUp ---
    gu = params["gu"]
    # 1x1 conv commutes with nearest-2x upsample: run it at low res, upsample the small result.
    skip = upsample_nearest_2x(conv2d_1x1(x, gu["c1_w"], gu["c1_b"]))
    # BN+ReLU commute with nearest-2x upsample: stats at low res, affine fused into the conv.
    bn1 = bn_fold(x, gu["bn1_g"], gu["bn1_b"])
    xu = upsample_nearest_2x(x)   # TODO(synk): fuse nearest-2x into the conv index_map (in_row = out_row//2)
    h = conv2d_3x3(xu, gu["c2_w"], gu["c2_b"], bn=bn1)
    out = conv2d_3x3(h, gu["c3_w"], gu["c3_b"],
                     bn=bn_fold(h, gu["bn2_g"], gu["bn2_b"]), skip=skip)

    return out.astype(jnp.float32)


# ------------------------------ Main -------------------------------------------

if __name__ == "__main__":
    key = jax.random.PRNGKey(0)
    kx, kp = jax.random.split(key)
    N, C, H, W = 2, 8, 16, 16
    x = jax.random.normal(kx, (N, C, H, W), jnp.float32)
    params = init_params(kp, C)

    out = sequence_gru_forward(x, params)
    out = jax.block_until_ready(out)

    assert out.shape == (N, C, 2 * H, 2 * W), out.shape
    assert bool(jnp.all(jnp.isfinite(out)))
    print("KERNEL_OK")
</pallas_src>

<mosaic_0001>
module attributes {stable_mosaic.version = 11 : i64} {
  func.func @_conv_kernel(%arg0: i32, %arg1: memref<1x8x384xbf16, #tpu.memory_space<vmem>>, %arg2: memref<8x72xbf16, #tpu.memory_space<vmem>>, %arg3: memref<8x1xf32, #tpu.memory_space<vmem>>, %arg4: memref<1x8x288xbf16, #tpu.memory_space<vmem>>) attributes {dimension_semantics = [#tpu.dimension_semantics<parallel>], iteration_bounds = array<i64: 2>, scalar_prefetch = 0 : i64, scratch_operands = 0 : i64, tpu.core_type = #tpu.core_type<tc>, window_params = [{transform_indices = @transform_0, window_bounds = array<i64: 1, 8, 384>}, {pipeline_mode = #tpu.pipeline_mode<synchronous>, transform_indices = @transform_1, window_bounds = array<i64: 8, 72>}, {pipeline_mode = #tpu.pipeline_mode<synchronous>, transform_indices = @transform_2, window_bounds = array<i64: 8, 1>}, {transform_indices = @transform_3, window_bounds = array<i64: 1, 8, 288>}]} {
    %c0 = arith.constant 0 : index
    %c0_0 = arith.constant 0 : index
    %c0_1 = arith.constant 0 : index
    %0 = vector.load %arg1[%c0, %c0_0, %c0_1] : memref<1x8x384xbf16, #tpu.memory_space<vmem>>, vector<1x8x384xbf16>
    %1 = vector.shape_cast %0 : vector<1x8x384xbf16> to vector<8x384xbf16>
    %2 = arith.extf %1 : vector<8x384xbf16> to vector<8x384xf32>
    %3 = vector.extract_strided_slice %2 {offsets = [0, 0], sizes = [8, 288], strides = [1, 1]} : vector<8x384xf32> to vector<8x288xf32>
    %4 = vector.extract_strided_slice %2 {offsets = [0, 1], sizes = [8, 288], strides = [1, 1]} : vector<8x384xf32> to vector<8x288xf32>
    %5 = vector.extract_strided_slice %2 {offsets = [0, 2], sizes = [8, 288], strides = [1, 1]} : vector<8x384xf32> to vector<8x288xf32>
    %6 = vector.extract_strided_slice %2 {offsets = [0, 18], sizes = [8, 288], strides = [1, 1]} : vector<8x384xf32> to vector<8x288xf32>
    %7 = vector.extract_strided_slice %2 {offsets = [0, 19], sizes = [8, 288], strides = [1, 1]} : vector<8x384xf32> to vector<8x288xf32>
    %8 = vector.extract_strided_slice %2 {offsets = [0, 20], sizes = [8, 288], strides = [1, 1]} : vector<8x384xf32> to vector<8x288xf32>
    %9 = vector.extract_strided_slice %2 {offsets = [0, 36], sizes = [8, 288], strides = [1, 1]} : vector<8x384xf32> to vector<8x288xf32>
    %10 = vector.extract_strided_slice %2 {offsets = [0, 37], sizes = [8, 288], strides = [1, 1]} : vector<8x384xf32> to vector<8x288xf32>
    %11 = vector.extract_strided_slice %2 {offsets = [0, 38], sizes = [8, 288], strides = [1, 1]} : vector<8x384xf32> to vector<8x288xf32>
    %12 = tpu.concatenate %3, %4, %5, %6, %7, %8, %9, %10, %11 in 0 : vector<8x288xf32>, vector<8x288xf32>, vector<8x288xf32>, vector<8x288xf32>, vector<8x288xf32>, vector<8x288xf32>, vector<8x288xf32>, vector<8x288xf32>, vector<8x288xf32> -> vector<72x288xf32>
    %c0_2 = arith.constant 0 : index
    %c0_3 = arith.constant 0 : index
    %13 = vector.load %arg2[%c0_2, %c0_3] : memref<8x72xbf16, #tpu.memory_space<vmem>>, vector<8x72xbf16>
    %14 = arith.truncf %12 : vector<72x288xf32> to vector<72x288xbf16>
    %cst = arith.constant dense<0.000000e+00> : vector<8x288xf32>
    %15 = tpu.matmul %13, %14, %cst {dimension_numbers = #tpu.dot_dimension_numbers<[1], [0], [0], [1], [0, 0, 1, 1], [], []>} : vector<8x72xbf16>, vector<72x288xbf16>, vector<8x288xf32> -> vector<8x288xf32>
    %c0_4 = arith.constant 0 : index
    %c0_5 = arith.constant 0 : index
    %16 = vector.load %arg3[%c0_4, %c0_5] : memref<8x1xf32, #tpu.memory_space<vmem>>, vector<8x1xf32>
    %17 = vector.broadcast %16 : vector<8x1xf32> to vector<8x288xf32>
    %18 = arith.addf %15, %17 : vector<8x288xf32>
    %19 = arith.truncf %18 : vector<8x288xf32> to vector<8x288xbf16>
    %c0_6 = arith.constant 0 : index
    %c0_7 = arith.constant 0 : index
    %c0_8 = arith.constant 0 : index
    %20 = vector.load %arg4[%c0_6, %c0_7, %c0_8] : memref<1x8x288xbf16, #tpu.memory_space<vmem>>, vector<1x8x288xbf16>
    %21 = vector.shape_cast %20 : vector<1x8x288xbf16> to vector<8x288xbf16>
    %22 = vector.shape_cast %19 : vector<8x288xbf16> to vector<1x8x288xbf16>
    tpu.vector_store %arg4[%c0_6, %c0_7, %c0_8], %22 {strides = array<i32>} : memref<1x8x288xbf16, #tpu.memory_space<vmem>>, vector<1x8x288xbf16>,
    return
  }
  func.func @transform_0(%arg0: i32) -> (i32, i32, i32) {
    %c0_i32 = arith.constant 0 : i32
    %c0_i32_0 = arith.constant 0 : i32
    %c0_i32_1 = arith.constant 0 : i32
    return %arg0, %c0_i32, %c0_i32_0 : i32, i32, i32
  }
  func.func @transform_1(%arg0: i32) -> (i32, i32) {
    %c0_i32 = arith.constant 0 : i32
    %c0_i32_0 = arith.constant 0 : i32
    %c0_i32_1 = arith.constant 0 : i32
    return %c0_i32, %c0_i32_0 : i32, i32
  }
  func.func @transform_2(%arg0: i32) -> (i32, i32) {
    %c0_i32 = arith.constant 0 : i32
    %c0_i32_0 = arith.constant 0 : i32
    %c0_i32_1 = arith.constant 0 : i32
    return %c0_i32, %c0_i32_0 : i32, i32
  }
  func.func @transform_3(%arg0: i32) -> (i32, i32, i32) {
    %c0_i32 = arith.constant 0 : i32
    %c0_i32_0 = arith.constant 0 : i32
    %c0_i32_1 = arith.constant 0 : i32
    return %arg0, %c0_i32, %c0_i32_0 : i32, i32, i32
  }
}

module attributes {stable_mosaic.version = 11 : i64} {
  func.func @_conv_kernel(%arg0: i32, %arg1: memref<1x8x256xbf16, #tpu.memory_space<vmem>>, %arg2: memref<8x8xbf16, #tpu.memory_space<vmem>>, %arg3: memref<8x1xf32, #tpu.memory_space<vmem>>, %arg4: memref<1x8x256xbf16, #tpu.memory_space<vmem>>) attributes {dimension_semantics = [#tpu.dimension_semantics<parallel>], iteration_bounds = array<i64: 2>, scalar_prefetch = 0 : i64, scratch_operands = 0 : i64, tpu.core_type = #tpu.core_type<tc>, window_params = [{transform_indices = @transform_0, window_bounds = array<i64: 1, 8, 256>}, {pipeline_mode = #tpu.pipeline_mode<synchronous>, transform_indices = @transform_1, window_bounds = array<i64: 8, 8>}, {pipeline_mode = #tpu.pipeline_mode<synchronous>, transform_indices = @transform_2, window_bounds = array<i64: 8, 1>}, {transform_indices = @transform_3, window_bounds = array<i64: 1, 8, 256>}]} {
    %c0 = arith.constant 0 : index
    %c0_0 = arith.constant 0 : index
    %c0_1 = arith.constant 0 : index
    %0 = vector.load %arg1[%c0, %c0_0, %c0_1] : memref<1x8x256xbf16, #tpu.memory_space<vmem>>, vector<1x8x256xbf16>
    %1 = vector.shape_cast %0 : vector<1x8x256xbf16> to vector<8x256xbf16>
    %2 = arith.extf %1 : vector<8x256xbf16> to vector<8x256xf32>
    %c0_2 = arith.constant 0 : index
    %c0_3 = arith.constant 0 : index
    %3 = vector.load %arg2[%c0_2, %c0_3] : memref<8x8xbf16, #tpu.memory_space<vmem>>, vector<8x8xbf16>
    %4 = arith.truncf %2 : vector<8x256xf32> to vector<8x256xbf16>
    %cst = arith.constant dense<0.000000e+00> : vector<8x256xf32>
    %5 = tpu.matmul %3, %4, %cst {dimension_numbers = #tpu.dot_dimension_numbers<[1], [0], [0], [1], [0, 0, 1, 1], [], []>} : vector<8x8xbf16>, vector<8x256xbf16>, vector<8x256xf32> -> vector<8x256xf32>
    %c0_4 = arith.constant 0 : index
    %c0_5 = arith.constant 0 : index
    %6 = vector.load %arg3[%c0_4, %c0_5] : memref<8x1xf32, #tpu.memory_space<vmem>>, vector<8x1xf32>
    %7 = vector.broadcast %6 : vector<8x1xf32> to vector<8x256xf32>
    %8 = arith.addf %5, %7 : vector<8x256xf32>
    %9 = arith.truncf %8 : vector<8x256xf32> to vector<8x256xbf16>
    %c0_6 = arith.constant 0 : index
    %c0_7 = arith.constant 0 : index
    %c0_8 = arith.constant 0 : index
    %10 = vector.load %arg4[%c0_6, %c0_7, %c0_8] : memref<1x8x256xbf16, #tpu.memory_space<vmem>>, vector<1x8x256xbf16>
    %11 = vector.shape_cast %10 : vector<1x8x256xbf16> to vector<8x256xbf16>
    %12 = vector.shape_cast %9 : vector<8x256xbf16> to vector<1x8x256xbf16>
    tpu.vector_store %arg4[%c0_6, %c0_7, %c0_8], %12 {strides = array<i32>} : memref<1x8x256xbf16, #tpu.memory_space<vmem>>, vector<1x8x256xbf16>,
    return
  }
  func.func @transform_0(%arg0: i32) -> (i32, i32, i32) {
    %c0_i32 = arith.constant 0 : i32
    %c0_i32_0 = arith.constant 0 : i32
    %c0_i32_1 = arith.constant 0 : i32
    return %arg0, %c0_i32, %c0_i32_0 : i32, i32, i32
  }
  func.func @transform_1(%arg0: i32) -> (i32, i32) {
    %c0_i32 = arith.constant 0 : i32
    %c0_i32_0 = arith.constant 0 : i32
    %c0_i32_1 = arith.constant 0 : i32
    return %c0_i32, %c0_i32_0 : i32, i32
  }
  func.func @transform_2(%arg0: i32) -> (i32, i32) {
    %c0_i32 = arith.constant 0 : i32
    %c0_i32_0 = arith.constant 0 : i32
    %c0_i32_1 = arith.constant 0 : i32
    return %c0_i32, %c0_i32_0 : i32, i32
  }
  func.func @transform_3(%arg0: i32) -> (i32, i32, i32) {
    %c0_i32 = arith.constant 0 : i32
    %c0_i32_0 = arith.constant 0 : i32
    %c0_i32_1 = arith.constant 0 : i32
    return %arg0, %c0_i32, %c0_i32_0 : i32, i32, i32
  }
}

module attributes {stable_mosaic.version = 11 : i64} {
  func.func @_conv_kernel(%arg0: i32, %arg1: memref<1x8x384xbf16, #tpu.memory_space<vmem>>, %arg2: memref<8x72xbf16, #tpu.memory_space<vmem>>, %arg3: memref<8x1xf32, #tpu.memory_space<vmem>>, %arg4: memref<8x1xf32, #tpu.memory_space<vmem>>, %arg5: memref<8x1xf32, #tpu.memory_space<vmem>>, %arg6: memref<1x384xf32, #tpu.memory_space<vmem>>, %arg7: memref<1x8x288xbf16, #tpu.memory_space<vmem>>) attributes {dimension_semantics = [#tpu.dimension_semantics<parallel>], iteration_bounds = array<i64: 2>, scalar_prefetch = 0 : i64, scratch_operands = 0 : i64, tpu.core_type = #tpu.core_type<tc>, window_params = [{transform_indices = @transform_0, window_bounds = array<i64: 1, 8, 384>}, {pipeline_mode = #tpu.pipeline_mode<synchronous>, transform_indices = @transform_1, window_bounds = array<i64: 8, 72>}, {pipeline_mode = #tpu.pipeline_mode<synchronous>, transform_indices = @transform_2, window_bounds = array<i64: 8, 1>}, {pipeline_mode = #tpu.pipeline_mode<synchronous>, transform_indices = @transform_3, window_bounds = array<i64: 8, 1>}, {pipeline_mode = #tpu.pipeline_mode<synchronous>, transform_indices = @transform_4, window_bounds = array<i64: 8, 1>}, {pipeline_mode = #tpu.pipeline_mode<synchronous>, transform_indices = @transform_5, window_bounds = array<i64: 1, 384>}, {transform_indices = @transform_6, window_bounds = array<i64: 1, 8, 288>}]} {
    %c0 = arith.constant 0 : index
    %c0_0 = arith.constant 0 : index
    %c0_1 = arith.constant 0 : index
    %0 = vector.load %arg1[%c0, %c0_0, %c0_1] : memref<1x8x384xbf16, #tpu.memory_space<vmem>>, vector<1x8x384xbf16>
    %1 = vector.shape_cast %0 : vector<1x8x384xbf16> to vector<8x384xbf16>
    %2 = arith.extf %1 : vector<8x384xbf16> to vector<8x384xf32>
    %c0_2 = arith.constant 0 : index
    %c0_3 = arith.constant 0 : index
    %3 = vector.load %arg4[%c0_2, %c0_3] : memref<8x1xf32, #tpu.memory_space<vmem>>, vector<8x1xf32>
    %4 = vector.broadcast %3 : vector<8x1xf32> to vector<8x384xf32>
    %5 = arith.mulf %2, %4 : vector<8x384xf32>
    %c0_4 = arith.constant 0 : index
    %c0_5 = arith.constant 0 : index
    %6 = vector.load %arg5[%c0_4, %c0_5] : memref<8x1xf32, #tpu.memory_space<vmem>>, vector<8x1xf32>
    %7 = vector.broadcast %6 : vector<8x1xf32> to vector<8x384xf32>
    %8 = arith.addf %5, %7 : vector<8x384xf32>
    %cst = arith.constant 0.000000e+00 : f32
    %9 = vector.broadcast %cst : f32 to vector<8x384xf32>
    %10 = arith.maximumf %8, %9 : vector<8x384xf32>
    %c0_6 = arith.constant 0 : index
    %c0_7 = arith.constant 0 : index
    %11 = vector.load %arg6[%c0_6, %c0_7] : memref<1x384xf32, #tpu.memory_space<vmem>>, vector<1x384xf32>
    %12 = vector.broadcast %11 : vector<1x384xf32> to vector<8x384xf32>
    %13 = arith.mulf %10, %12 : vector<8x384xf32>
    %14 = vector.extract_strided_slice %13 {offsets = [0, 0], sizes = [8, 288], strides = [1, 1]} : vector<8x384xf32> to vector<8x288xf32>
    %15 = vector.extract_strided_slice %13 {offsets = [0, 1], sizes = [8, 288], strides = [1, 1]} : vector<8x384xf32> to vector<8x288xf32>
    %16 = vector.extract_strided_slice %13 {offsets = [0, 2], sizes = [8, 288], strides = [1, 1]} : vector<8x384xf32> to vector<8x288xf32>
    %17 = vector.extract_strided_slice %13 {offsets = [0, 18], sizes = [8, 288], strides = [1, 1]} : vector<8x384xf32> to vector<8x288xf32>
    %18 = vector.extract_strided_slice %13 {offsets = [0, 19], sizes = [8, 288], strides = [1, 1]} : vector<8x384xf32> to vector<8x288xf32>
    %19 = vector.extract_strided_slice %13 {offsets = [0, 20], sizes = [8, 288], strides = [1, 1]} : vector<8x384xf32> to vector<8x288xf32>
    %20 = vector.extract_strided_slice %13 {offsets = [0, 36], sizes = [8, 288], strides = [1, 1]} : vector<8x384xf32> to vector<8x288xf32>
    %21 = vector.extract_strided_slice %13 {offsets = [0, 37], sizes = [8, 288], strides = [1, 1]} : vector<8x384xf32> to vector<8x288xf32>
    %22 = vector.extract_strided_slice %13 {offsets = [0, 38], sizes = [8, 288], strides = [1, 1]} : vector<8x384xf32> to vector<8x288xf32>
    %23 = tpu.concatenate %14, %15, %16, %17, %18, %19, %20, %21, %22 in 0 : vector<8x288xf32>, vector<8x288xf32>, vector<8x288xf32>, vector<8x288xf32>, vector<8x288xf32>, vector<8x288xf32>, vector<8x288xf32>, vector<8x288xf32>, vector<8x288xf32> -> vector<72x288xf32>
    %c0_8 = arith.constant 0 : index
    %c0_9 = arith.constant 0 : index
    %24 = vector.load %arg2[%c0_8, %c0_9] : memref<8x72xbf16, #tpu.memory_space<vmem>>, vector<8x72xbf16>
    %25 = arith.truncf %23 : vector<72x288xf32> to vector<72x288xbf16>
    %cst_10 = arith.constant dense<0.000000e+00> : vector<8x288xf32>
    %26 = tpu.matmul %24, %25, %cst_10 {dimension_numbers = #tpu.dot_dimension_numbers<[1], [0], [0], [1], [0, 0, 1, 1], [], []>} : vector<8x72xbf16>, vector<72x288xbf16>, vector<8x288xf32> -> vector<8x288xf32>
    %c0_11 = arith.constant 0 : index
    %c0_12 = arith.constant 0 : index
    %27 = vector.load %arg3[%c0_11, %c0_12] : memref<8x1xf32, #tpu.memory_space<vmem>>, vector<8x1xf32>
    %28 = vector.broadcast %27 : vector<8x1xf32> to vector<8x288xf32>
    %29 = arith.addf %26, %28 : vector<8x288xf32>
    %30 = arith.truncf %29 : vector<8x288xf32> to vector<8x288xbf16>
    %c0_13 = arith.constant 0 : index
    %c0_14 = arith.constant 0 : index
    %c0_15 = arith.constant 0 : index
    %31 = vector.load %arg7[%c0_13, %c0_14, %c0_15] : memref<1x8x288xbf16, #tpu.memory_space<vmem>>, vector<1x8x288xbf16>
    %32 = vector.shape_cast %31 : vector<1x8x288xbf16> to vector<8x288xbf16>
    %33 = vector.shape_cast %30 : vector<8x288xbf16> to vector<1x8x288xbf16>
    tpu.vector_store %arg7[%c0_13, %c0_14, %c0_15], %33 {strides = array<i32>} : memref<1x8x288xbf16, #tpu.memory_space<vmem>>, vector<1x8x288xbf16>,
    return
  }
  func.func @transform_0(%arg0: i32) -> (i32, i32, i32) {
    %c0_i32 = arith.constant 0 : i32
    %c0_i32_0 = arith.constant 0 : i32
    %c0_i32_1 = arith.constant 0 : i32
    return %arg0, %c0_i32, %c0_i32_0 : i32, i32, i32
  }
  func.func @transform_1(%arg0: i32) -> (i32, i32) {
    %c0_i32 = arith.constant 0 : i32
    %c0_i32_0 = arith.constant 0 : i32
    %c0_i32_1 = arith.constant 0 : i32
    return %c0_i32, %c0_i32_0 : i32, i32
  }
  func.func @transform_2(%arg0: i32) -> (i32, i32) {
    %c0_i32 = arith.constant 0 : i32
    %c0_i32_0 = arith.constant 0 : i32
    %c0_i32_1 = arith.constant 0 : i32
    return %c0_i32, %c0_i32_0 : i32, i32
  }
  func.func @transform_3(%arg0: i32) -> (i32, i32) {
    %c0_i32 = arith.constant 0 : i32
    %c0_i32_0 = arith.constant 0 : i32
    %c0_i32_1 = arith.constant 0 : i32
    return %c0_i32, %c0_i32_0 : i32, i32
  }
  func.func @transform_4(%arg0: i32) -> (i32, i32) {
    %c0_i32 = arith.constant 0 : i32
    %c0_i32_0 = arith.constant 0 : i32
    %c0_i32_1 = arith.constant 0 : i32
    return %c0_i32, %c0_i32_0 : i32, i32
  }
  func.func @transform_5(%arg0: i32) -> (i32, i32) {
    %c0_i32 = arith.constant 0 : i32
    %c0_i32_0 = arith.constant 0 : i32
    %c0_i32_1 = arith.constant 0 : i32
    return %c0_i32, %c0_i32_0 : i32, i32
  }
  func.func @transform_6(%arg0: i32) -> (i32, i32, i32) {
    %c0_i32 = arith.constant 0 : i32
    %c0_i32_0 = arith.constant 0 : i32
    %c0_i32_1 = arith.constant 0 : i32
    return %arg0, %c0_i32, %c0_i32_0 : i32, i32, i32
  }
}

module attributes {stable_mosaic.version = 11 : i64} {
  func.func @_conv_kernel(%arg0: i32, %arg1: memref<1x8x384xbf16, #tpu.memory_space<vmem>>, %arg2: memref<8x72xbf16, #tpu.memory_space<vmem>>, %arg3: memref<8x1xf32, #tpu.memory_space<vmem>>, %arg4: memref<8x1xf32, #tpu.memory_space<vmem>>, %arg5: memref<8x1xf32, #tpu.memory_space<vmem>>, %arg6: memref<1x384xf32, #tpu.memory_space<vmem>>, %arg7: memref<1x8x288xbf16, #tpu.memory_space<vmem>>, %arg8: memref<1x8x288xbf16, #tpu.memory_space<vmem>>) attributes {dimension_semantics = [#tpu.dimension_semantics<parallel>], iteration_bounds = array<i64: 2>, scalar_prefetch = 0 : i64, scratch_operands = 0 : i64, tpu.core_type = #tpu.core_type<tc>, window_params = [{transform_indices = @transform_0, window_bounds = array<i64: 1, 8, 384>}, {pipeline_mode = #tpu.pipeline_mode<synchronous>, transform_indices = @transform_1, window_bounds = array<i64: 8, 72>}, {pipeline_mode = #tpu.pipeline_mode<synchronous>, transform_indices = @transform_2, window_bounds = array<i64: 8, 1>}, {pipeline_mode = #tpu.pipeline_mode<synchronous>, transform_indices = @transform_3, window_bounds = array<i64: 8, 1>}, {pipeline_mode = #tpu.pipeline_mode<synchronous>, transform_indices = @transform_4, window_bounds = array<i64: 8, 1>}, {pipeline_mode = #tpu.pipeline_mode<synchronous>, transform_indices = @transform_5, window_bounds = array<i64: 1, 384>}, {transform_indices = @transform_6, window_bounds = array<i64: 1, 8, 288>}, {transform_indices = @transform_7, window_bounds = array<i64: 1, 8, 288>}]} {
    %c0 = arith.constant 0 : index
    %c0_0 = arith.constant 0 : index
    %c0_1 = arith.constant 0 : index
    %0 = vector.load %arg1[%c0, %c0_0, %c0_1] : memref<1x8x384xbf16, #tpu.memory_space<vmem>>, vector<1x8x384xbf16>
    %1 = vector.shape_cast %0 : vector<1x8x384xbf16> to vector<8x384xbf16>
    %2 = arith.extf %1 : vector<8x384xbf16> to vector<8x384xf32>
    %c0_2 = arith.constant 0 : index
    %c0_3 = arith.constant 0 : index
    %3 = vector.load %arg4[%c0_2, %c0_3] : memref<8x1xf32, #tpu.memory_space<vmem>>, vector<8x1xf32>
    %4 = vector.broadcast %3 : vector<8x1xf32> to vector<8x384xf32>
    %5 = arith.mulf %2, %4 : vector<8x384xf32>
    %c0_4 = arith.constant 0 : index
    %c0_5 = arith.constant 0 : index
    %6 = vector.load %arg5[%c0_4, %c0_5] : memref<8x1xf32, #tpu.memory_space<vmem>>, vector<8x1xf32>
    %7 = vector.broadcast %6 : vector<8x1xf32> to vector<8x384xf32>
    %8 = arith.addf %5, %7 : vector<8x384xf32>
    %cst = arith.constant 0.000000e+00 : f32
    %9 = vector.broadcast %cst : f32 to vector<8x384xf32>
    %10 = arith.maximumf %8, %9 : vector<8x384xf32>
    %c0_6 = arith.constant 0 : index
    %c0_7 = arith.constant 0 : index
    %11 = vector.load %arg6[%c0_6, %c0_7] : memref<1x384xf32, #tpu.memory_space<vmem>>, vector<1x384xf32>
    %12 = vector.broadcast %11 : vector<1x384xf32> to vector<8x384xf32>
    %13 = arith.mulf %10, %12 : vector<8x384xf32>
    %14 = vector.extract_strided_slice %13 {offsets = [0, 0], sizes = [8, 288], strides = [1, 1]} : vector<8x384xf32> to vector<8x288xf32>
    %15 = vector.extract_strided_slice %13 {offsets = [0, 1], sizes = [8, 288], strides = [1, 1]} : vector<8x384xf32> to vector<8x288xf32>
    %16 = vector.extract_strided_slice %13 {offsets = [0, 2], sizes = [8, 288], strides = [1, 1]} : vector<8x384xf32> to vector<8x288xf32>
    %17 = vector.extract_strided_slice %13 {offsets = [0, 18], sizes = [8, 288], strides = [1, 1]} : vector<8x384xf32> to vector<8x288xf32>
    %18 = vector.extract_strided_slice %13 {offsets = [0, 19], sizes = [8, 288], strides = [1, 1]} : vector<8x384xf32> to vector<8x288xf32>
    %19 = vector.extract_strided_slice %13 {offsets = [0, 20], sizes = [8, 288], strides = [1, 1]} : vector<8x384xf32> to vector<8x288xf32>
    %20 = vector.extract_strided_slice %13 {offsets = [0, 36], sizes = [8, 288], strides = [1, 1]} : vector<8x384xf32> to vector<8x288xf32>
    %21 = vector.extract_strided_slice %13 {offsets = [0, 37], sizes = [8, 288], strides = [1, 1]} : vector<8x384xf32> to vector<8x288xf32>
    %22 = vector.extract_strided_slice %13 {offsets = [0, 38], sizes = [8, 288], strides = [1, 1]} : vector<8x384xf32> to vector<8x288xf32>
    %23 = tpu.concatenate %14, %15, %16, %17, %18, %19, %20, %21, %22 in 0 : vector<8x288xf32>, vector<8x288xf32>, vector<8x288xf32>, vector<8x288xf32>, vector<8x288xf32>, vector<8x288xf32>, vector<8x288xf32>, vector<8x288xf32>, vector<8x288xf32> -> vector<72x288xf32>
    %c0_8 = arith.constant 0 : index
    %c0_9 = arith.constant 0 : index
    %24 = vector.load %arg2[%c0_8, %c0_9] : memref<8x72xbf16, #tpu.memory_space<vmem>>, vector<8x72xbf16>
    %25 = arith.truncf %23 : vector<72x288xf32> to vector<72x288xbf16>
    %cst_10 = arith.constant dense<0.000000e+00> : vector<8x288xf32>
    %26 = tpu.matmul %24, %25, %cst_10 {dimension_numbers = #tpu.dot_dimension_numbers<[1], [0], [0], [1], [0, 0, 1, 1], [], []>} : vector<8x72xbf16>, vector<72x288xbf16>, vector<8x288xf32> -> vector<8x288xf32>
    %c0_11 = arith.constant 0 : index
    %c0_12 = arith.constant 0 : index
    %27 = vector.load %arg3[%c0_11, %c0_12] : memref<8x1xf32, #tpu.memory_space<vmem>>, vector<8x1xf32>
    %28 = vector.broadcast %27 : vector<8x1xf32> to vector<8x288xf32>
    %29 = arith.addf %26, %28 : vector<8x288xf32>
    %c0_13 = arith.constant 0 : index
    %c0_14 = arith.constant 0 : index
    %c0_15 = arith.constant 0 : index
    %30 = vector.load %arg7[%c0_13, %c0_14, %c0_15] : memref<1x8x288xbf16, #tpu.memory_space<vmem>>, vector<1x8x288xbf16>
    %31 = vector.shape_cast %30 : vector<1x8x288xbf16> to vector<8x288xbf16>
    %32 = arith.extf %31 : vector<8x288xbf16> to vector<8x288xf32>
    %33 = arith.addf %29, %32 : vector<8x288xf32>
    %34 = arith.truncf %33 : vector<8x288xf32> to vector<8x288xbf16>
    %c0_16 = arith.constant 0 : index
    %c0_17 = arith.constant 0 : index
    %c0_18 = arith.constant 0 : index
    %35 = vector.load %arg8[%c0_16, %c0_17, %c0_18] : memref<1x8x288xbf16, #tpu.memory_space<vmem>>, vector<1x8x288xbf16>
    %36 = vector.shape_cast %35 : vector<1x8x288xbf16> to vector<8x288xbf16>
    %37 = vector.shape_cast %34 : vector<8x288xbf16> to vector<1x8x288xbf16>
    tpu.vector_store %arg8[%c0_16, %c0_17, %c0_18], %37 {strides = array<i32>} : memref<1x8x288xbf16, #tpu.memory_space<vmem>>, vector<1x8x288xbf16>,
    return
  }
  func.func @transform_0(%arg0: i32) -> (i32, i32, i32) {
    %c0_i32 = arith.constant 0 : i32
    %c0_i32_0 = arith.constant 0 : i32
    %c0_i32_1 = arith.constant 0 : i32
    return %arg0, %c0_i32, %c0_i32_0 : i32, i32, i32
  }
  func.func @transform_1(%arg0: i32) -> (i32, i32) {
    %c0_i32 = arith.constant 0 : i32
    %c0_i32_0 = arith.constant 0 : i32
    %c0_i32_1 = arith.constant 0 : i32
    return %c0_i32, %c0_i32_0 : i32, i32
  }
  func.func @transform_2(%arg0: i32) -> (i32, i32) {
    %c0_i32 = arith.constant 0 : i32
    %c0_i32_0 = arith.constant 0 : i32
    %c0_i32_1 = arith.constant 0 : i32
    return %c0_i32, %c0_i32_0 : i32, i32
  }
  func.func @transform_3(%arg0: i32) -> (i32, i32) {
    %c0_i32 = arith.constant 0 : i32
    %c0_i32_0 = arith.constant 0 : i32
    %c0_i32_1 = arith.constant 0 : i32
    return %c0_i32, %c0_i32_0 : i32, i32
  }
  func.func @transform_4(%arg0: i32) -> (i32, i32) {
    %c0_i32 = arith.constant 0 : i32
    %c0_i32_0 = arith.constant 0 : i32
    %c0_i32_1 = arith.constant 0 : i32
    return %c0_i32, %c0_i32_0 : i32, i32
  }
  func.func @transform_5(%arg0: i32) -> (i32, i32) {
    %c0_i32 = arith.constant 0 : i32
    %c0_i32_0 = arith.constant 0 : i32
    %c0_i32_1 = arith.constant 0 : i32
    return %c0_i32, %c0_i32_0 : i32, i32
  }
  func.func @transform_6(%arg0: i32) -> (i32, i32, i32) {
    %c0_i32 = arith.constant 0 : i32
    %c0_i32_0 = arith.constant 0 : i32
    %c0_i32_1 = arith.constant 0 : i32
    return %arg0, %c0_i32, %c0_i32_0 : i32, i32, i32
  }
  func.func @transform_7(%arg0: i32) -> (i32, i32, i32) {
    %c0_i32 = arith.constant 0 : i32
    %c0_i32_0 = arith.constant 0 : i32
    %c0_i32_1 = arith.constant 0 : i32
    return %arg0, %c0_i32, %c0_i32_0 : i32, i32, i32
  }
}

module attributes {stable_mosaic.version = 11 : i64} {
  func.func @_conv_kernel(%arg0: i32, %arg1: memref<1x8x1280xbf16, #tpu.memory_space<vmem>>, %arg2: memref<8x72xbf16, #tpu.memory_space<vmem>>, %arg3: memref<8x1xf32, #tpu.memory_space<vmem>>, %arg4: memref<8x1xf32, #tpu.memory_space<vmem>>, %arg5: memref<8x1xf32, #tpu.memory_space<vmem>>, %arg6: memref<1x1280xf32, #tpu.memory_space<vmem>>, %arg7: memref<1x8x1088xbf16, #tpu.memory_space<vmem>>) attributes {dimension_semantics = [#tpu.dimension_semantics<parallel>], iteration_bounds = array<i64: 2>, scalar_prefetch = 0 : i64, scratch_operands = 0 : i64, tpu.core_type = #tpu.core_type<tc>, window_params = [{transform_indices = @transform_0, window_bounds = array<i64: 1, 8, 1280>}, {pipeline_mode = #tpu.pipeline_mode<synchronous>, transform_indices = @transform_1, window_bounds = array<i64: 8, 72>}, {pipeline_mode = #tpu.pipeline_mode<synchronous>, transform_indices = @transform_2, window_bounds = array<i64: 8, 1>}, {pipeline_mode = #tpu.pipeline_mode<synchronous>, transform_indices = @transform_3, window_bounds = array<i64: 8, 1>}, {pipeline_mode = #tpu.pipeline_mode<synchronous>, transform_indices = @transform_4, window_bounds = array<i64: 8, 1>}, {pipeline_mode = #tpu.pipeline_mode<synchronous>, transform_indices = @transform_5, window_bounds = array<i64: 1, 1280>}, {transform_indices = @transform_6, window_bounds = array<i64: 1, 8, 1088>}]} {
    %c0 = arith.constant 0 : index
    %c0_0 = arith.constant 0 : index
    %c0_1 = arith.constant 0 : index
    %0 = vector.load %arg1[%c0, %c0_0, %c0_1] : memref<1x8x1280xbf16, #tpu.memory_space<vmem>>, vector<1x8x1280xbf16>
    %1 = vector.shape_cast %0 : vector<1x8x1280xbf16> to vector<8x1280xbf16>
    %2 = arith.extf %1 : vector<8x1280xbf16> to vector<8x1280xf32>
    %c0_2 = arith.constant 0 : index
    %c0_3 = arith.constant 0 : index
    %3 = vector.load %arg4[%c0_2, %c0_3] : memref<8x1xf32, #tpu.memory_space<vmem>>, vector<8x1xf32>
    %4 = vector.broadcast %3 : vector<8x1xf32> to vector<8x1280xf32>
    %5 = arith.mulf %2, %4 : vector<8x1280xf32>
    %c0_4 = arith.constant 0 : index
    %c0_5 = arith.constant 0 : index
    %6 = vector.load %arg5[%c0_4, %c0_5] : memref<8x1xf32, #tpu.memory_space<vmem>>, vector<8x1xf32>
    %7 = vector.broadcast %6 : vector<8x1xf32> to vector<8x1280xf32>
    %8 = arith.addf %5, %7 : vector<8x1280xf32>
    %cst = arith.constant 0.000000e+00 : f32
    %9 = vector.broadcast %cst : f32 to vector<8x1280xf32>
    %10 = arith.maximumf %8, %9 : vector<8x1280xf32>
    %c0_6 = arith.constant 0 : index
    %c0_7 = arith.constant 0 : index
    %11 = vector.load %arg6[%c0_6, %c0_7] : memref<1x1280xf32, #tpu.memory_space<vmem>>, vector<1x1280xf32>
    %12 = vector.broadcast %11 : vector<1x1280xf32> to vector<8x1280xf32>
    %13 = arith.mulf %10, %12 : vector<8x1280xf32>
    %14 = vector.extract_strided_slice %13 {offsets = [0, 0], sizes = [8, 1088], strides = [1, 1]} : vector<8x1280xf32> to vector<8x1088xf32>
    %15 = vector.extract_strided_slice %13 {offsets = [0, 1], sizes = [8, 1088], strides = [1, 1]} : vector<8x1280xf32> to vector<8x1088xf32>
    %16 = vector.extract_strided_slice %13 {offsets = [0, 2], sizes = [8, 1088], strides = [1, 1]} : vector<8x1280xf32> to vector<8x1088xf32>
    %17 = vector.extract_strided_slice %13 {offsets = [0, 34], sizes = [8, 1088], strides = [1, 1]} : vector<8x1280xf32> to vector<8x1088xf32>
    %18 = vector.extract_strided_slice %13 {offsets = [0, 35], sizes = [8, 1088], strides = [1, 1]} : vector<8x1280xf32> to vector<8x1088xf32>
    %19 = vector.extract_strided_slice %13 {offsets = [0, 36], sizes = [8, 1088], strides = [1, 1]} : vector<8x1280xf32> to vector<8x1088xf32>
    %20 = vector.extract_strided_slice %13 {offsets = [0, 68], sizes = [8, 1088], strides = [1, 1]} : vector<8x1280xf32> to vector<8x1088xf32>
    %21 = vector.extract_strided_slice %13 {offsets = [0, 69], sizes = [8, 1088], strides = [1, 1]} : vector<8x1280xf32> to vector<8x1088xf32>
    %22 = vector.extract_strided_slice %13 {offsets = [0, 70], sizes = [8, 1088], strides = [1, 1]} : vector<8x1280xf32> to vector<8x1088xf32>
    %23 = tpu.concatenate %14, %15, %16, %17, %18, %19, %20, %21, %22 in 0 : vector<8x1088xf32>, vector<8x1088xf32>, vector<8x1088xf32>, vector<8x1088xf32>, vector<8x1088xf32>, vector<8x1088xf32>, vector<8x1088xf32>, vector<8x1088xf32>, vector<8x1088xf32> -> vector<72x1088xf32>
    %c0_8 = arith.constant 0 : index
    %c0_9 = arith.constant 0 : index
    %24 = vector.load %arg2[%c0_8, %c0_9] : memref<8x72xbf16, #tpu.memory_space<vmem>>, vector<8x72xbf16>
    %25 = arith.truncf %23 : vector<72x1088xf32> to vector<72x1088xbf16>
    %cst_10 = arith.constant dense<0.000000e+00> : vector<8x1088xf32>
    %26 = tpu.matmul %24, %25, %cst_10 {dimension_numbers = #tpu.dot_dimension_numbers<[1], [0], [0], [1], [0, 0, 1, 1], [], []>} : vector<8x72xbf16>, vector<72x1088xbf16>, vector<8x1088xf32> -> vector<8x1088xf32>
    %c0_11 = arith.constant 0 : index
    %c0_12 = arith.constant 0 : index
    %27 = vector.load %arg3[%c0_11, %c0_12] : memref<8x1xf32, #tpu.memory_space<vmem>>, vector<8x1xf32>
    %28 = vector.broadcast %27 : vector<8x1xf32> to vector<8x1088xf32>
    %29 = arith.addf %26, %28 : vector<8x1088xf32>
    %30 = arith.truncf %29 : vector<8x1088xf32> to vector<8x1088xbf16>
    %c0_13 = arith.constant 0 : index
    %c0_14 = arith.constant 0 : index
    %c0_15 = arith.constant 0 : index
    %31 = vector.load %arg7[%c0_13, %c0_14, %c0_15] : memref<1x8x1088xbf16, #tpu.memory_space<vmem>>, vector<1x8x1088xbf16>
    %32 = vector.shape_cast %31 : vector<1x8x1088xbf16> to vector<8x1088xbf16>
    %33 = vector.shape_cast %30 : vector<8x1088xbf16> to vector<1x8x1088xbf16>
    tpu.vector_store %arg7[%c0_13, %c0_14, %c0_15], %33 {strides = array<i32>} : memref<1x8x1088xbf16, #tpu.memory_space<vmem>>, vector<1x8x1088xbf16>,
    return
  }
  func.func @transform_0(%arg0: i32) -> (i32, i32, i32) {
    %c0_i32 = arith.constant 0 : i32
    %c0_i32_0 = arith.constant 0 : i32
    %c0_i32_1 = arith.constant 0 : i32
    return %arg0, %c0_i32, %c0_i32_0 : i32, i32, i32
  }
  func.func @transform_1(%arg0: i32) -> (i32, i32) {
    %c0_i32 = arith.constant 0 : i32
    %c0_i32_0 = arith.constant 0 : i32
    %c0_i32_1 = arith.constant 0 : i32
    return %c0_i32, %c0_i32_0 : i32, i32
  }
  func.func @transform_2(%arg0: i32) -> (i32, i32) {
    %c0_i32 = arith.constant 0 : i32
    %c0_i32_0 = arith.constant 0 : i32
    %c0_i32_1 = arith.constant 0 : i32
    return %c0_i32, %c0_i32_0 : i32, i32
  }
  func.func @transform_3(%arg0: i32) -> (i32, i32) {
    %c0_i32 = arith.constant 0 : i32
    %c0_i32_0 = arith.constant 0 : i32
    %c0_i32_1 = arith.constant 0 : i32
    return %c0_i32, %c0_i32_0 : i32, i32
  }
  func.func @transform_4(%arg0: i32) -> (i32, i32) {
    %c0_i32 = arith.constant 0 : i32
    %c0_i32_0 = arith.constant 0 : i32
    %c0_i32_1 = arith.constant 0 : i32
    return %c0_i32, %c0_i32_0 : i32, i32
  }
  func.func @transform_5(%arg0: i32) -> (i32, i32) {
    %c0_i32 = arith.constant 0 : i32
    %c0_i32_0 = arith.constant 0 : i32
    %c0_i32_1 = arith.constant 0 : i32
    return %c0_i32, %c0_i32_0 : i32, i32
  }
  func.func @transform_6(%arg0: i32) -> (i32, i32, i32) {
    %c0_i32 = arith.constant 0 : i32
    %c0_i32_0 = arith.constant 0 : i32
    %c0_i32_1 = arith.constant 0 : i32
    return %arg0, %c0_i32, %c0_i32_0 : i32, i32, i32
  }
}

module attributes {stable_mosaic.version = 11 : i64} {
  func.func @_conv_kernel(%arg0: i32, %arg1: memref<1x8x1280xbf16, #tpu.memory_space<vmem>>, %arg2: memref<8x72xbf16, #tpu.memory_space<vmem>>, %arg3: memref<8x1xf32, #tpu.memory_space<vmem>>, %arg4: memref<8x1xf32, #tpu.memory_space<vmem>>, %arg5: memref<8x1xf32, #tpu.memory_space<vmem>>, %arg6: memref<1x1280xf32, #tpu.memory_space<vmem>>, %arg7: memref<1x8x1088xbf16, #tpu.memory_space<vmem>>, %arg8: memref<1x8x1088xbf16, #tpu.memory_space<vmem>>) attributes {dimension_semantics = [#tpu.dimension_semantics<parallel>], iteration_bounds = array<i64: 2>, scalar_prefetch = 0 : i64, scratch_operands = 0 : i64, tpu.core_type = #tpu.core_type<tc>, window_params = [{transform_indices = @transform_0, window_bounds = array<i64: 1, 8, 1280>}, {pipeline_mode = #tpu.pipeline_mode<synchronous>, transform_indices = @transform_1, window_bounds = array<i64: 8, 72>}, {pipeline_mode = #tpu.pipeline_mode<synchronous>, transform_indices = @transform_2, window_bounds = array<i64: 8, 1>}, {pipeline_mode = #tpu.pipeline_mode<synchronous>, transform_indices = @transform_3, window_bounds = array<i64: 8, 1>}, {pipeline_mode = #tpu.pipeline_mode<synchronous>, transform_indices = @transform_4, window_bounds = array<i64: 8, 1>}, {pipeline_mode = #tpu.pipeline_mode<synchronous>, transform_indices = @transform_5, window_bounds = array<i64: 1, 1280>}, {transform_indices = @transform_6, window_bounds = array<i64: 1, 8, 1088>}, {transform_indices = @transform_7, window_bounds = array<i64: 1, 8, 1088>}]} {
    %c0 = arith.constant 0 : index
    %c0_0 = arith.constant 0 : index
    %c0_1 = arith.constant 0 : index
    %0 = vector.load %arg1[%c0, %c0_0, %c0_1] : memref<1x8x1280xbf16, #tpu.memory_space<vmem>>, vector<1x8x1280xbf16>
    %1 = vector.shape_cast %0 : vector<1x8x1280xbf16> to vector<8x1280xbf16>
    %2 = arith.extf %1 : vector<8x1280xbf16> to vector<8x1280xf32>
    %c0_2 = arith.constant 0 : index
    %c0_3 = arith.constant 0 : index
    %3 = vector.load %arg4[%c0_2, %c0_3] : memref<8x1xf32, #tpu.memory_space<vmem>>, vector<8x1xf32>
    %4 = vector.broadcast %3 : vector<8x1xf32> to vector<8x1280xf32>
    %5 = arith.mulf %2, %4 : vector<8x1280xf32>
    %c0_4 = arith.constant 0 : index
    %c0_5 = arith.constant 0 : index
    %6 = vector.load %arg5[%c0_4, %c0_5] : memref<8x1xf32, #tpu.memory_space<vmem>>, vector<8x1xf32>
    %7 = vector.broadcast %6 : vector<8x1xf32> to vector<8x1280xf32>
    %8 = arith.addf %5, %7 : vector<8x1280xf32>
    %cst = arith.constant 0.000000e+00 : f32
    %9 = vector.broadcast %cst : f32 to vector<8x1280xf32>
    %10 = arith.maximumf %8, %9 : vector<8x1280xf32>
    %c0_6 = arith.constant 0 : index
    %c0_7 = arith.constant 0 : index
    %11 = vector.load %arg6[%c0_6, %c0_7] : memref<1x1280xf32, #tpu.memory_space<vmem>>, vector<1x1280xf32>
    %12 = vector.broadcast %11 : vector<1x1280xf32> to vector<8x1280xf32>
    %13 = arith.mulf %10, %12 : vector<8x1280xf32>
    %14 = vector.extract_strided_slice %13 {offsets = [0, 0], sizes = [8, 1088], strides = [1, 1]} : vector<8x1280xf32> to vector<8x1088xf32>
    %15 = vector.extract_strided_slice %13 {offsets = [0, 1], sizes = [8, 1088], strides = [1, 1]} : vector<8x1280xf32> to vector<8x1088xf32>
    %16 = vector.extract_strided_slice %13 {offsets = [0, 2], sizes = [8, 1088], strides = [1, 1]} : vector<8x1280xf32> to vector<8x1088xf32>
    %17 = vector.extract_strided_slice %13 {offsets = [0, 34], sizes = [8, 1088], strides = [1, 1]} : vector<8x1280xf32> to vector<8x1088xf32>
    %18 = vector.extract_strided_slice %13 {offsets = [0, 35], sizes = [8, 1088], strides = [1, 1]} : vector<8x1280xf32> to vector<8x1088xf32>
    %19 = vector.extract_strided_slice %13 {offsets = [0, 36], sizes = [8, 1088], strides = [1, 1]} : vector<8x1280xf32> to vector<8x1088xf32>
    %20 = vector.extract_strided_slice %13 {offsets = [0, 68], sizes = [8, 1088], strides = [1, 1]} : vector<8x1280xf32> to vector<8x1088xf32>
    %21 = vector.extract_strided_slice %13 {offsets = [0, 69], sizes = [8, 1088], strides = [1, 1]} : vector<8x1280xf32> to vector<8x1088xf32>
    %22 = vector.extract_strided_slice %13 {offsets = [0, 70], sizes = [8, 1088], strides = [1, 1]} : vector<8x1280xf32> to vector<8x1088xf32>
    %23 = tpu.concatenate %14, %15, %16, %17, %18, %19, %20, %21, %22 in 0 : vector<8x1088xf32>, vector<8x1088xf32>, vector<8x1088xf32>, vector<8x1088xf32>, vector<8x1088xf32>, vector<8x1088xf32>, vector<8x1088xf32>, vector<8x1088xf32>, vector<8x1088xf32> -> vector<72x1088xf32>
    %c0_8 = arith.constant 0 : index
    %c0_9 = arith.constant 0 : index
    %24 = vector.load %arg2[%c0_8, %c0_9] : memref<8x72xbf16, #tpu.memory_space<vmem>>, vector<8x72xbf16>
    %25 = arith.truncf %23 : vector<72x1088xf32> to vector<72x1088xbf16>
    %cst_10 = arith.constant dense<0.000000e+00> : vector<8x1088xf32>
    %26 = tpu.matmul %24, %25, %cst_10 {dimension_numbers = #tpu.dot_dimension_numbers<[1], [0], [0], [1], [0, 0, 1, 1], [], []>} : vector<8x72xbf16>, vector<72x1088xbf16>, vector<8x1088xf32> -> vector<8x1088xf32>
    %c0_11 = arith.constant 0 : index
    %c0_12 = arith.constant 0 : index
    %27 = vector.load %arg3[%c0_11, %c0_12] : memref<8x1xf32, #tpu.memory_space<vmem>>, vector<8x1xf32>
    %28 = vector.broadcast %27 : vector<8x1xf32> to vector<8x1088xf32>
    %29 = arith.addf %26, %28 : vector<8x1088xf32>
    %c0_13 = arith.constant 0 : index
    %c0_14 = arith.constant 0 : index
    %c0_15 = arith.constant 0 : index
    %30 = vector.load %arg7[%c0_13, %c0_14, %c0_15] : memref<1x8x1088xbf16, #tpu.memory_space<vmem>>, vector<1x8x1088xbf16>
    %31 = vector.shape_cast %30 : vector<1x8x1088xbf16> to vector<8x1088xbf16>
    %32 = arith.extf %31 : vector<8x1088xbf16> to vector<8x1088xf32>
    %33 = arith.addf %29, %32 : vector<8x1088xf32>
    %34 = arith.truncf %33 : vector<8x1088xf32> to vector<8x1088xbf16>
    %c0_16 = arith.constant 0 : index
    %c0_17 = arith.constant 0 : index
    %c0_18 = arith.constant 0 : index
    %35 = vector.load %arg8[%c0_16, %c0_17, %c0_18] : memref<1x8x1088xbf16, #tpu.memory_space<vmem>>, vector<1x8x1088xbf16>
    %36 = vector.shape_cast %35 : vector<1x8x1088xbf16> to vector<8x1088xbf16>
    %37 = vector.shape_cast %34 : vector<8x1088xbf16> to vector<1x8x1088xbf16>
    tpu.vector_store %arg8[%c0_16, %c0_17, %c0_18], %37 {strides = array<i32>} : memref<1x8x1088xbf16, #tpu.memory_space<vmem>>, vector<1x8x1088xbf16>,
    return
  }
  func.func @transform_0(%arg0: i32) -> (i32, i32, i32) {
    %c0_i32 = arith.constant 0 : i32
    %c0_i32_0 = arith.constant 0 : i32
    %c0_i32_1 = arith.constant 0 : i32
    return %arg0, %c0_i32, %c0_i32_0 : i32, i32, i32
  }
  func.func @transform_1(%arg0: i32) -> (i32, i32) {
    %c0_i32 = arith.constant 0 : i32
    %c0_i32_0 = arith.constant 0 : i32
    %c0_i32_1 = arith.constant 0 : i32
    return %c0_i32, %c0_i32_0 : i32, i32
  }
  func.func @transform_2(%arg0: i32) -> (i32, i32) {
    %c0_i32 = arith.constant 0 : i32
    %c0_i32_0 = arith.constant 0 : i32
    %c0_i32_1 = arith.constant 0 : i32
    return %c0_i32, %c0_i32_0 : i32, i32
  }
  func.func @transform_3(%arg0: i32) -> (i32, i32) {
    %c0_i32 = arith.constant 0 : i32
    %c0_i32_0 = arith.constant 0 : i32
    %c0_i32_1 = arith.constant 0 : i32
    return %c0_i32, %c0_i32_0 : i32, i32
  }
  func.func @transform_4(%arg0: i32) -> (i32, i32) {
    %c0_i32 = arith.constant 0 : i32
    %c0_i32_0 = arith.constant 0 : i32
    %c0_i32_1 = arith.constant 0 : i32
    return %c0_i32, %c0_i32_0 : i32, i32
  }
  func.func @transform_5(%arg0: i32) -> (i32, i32) {
    %c0_i32 = arith.constant 0 : i32
    %c0_i32_0 = arith.constant 0 : i32
    %c0_i32_1 = arith.constant 0 : i32
    return %c0_i32, %c0_i32_0 : i32, i32
  }
  func.func @transform_6(%arg0: i32) -> (i32, i32, i32) {
    %c0_i32 = arith.constant 0 : i32
    %c0_i32_0 = arith.constant 0 : i32
    %c0_i32_1 = arith.constant 0 : i32
    return %arg0, %c0_i32, %c0_i32_0 : i32, i32, i32
  }
  func.func @transform_7(%arg0: i32) -> (i32, i32, i32) {
    %c0_i32 = arith.constant 0 : i32
    %c0_i32_0 = arith.constant 0 : i32
    %c0_i32_1 = arith.constant 0 : i32
    return %arg0, %c0_i32, %c0_i32_0 : i32, i32, i32
  }
}

</mosaic_0001>

<bundles_post_ra>
// kernel: sequence_gru_forward.7
= control target key start
LH: loop header
LB: loop body
LE: loop exit
PB: predicated region body
PF: predicated region fallthrough
CT: control target
= control target key end

     0   :  { %s600_s12 = smov 0   ;;  %s640_s0 = inlined_call_operand.vmem [shape: bf16[2,8,384], index: 0, kind: input, shape index: {}]   ;;  %s641_s1 = inlined_call_operand.vmem [shape: bf16[8,72], index: 1, kind: input, shape index: {}]   ;;  %s642_s2 = inlined_call_operand.vmem [shape: f32[8,1], index: 2, kind: input, shape index: {}]   ;;  %s643_s3 = inlined_call_operand.vmem [shape: bf16[2,8,288], index: 3, kind: output, shape index: {}]  }
   0x1 LB: > { %s464_s13 = sadd.s32 4294967295, %s567_s12   ;;  %p468_p0 = scmp.ge.s32.totalorder %s567_s12, 1  ;;  %s567_s12 = sphi %s600_s12, %s13_s12  }
   0x2   : > { %p137_p1 = scmp.lt.s32.totalorder %s567_s12, 3 }
   0x4   : > { %p138_p2 = pnand %p468_p0, %p137_p1 }
   0x5   : > { %p161_p3 = scmp.lt.s32.totalorder (!%p138_p2), %s464_s13, 1  ;;  %v569_v0 = vmov (!%p138_p2), 0.0   ;;  %s570_s18 = smov (!%p138_p2), 126   ;;  %vm577_vm0 = vmmov (!%p138_p2), 0   ;;  %v578_v7 = vmov (!%p138_p2), 0   ;;  %v292_v9 = vld [vmem:[%s642_s2] sm:$0xff] (!%p138_p2) }
   0x6   : > { %141 = sbr.rel (%p138_p2) target bundleno = 392 (0x188), region = 32  ;;  %486 = vmatprep.subr.bf16.mxu1 (!%p138_p2), %v569_v0  ;;  %s571_s19 = smov (!%p138_p2), 127   ;;  %496 = vmatprep.mubr.msk.bf16.mxu1 (!%p138_p2), %vm577_vm0, %v569_v0  ;;  %vm186_vm1 = vcmask (!%p138_p2), 1039360   ;;  %vm210_vm2 = vcmask (!%p138_p2), 900096   ;;  %vm198_vm3 = vcmask (!%p138_p2), 1031168   ;;  %vm234_vm4 = vcmask (!%p138_p2), 883712  }
   0x7   : > { %s572_s20 = smov (!%p138_p2), 110   ;;  %s573_s21 = smov (!%p138_p2), 108   ;;  %344 = vmatprep.mubr.bf16.mxu0 (!%p138_p2), %v578_v7  ;;  %560 = vset.pattern.permute.xlu0 (!%p138_p2), %v578_v7  ;;  %vm222_vm5 = vcmask (!%p138_p2), 891904   ;;  %vm258_vm6 = vcmask (!%p138_p2), 744448   ;;  %vm246_vm7 = vcmask (!%p138_p2), 752640   ;;  %vm270_vm8 = vcmask (!%p138_p2), 736256  }
   0x8   : > { %s574_s22 = smov (!%p138_p2), 109   ;;  %s575_s23 = smov (!%p138_p2), 91   ;;  %vm302_vm9 = vcmask (!%p138_p2), 1043456   ;;  %vm298_vm10 = vcmask (!%p138_p2), 588800   ;;  %vm407_vm11 = vcmask (!%p138_p2), 257024  }
   0x9   : > { %s576_s24 = smov (!%p138_p2), 92   ;;  %s579_s25 = smov (!%p138_p2), 90  }
   0xd   : > { %s645_s13 = smov (!%p161_p3, %s464_s13), 1 }
   0xe   : > { %s500_s14 = smul.u32 12, %s645_s13 }
  0x10   : > { %s165_s17 = scalar_lea.vmem %s640_s0, %s500_s14  ;;  %s170_s5 = scalar_lea.vmem %s643_s3, %s500_s14 }
  0x11   : > { %v172_v1 = vld [vmem:[%s165_s17] sm:$0xff]  ;;  %v173_v2 = vld [vmem:[%s165_s17 + $0x8] sm:$0xf] }
  0x12   : > { %v175_v3 = vunpack.c.h.bf16 %v172_v1  ;;  %v176_v4 = vunpack.c.l.bf16 %v173_v2  ;;  %v174_v6 = vunpack.c.l.bf16 %v172_v1 }
  0x14   : > { %v525_v5 = vpack.i.bf16 %v176_v4, %v175_v3  ;;  %v555_v8 = vpack.i.bf16 %v175_v3, %v174_v6 }
  0x16   : > { %526 = vrot.lane.b32.xlu1 %v525_v5, %s570_s18  ;;  %521 = vrot.lane.b32.xlu0 %v525_v5, %s571_s19 }
  0x1a   : > { %531 = vrot.lane.b32.xlu1 %v525_v5, %s572_s20  ;;  %180 = vrot.lane.b32.xlu0 %v174_v6, %s571_s19 }
  0x1e   : > { %204 = vrot.lane.b32.xlu1 %v174_v6, %s572_s20  ;;  %192 = vrot.lane.b32.xlu0 %v174_v6, %s570_s18 }
  0x22   : > { %541 = vrot.lane.b32.xlu1 %v525_v5, %s573_s21  ;;  %536 = vrot.lane.b32.xlu0 %v525_v5, %s574_s22 }
  0x26   : > { %228 = vrot.lane.b32.xlu1 %v174_v6, %s573_s21  ;;  %216 = vrot.lane.b32.xlu0 %v174_v6, %s574_s22 }
  0x2a   : > { %551 = vrot.lane.b32.xlu1 %v525_v5, %s575_s23  ;;  %546 = vrot.lane.b32.xlu0 %v525_v5, %s576_s24 }
  0x2e   : > { %252 = vrot.lane.b32.xlu1 %v174_v6, %s575_s23  ;;  %240 = vrot.lane.b32.xlu0 %v174_v6, %s576_s24 }
  0x32   : > { %556 = vrot.lane.b32.xlu0 %v555_v8, %s579_s25  ;;  %268 = vrot.lane.b32.xlu1 %v176_v4, %s579_s25 }
  0x36   : > { %295 = vperm.xlu0 %560, %v292_v9  }
  0x88   : > { %v527_v10 = vpop.permute.xlu1 %526  ;;  %v522_v11 = vpop.permute.xlu0 %521 }
  0x89   : > { %v524_v12 = vunpack.i.h.bf16 %v522_v11  ;;  %v523_v13 = vunpack.i.l.bf16 %v522_v11  ;;  %v529_v14 = vunpack.i.h.bf16 %v527_v10  ;;  %v528_v15 = vunpack.i.l.bf16 %v527_v10  ;;  %v276_v11 = vld [vmem:[%s641_s1] sm:$0xf] }
  0x8b   : > { %v279_v16 = vpack.c.bf16 %v524_v12, %v176_v4  ;;  %v188_v17 = vsel %vm186_vm1, %v523_v13, %v524_v12  ;;  %v200_v26 = vsel %vm198_vm3, %v528_v15, %v529_v14 }
  0x8c   : > { %v532_v18 = vpop.permute.xlu1 %531  ;;  %v181_v19 = vpop.permute.xlu0 %180  ;;  %v278_v20 = vpack.c.bf16 %v188_v17, %v175_v3 }
  0x8d   : > { %v534_v21 = vunpack.i.h.bf16 %v532_v18  ;;  %v533_v22 = vunpack.i.l.bf16 %v532_v18  ;;  %v187_v23 = vsel %vm186_vm1, %v181_v19, %v523_v13  ;;  %487 = vmatpush3.bf16.msra.mxu1 %v279_v16 }
  0x8e   : > { %312 = vmatprep.subr.bf16.mxu0 %v278_v20  ;;  %488 = vmatprep.subr.bf16.mxu1 %v569_v0  ;;  %v277_v24 = vpack.c.bf16 %v187_v23, %v174_v6 }
  0x8f   : > { %v282_v25 = vpack.c.bf16 %v534_v21, %v529_v14  ;;  %v212_v27 = vsel %vm210_vm2, %v533_v22, %v534_v21 }
  0x90   : > { %v205_v28 = vpop.permute.xlu1 %204  ;;  %313 = vmatpush1.bf16.msra.mxu0 %v277_v24  ;;  %v193_v29 = vpop.permute.xlu0 %192  ;;  %v281_v30 = vpack.c.bf16 %v212_v27, %v200_v26 }
  0x91   : > { %v211_v31 = vsel %vm210_vm2, %v205_v28, %v533_v22  ;;  %v199_v32 = vsel %vm198_vm3, %v193_v29, %v528_v15  ;;  %489 = vmatpush3.bf16.msra.mxu1 %v282_v25 }
  0x92   : > { %v280_v33 = vpack.c.bf16 %v211_v31, %v199_v32  ;;  %314 = vmatprep.subr.bf16.mxu0 %v281_v30  ;;  %490 = vmatprep.subr.bf16.mxu1 %v569_v0 }
  0x94   : > { %v542_v34 = vpop.permute.xlu1 %541  ;;  %315 = vmatpush1.bf16.msra.mxu0 %v280_v33  ;;  %v537_v35 = vpop.permute.xlu0 %536 }
  0x95   : > { %v544_v36 = vunpack.i.h.bf16 %v542_v34  ;;  %v543_v37 = vunpack.i.l.bf16 %v542_v34  ;;  %v539_v38 = vunpack.i.h.bf16 %v537_v35  ;;  %v538_v39 = vunpack.i.l.bf16 %v537_v35 }
  0x97   : > { %v285_v40 = vpack.c.bf16 %v544_v36, %v539_v38  ;;  %v224_v41 = vsel %vm222_vm5, %v538_v39, %v539_v38  ;;  %v236_v42 = vsel %vm234_vm4, %v543_v37, %v544_v36 }
  0x98   : > { %v229_v43 = vpop.permute.xlu1 %228  ;;  %v217_v44 = vpop.permute.xlu0 %216  ;;  %v284_v45 = vpack.c.bf16 %v236_v42, %v224_v41 }
  0x99   : > { %v235_v46 = vsel %vm234_vm4, %v229_v43, %v543_v37  ;;  %v223_v47 = vsel %vm222_vm5, %v217_v44, %v538_v39  ;;  %491 = vmatpush3.bf16.msra.mxu1 %v285_v40 }
  0x9a   : > { %v283_v48 = vpack.c.bf16 %v235_v46, %v223_v47  ;;  %316 = vmatprep.subr.bf16.mxu0 %v284_v45  ;;  %492 = vmatprep.subr.bf16.mxu1 %v569_v0 }
  0x9c   : > { %v552_v49 = vpop.permute.xlu1 %551  ;;  %v547_v50 = vpop.permute.xlu0 %546  ;;  %317 = vmatpush1.bf16.msra.mxu0 %v283_v48 }
  0x9d   : > { %v554_v51 = vunpack.i.h.bf16 %v552_v49  ;;  %v553_v52 = vunpack.i.l.bf16 %v552_v49  ;;  %v549_v53 = vunpack.i.h.bf16 %v547_v50  ;;  %v548_v54 = vunpack.i.l.bf16 %v547_v50 }
  0x9f   : > { %v288_v55 = vpack.c.bf16 %v554_v51, %v549_v53  ;;  %v248_v56 = vsel %vm246_vm7, %v548_v54, %v549_v53  ;;  %v260_v57 = vsel %vm258_vm6, %v553_v52, %v554_v51 }
  0xa0   : > { %v253_v58 = vpop.permute.xlu1 %252  ;;  %v241_v59 = vpop.permute.xlu0 %240  ;;  %v287_v60 = vpack.c.bf16 %v260_v57, %v248_v56 }
  0xa1   : > { %v259_v61 = vsel %vm258_vm6, %v253_v58, %v553_v52  ;;  %v247_v62 = vsel %vm246_vm7, %v241_v59, %v548_v54  ;;  %493 = vmatpush3.bf16.msra.mxu1 %v288_v55 }
  0xa2   : > { %v286_v63 = vpack.c.bf16 %v259_v61, %v247_v62  ;;  %318 = vmatprep.subr.bf16.mxu0 %v287_v60  ;;  %494 = vmatprep.subr.bf16.mxu1 %v569_v0 }
  0xa4   : > { %v557_v1 = vpop.permute.xlu0 %556  ;;  %319 = vmatpush1.bf16.msra.mxu0 %v286_v63  ;;  %v269_v2 = vpop.permute.xlu1 %268 }
  0xa5   : > { %v559_v3 = vunpack.i.h.bf16 %v557_v1  ;;  %v558_v4 = vunpack.i.l.bf16 %v557_v1  ;;  %v291_v5 = vpack.c.bf16 %v269_v2, %v269_v2 }
  0xa7   : > { %v272_v6 = vsel %vm270_vm8, %v559_v3, %v269_v2  ;;  %v310_v7 = vsel %vm302_vm9, %v291_v5, 0  ;;  %v271_v8 = vsel %vm270_vm8, %v558_v4, %v559_v3 }
  0xa8   : > { %v290_v9 = vpack.c.bf16 %v272_v6, %v272_v6  ;;  %495 = vmatpush3.bf16.msra.mxu1 %v310_v7  ;;  %v289_v10 = vpack.c.bf16 %v271_v8, %v271_v8 }
  0xaa   : > { %471 = vmatprep.subr.msk.bf16.mxu0 %vm302_vm9, %v290_v9  ;;  %v304_v0 = vsel %vm302_vm9, %v289_v10, 0 }
  0xab   : > { %321 = vmatpush1.bf16.msra.mxu0 %v304_v0  ;;  %497 = vmatmul.mubr.msk.bf16.vlgmr.msra.gmra.mrb[0].mxu1 %vm298_vm10, %v276_v11 }
  0xae   : > { %472 = vmatmul.mubr.msk.bf16.vlgmr.msra.gmra.mrb[0].mxu0 %vm298_vm10, %v276_v11 }
  0xb5   : > { %v296_v12 = vpop.permute.xlu0 %295 }
 0x17e   : > { %v387_v13 = vpop.f32.mrb[0].mxu1 }
 0x17f   : > { %v498_v14 = vpop.f32.mrb[1].mxu1  ;;  %v388_v15 = vadd.f32 %v387_v13, %v296_v12 }
 0x180   : > { %v390_v16 = vpop.f32.mrb[2].mxu1 }
 0x181   : > { %v479_v17 = vpack.c.bf16 %v388_v15, %v388_v15  ;;  %v346_v18 = vpop.f32.mrb[0].mxu0  ;;  %v499_v19 = vpop.f32.mrb[3].mxu1 }
 0x182   : > { %v347_v20 = vadd.f32 %v346_v18, %v296_v12  ;;  %v348_v21 = vpop.f32.mrb[1].mxu0 }
 0x183   : > { %v349_v22 = vadd.f32 %v348_v21, %v296_v12  ;;  %408 = vst.msk [vmem:[%s170_s5 + $0x8] sm:$0xf] %vm407_vm11, %v479_v17  ;;  %v350_v23 = vpop.f32.mrb[2].mxu0 }
 0x184   : > { %v351_v24 = vpop.f32.mrb[3].mxu0 }
 0x185   : > { %v478_v25 = vpack.c.bf16 %v349_v22, %v347_v20 }
 0x187   : > { %406 = vst [vmem:[%s170_s5] sm:$0xff] %v478_v25 }
 0x188 PF: > { %s13_s12 = sadd.s32 1, %s567_s12  }
 0x189   : > { %p10_p4 = scmp.ge.s32.totalorder %s13_s12, 4  }
 0x18b   :  { %12 = sbr.rel (!%p10_p4) target bundleno = 1 (0x1), region = 62 }

// kernel: sequence_gru_forward.8
= control target key start
LH: loop header
LB: loop body
LE: loop exit
PB: predicated region body
PF: predicated region fallthrough
CT: control target
= control target key end

     0   :  { %s361_s12 = smov 0   ;;  %s384_s0 = inlined_call_operand.vmem [shape: bf16[2,8,256], index: 0, kind: input, shape index: {}]   ;;  %s385_s1 = inlined_call_operand.vmem [shape: bf16[8,8], index: 1, kind: input, shape index: {}]   ;;  %s386_s2 = inlined_call_operand.vmem [shape: f32[8,1], index: 2, kind: input, shape index: {}]   ;;  %s387_s3 = inlined_call_operand.vmem [shape: bf16[2,8,256], index: 3, kind: output, shape index: {}]  }
   0x1 LB: > { %s301_s13 = sadd.s32 4294967295, %s338_s12   ;;  %p305_p0 = scmp.ge.s32.totalorder %s338_s12, 1  ;;  %s338_s12 = sphi %s361_s12, %s13_s12  }
   0x2   : > { %p137_p1 = scmp.lt.s32.totalorder %s338_s12, 3 }
   0x4   : > { %p138_p2 = pnand %p305_p0, %p137_p1 }
   0x5   : > { %p161_p3 = scmp.lt.s32.totalorder (!%p138_p2), %s301_s13, 1  ;;  %v340_v0 = vmov (!%p138_p2), 0   ;;  %v174_v1 = vld [vmem:[%s386_s2] sm:$0xff] (!%p138_p2)  ;;  %vm189_vm0 = vcmask (!%p138_p2), 1043456   ;;  %vm185_vm1 = vcmask (!%p138_p2), 64512  }
   0x6   : > { %141 = sbr.rel (%p138_p2) target bundleno = 241 (0xf1), region = 32  ;;  %228 = vmatprep.mubr.bf16.mxu0 (!%p138_p2), %v340_v0  ;;  %329 = vset.pattern.permute.xlu0 (!%p138_p2), %v340_v0  ;;  %v173_v6 = vld [vmem:[%s385_s1] sm:$0xf] (!%p138_p2) }
   0x7   : > { %177 = vperm.xlu0 (!%p138_p2), %329, %v174_v1  }
   0xd   : > { %s389_s13 = smov (!%p161_p3, %s301_s13), 1 }
   0xe   : > { %s317_s16 = sshll.u32 %s389_s13, 3 }
   0xf   : > { %s165_s19 = scalar_lea.vmem %s384_s0, %s317_s16  ;;  %s170_s24 = scalar_lea.vmem %s387_s3, %s317_s16 }
  0x10   : > { %v172_v2 = vld [vmem:[%s165_s19] sm:$0xff] }
  0x11   : > { %v311_v3 = vcombine.high %v172_v2, %v172_v2  ;;  %v310_v4 = vcombine.low %v172_v2, %v172_v2 }
  0x13   : > { %312 = vmatprep.subr.msk.bf16.mxu0 %vm189_vm0, %v311_v3  ;;  %v191_v5 = vsel %vm189_vm0, %v310_v4, 0 }
  0x14   : > { %197 = vmatpush1.bf16.msra.mxu0 %v191_v5 }
  0x17   : > { %313 = vmatmul.mubr.msk.bf16.vlgmr.msra.gmra.mrb[0].mxu0 %vm185_vm1, %v173_v6 }
  0x86   : > { %v178_v7 = vpop.permute.xlu0 %177 }
  0xea   : > { %v230_v8 = vpop.f32.mrb[0].mxu0 }
  0xeb   : > { %v231_v9 = vadd.f32 %v230_v8, %v178_v7  ;;  %v232_v10 = vpop.f32.mrb[1].mxu0 }
  0xec   : > { %v233_v11 = vadd.f32 %v232_v10, %v178_v7  ;;  %v234_v12 = vpop.f32.mrb[2].mxu0 }
  0xed   : > { %v235_v13 = vpop.f32.mrb[3].mxu0 }
  0xee   : > { %v319_v14 = vpack.c.bf16 %v233_v11, %v231_v9 }
  0xf0   : > { %245 = vst [vmem:[%s170_s24] sm:$0xff] %v319_v14 }
  0xf1 PF: > { %s13_s12 = sadd.s32 1, %s338_s12  }
  0xf2   : > { %p10_p4 = scmp.ge.s32.totalorder %s13_s12, 4  }
  0xf4   :  { %12 = sbr.rel (!%p10_p4) target bundleno = 1 (0x1), region = 62 }

// kernel: sequence_gru_forward.9
= control target key start
LH: loop header
LB: loop body
LE: loop exit
PB: predicated region body
PF: predicated region fallthrough
CT: control target
= control target key end

     0   :  { %s737_s21 = smov 0   ;;  %s784_s0 = inlined_call_operand.vmem [shape: bf16[2,8,384], index: 0, kind: input, shape index: {}]   ;;  %s785_s1 = inlined_call_operand.vmem [shape: bf16[8,72], index: 1, kind: input, shape index: {}]   ;;  %s786_s2 = inlined_call_operand.vmem [shape: f32[8,1], index: 2, kind: input, shape index: {}]   ;;  %s787_s3 = inlined_call_operand.vmem [shape: f32[8,1], index: 3, kind: input, shape index: {}]   ;;  %s788_s4 = inlined_call_operand.vmem [shape: f32[8,1], index: 4, kind: input, shape index: {}]   ;;  %s789_s5 = inlined_call_operand.vmem [shape: f32[1,384], index: 5, kind: input, shape index: {}]   ;;  %s790_s6 = inlined_call_operand.vmem [shape: bf16[2,8,288], index: 6, kind: output, shape index: {}]  }
   0x1 LB: > { %s586_s22 = sadd.s32 4294967295, %s689_s21   ;;  %p590_p0 = scmp.ge.s32.totalorder %s689_s21, 1  ;;  %s689_s21 = sphi %s737_s21, %s16_s21  }
   0x2   : > { %p212_p1 = scmp.lt.s32.totalorder %s689_s21, 3 }
   0x4   : > { %p213_p2 = pnand %p590_p0, %p212_p1 }
   0x5   : > { %v258_v0 = vld [vmem:[%s787_s3] sm:$0xff] (!%p213_p2)  ;;  %v691_v1 = vmov (!%p213_p2), 0   ;;  %p242_p3 = scmp.lt.s32.totalorder (!%p213_p2), %s586_s22, 1  ;;  %v281_v3 = vlaneseq (!%p213_p2)  ;;  %v692_v14 = vmov (!%p213_p2), 0.0   ;;  %s693_s9 = smov (!%p213_p2), 126   ;;  %vm701_vm0 = vmmov (!%p213_p2), 0  }
   0x6   : > { %216 = sbr.rel (%p213_p2) target bundleno = 519 (0x207), region = 44  ;;  %642 = vset.pattern.permute.xlu0 (!%p213_p2), %v691_v1  ;;  %466 = vmatprep.mubr.bf16.mxu0 (!%p213_p2), %v691_v1  ;;  %v267_v2 = vld [vmem:[%s788_s4] sm:$0xff] (!%p213_p2)  ;;  %s694_s10 = smov (!%p213_p2), 127   ;;  %vm308_vm1 = vcmask (!%p213_p2), 1039360   ;;  %vm320_vm2 = vcmask (!%p213_p2), 1031168   ;;  %vm332_vm3 = vcmask (!%p213_p2), 900096  }
   0x7   : > { %261 = vperm.xlu0 (!%p213_p2), %642, %v258_v0   ;;  %v282_v6 = vshrl.u32 (!%p213_p2), %v281_v3, 7  ;;  %v279_v12 = vld [vmem:[%s789_s5] sm:$0x7] (!%p213_p2)  ;;  %608 = vmatprep.subr.bf16.mxu1 (!%p213_p2), %v692_v14  ;;  %s695_s11 = smov (!%p213_p2), 109   ;;  %s696_s12 = smov (!%p213_p2), 110   ;;  %vm344_vm4 = vcmask (!%p213_p2), 891904  }
   0x8   : > { %s697_s13 = smov (!%p213_p2), 92   ;;  %s698_s14 = smov (!%p213_p2), 108   ;;  %v414_v34 = vld [vmem:[%s786_s2] sm:$0xff] (!%p213_p2)  ;;  %618 = vmatprep.mubr.msk.bf16.mxu1 (!%p213_p2), %vm701_vm0, %v692_v14  ;;  %vm356_vm5 = vcmask (!%p213_p2), 883712   ;;  %vm368_vm6 = vcmask (!%p213_p2), 752640   ;;  %vm380_vm7 = vcmask (!%p213_p2), 744448  }
   0x9   : > { %v287_v10 = vsub.s32 (!%p213_p2), 1, %v282_v6  ;;  %v291_v13 = vsub.s32 (!%p213_p2), 2, %v282_v6  ;;  %v283_v23 = vsub.s32 (!%p213_p2), 0, %v282_v6  ;;  %s699_s15 = smov (!%p213_p2), 90   ;;  %s700_s16 = smov (!%p213_p2), 91   ;;  %vm392_vm8 = vcmask (!%p213_p2), 736256  }
   0xa   : > { %vm424_vm9 = vcmask (!%p213_p2), 1043456   ;;  %vm420_vm10 = vcmask (!%p213_p2), 588800   ;;  %vm529_vm11 = vcmask (!%p213_p2), 257024  }
   0xb   : > { %270 = vperm.xlu0 (!%p213_p2), %642, %v267_v2   ;;  %v288_v17 = vrot.slane (!%p213_p2), %v279_v12, %v287_v10  ;;  %v292_v20 = vrot.slane (!%p213_p2), %v279_v12, %v291_v13  ;;  %v284_v29 = vrot.slane (!%p213_p2), %v279_v12, %v283_v23 }
   0xd   : > { %s792_s22 = smov (!%p242_p3, %s586_s22), 1 }
   0xe   : > { %s622_s27 = smul.u32 12, %s792_s22 }
  0x10   : > { %s246_s30 = scalar_lea.vmem %s784_s0, %s622_s27  ;;  %s251_s25 = scalar_lea.vmem %s790_s6, %s622_s27 }
  0x11   : > { %v253_v4 = vld [vmem:[%s246_s30] sm:$0xff]  ;;  %v254_v5 = vld [vmem:[%s246_s30 + $0x8] sm:$0xf] }
  0x12   : > { %v256_v7 = vunpack.c.h.bf16 %v253_v4  ;;  %v257_v8 = vunpack.c.l.bf16 %v254_v5  ;;  %v255_v11 = vunpack.c.l.bf16 %v253_v4 }
  0x86   : > { %v262_v9 = vpop.permute.xlu0 %261 }
  0x87   : > { %v265_v15 = vmul.f32 %v262_v9, %v256_v7  ;;  %v266_v16 = vmul.f32 %v262_v9, %v257_v8  ;;  %v264_v19 = vmul.f32 %v262_v9, %v255_v11 }
  0x8a   : > { %v271_v18 = vpop.permute.xlu0 %270 }
  0x8b   : > { %v274_v21 = vadd.f32 %v271_v18, %v265_v15  ;;  %v275_v22 = vadd.f32 %v271_v18, %v266_v16  ;;  %v273_v24 = vadd.f32 %v271_v18, %v264_v19 }
  0x8d   : > { %v277_v25 = vmax.f32 %v274_v21, 0.0  ;;  %v278_v26 = vmax.f32 %v275_v22, 0.0  ;;  %v276_v30 = vmax.f32 %v273_v24, 0.0 }
  0x8f   : > { %v297_v27 = vmul.f32 %v288_v17, %v277_v25  ;;  %v298_v28 = vmul.f32 %v292_v20, %v278_v26  ;;  %v296_v32 = vmul.f32 %v284_v29, %v276_v30 }
  0x91   : > { %v648_v31 = vpack.i.bf16 %v298_v28, %v297_v27  ;;  %v678_v33 = vpack.i.bf16 %v297_v27, %v296_v32 }
  0x93   : > { %649 = vrot.lane.b32.xlu0 %v648_v31, %s693_s9  ;;  %644 = vrot.lane.b32.xlu1 %v648_v31, %s694_s10 }
  0x97   : > { %314 = vrot.lane.b32.xlu0 %v296_v32, %s693_s9  ;;  %302 = vrot.lane.b32.xlu1 %v296_v32, %s694_s10 }
  0x9b   : > { %659 = vrot.lane.b32.xlu0 %v648_v31, %s695_s11  ;;  %654 = vrot.lane.b32.xlu1 %v648_v31, %s696_s12 }
  0x9f   : > { %338 = vrot.lane.b32.xlu0 %v296_v32, %s695_s11  ;;  %326 = vrot.lane.b32.xlu1 %v296_v32, %s696_s12 }
  0xa3   : > { %669 = vrot.lane.b32.xlu0 %v648_v31, %s697_s13  ;;  %664 = vrot.lane.b32.xlu1 %v648_v31, %s698_s14 }
  0xa7   : > { %362 = vrot.lane.b32.xlu0 %v296_v32, %s697_s13  ;;  %350 = vrot.lane.b32.xlu1 %v296_v32, %s698_s14 }
  0xab   : > { %679 = vrot.lane.b32.xlu0 %v678_v33, %s699_s15  ;;  %674 = vrot.lane.b32.xlu1 %v648_v31, %s700_s16 }
  0xaf   : > { %417 = vperm.xlu0 %642, %v414_v34   ;;  %374 = vrot.lane.b32.xlu1 %v296_v32, %s700_s16 }
  0xb3   : > { %390 = vrot.lane.b32.xlu1 %v298_v28, %s699_s15 }
 0x105   : > { %v650_v35 = vpop.permute.xlu0 %649  ;;  %v645_v36 = vpop.permute.xlu1 %644 }
 0x106   : > { %v647_v37 = vunpack.i.h.bf16 %v645_v36  ;;  %v646_v38 = vunpack.i.l.bf16 %v645_v36  ;;  %v652_v46 = vunpack.i.h.bf16 %v650_v35  ;;  %v651_v47 = vunpack.i.l.bf16 %v650_v35 }
 0x108   : > { %v401_v39 = vpack.c.bf16 %v647_v37, %v298_v28  ;;  %v310_v40 = vsel %vm308_vm1, %v646_v38, %v647_v37  ;;  %v322_v53 = vsel %vm320_vm2, %v651_v47, %v652_v46  ;;  %v398_v37 = vld [vmem:[%s785_s1] sm:$0xf] }
 0x109   : > { %v315_v41 = vpop.permute.xlu0 %314  ;;  %v303_v42 = vpop.permute.xlu1 %302  ;;  %v400_v43 = vpack.c.bf16 %v310_v40, %v297_v27 }
 0x10a   : > { %v309_v44 = vsel %vm308_vm1, %v303_v42, %v646_v38  ;;  %609 = vmatpush3.bf16.msra.mxu1 %v401_v39  ;;  %v321_v58 = vsel %vm320_vm2, %v315_v41, %v651_v47 }
 0x10b   : > { %434 = vmatprep.subr.bf16.mxu0 %v400_v43  ;;  %v399_v45 = vpack.c.bf16 %v309_v44, %v296_v32  ;;  %610 = vmatprep.subr.bf16.mxu1 %v692_v14 }
 0x10d   : > { %v660_v48 = vpop.permute.xlu0 %659  ;;  %435 = vmatpush1.bf16.msra.mxu0 %v399_v45  ;;  %v655_v49 = vpop.permute.xlu1 %654 }
 0x10e   : > { %v657_v50 = vunpack.i.h.bf16 %v655_v49  ;;  %v656_v51 = vunpack.i.l.bf16 %v655_v49  ;;  %v662_v61 = vunpack.i.h.bf16 %v660_v48  ;;  %v661_v62 = vunpack.i.l.bf16 %v660_v48 }
 0x110   : > { %v404_v52 = vpack.c.bf16 %v657_v50, %v652_v46  ;;  %v334_v54 = vsel %vm332_vm3, %v656_v51, %v657_v50  ;;  %v346_v4 = vsel %vm344_vm4, %v661_v62, %v662_v61 }
 0x111   : > { %v339_v55 = vpop.permute.xlu0 %338  ;;  %v327_v56 = vpop.permute.xlu1 %326  ;;  %v403_v57 = vpack.c.bf16 %v334_v54, %v322_v53 }
 0x112   : > { %v333_v59 = vsel %vm332_vm3, %v327_v56, %v656_v51  ;;  %611 = vmatpush3.bf16.msra.mxu1 %v404_v52  ;;  %v345_v9 = vsel %vm344_vm4, %v339_v55, %v661_v62 }
 0x113   : > { %v402_v60 = vpack.c.bf16 %v333_v59, %v321_v58  ;;  %436 = vmatprep.subr.bf16.mxu0 %v403_v57  ;;  %612 = vmatprep.subr.bf16.mxu1 %v692_v14 }
 0x115   : > { %v670_v63 = vpop.permute.xlu0 %669  ;;  %v665_v0 = vpop.permute.xlu1 %664  ;;  %437 = vmatpush1.bf16.msra.mxu0 %v402_v60 }
 0x116   : > { %v667_v1 = vunpack.i.h.bf16 %v665_v0  ;;  %v666_v2 = vunpack.i.l.bf16 %v665_v0  ;;  %v672_v12 = vunpack.i.h.bf16 %v670_v63  ;;  %v671_v13 = vunpack.i.l.bf16 %v670_v63 }
 0x118   : > { %v407_v3 = vpack.c.bf16 %v667_v1, %v662_v61  ;;  %v358_v5 = vsel %vm356_vm5, %v666_v2, %v667_v1  ;;  %v370_v22 = vsel %vm368_vm6, %v671_v13, %v672_v12 }
 0x119   : > { %v363_v6 = vpop.permute.xlu0 %362  ;;  %v351_v7 = vpop.permute.xlu1 %350  ;;  %v406_v8 = vpack.c.bf16 %v358_v5, %v346_v4 }
 0x11a   : > { %v357_v10 = vsel %vm356_vm5, %v351_v7, %v666_v2  ;;  %613 = vmatpush3.bf16.msra.mxu1 %v407_v3  ;;  %v369_v26 = vsel %vm368_vm6, %v363_v6, %v671_v13 }
 0x11b   : > { %v405_v11 = vpack.c.bf16 %v357_v10, %v345_v9  ;;  %438 = vmatprep.subr.bf16.mxu0 %v406_v8  ;;  %614 = vmatprep.subr.bf16.mxu1 %v692_v14 }
 0x11d   : > { %v680_v15 = vpop.permute.xlu0 %679  ;;  %v675_v16 = vpop.permute.xlu1 %674  ;;  %439 = vmatpush1.bf16.msra.mxu0 %v405_v11 }
 0x11e   : > { %v682_v17 = vunpack.i.h.bf16 %v680_v15  ;;  %v681_v18 = vunpack.i.l.bf16 %v680_v15  ;;  %v677_v19 = vunpack.i.h.bf16 %v675_v16  ;;  %v676_v20 = vunpack.i.l.bf16 %v675_v16 }
 0x120   : > { %v410_v21 = vpack.c.bf16 %v677_v19, %v672_v12  ;;  %v382_v23 = vsel %vm380_vm7, %v676_v20, %v677_v19  ;;  %v393_v28 = vsel %vm392_vm8, %v681_v18, %v682_v17 }
 0x121   : > { %v375_v24 = vpop.permute.xlu1 %374  ;;  %v409_v25 = vpack.c.bf16 %v382_v23, %v370_v22  ;;  %v411_v31 = vpack.c.bf16 %v393_v28, %v393_v28 }
 0x122   : > { %v381_v27 = vsel %vm380_vm7, %v375_v24, %v676_v20  ;;  %615 = vmatpush3.bf16.msra.mxu1 %v410_v21 }
 0x123   : > { %v408_v29 = vpack.c.bf16 %v381_v27, %v369_v26  ;;  %440 = vmatprep.subr.bf16.mxu0 %v409_v25  ;;  %616 = vmatprep.subr.bf16.mxu1 %v692_v14  ;;  %v426_v36 = vsel %vm424_vm9, %v411_v31, 0 }
 0x125   : > { %v391_v30 = vpop.permute.xlu1 %390  ;;  %441 = vmatpush1.bf16.msra.mxu0 %v408_v29 }
 0x126   : > { %v394_v32 = vsel %vm392_vm8, %v682_v17, %v391_v30  ;;  %v413_v33 = vpack.c.bf16 %v391_v30, %v391_v30 }
 0x127   : > { %v412_v34 = vpack.c.bf16 %v394_v32, %v394_v32 }
 0x128   : > { %v432_v35 = vsel %vm424_vm9, %v413_v33, 0 }
 0x129   : > { %593 = vmatprep.subr.msk.bf16.mxu0 %vm424_vm9, %v412_v34  ;;  %617 = vmatpush3.bf16.msra.mxu1 %v432_v35 }
 0x12a   : > { %443 = vmatpush1.bf16.msra.mxu0 %v426_v36 }
 0x12c   : > { %619 = vmatmul.mubr.msk.bf16.vlgmr.msra.gmra.mrb[0].mxu1 %vm420_vm10, %v398_v37 }
 0x12d   : > { %594 = vmatmul.mubr.msk.bf16.vlgmr.msra.gmra.mrb[0].mxu0 %vm420_vm10, %v398_v37 }
 0x12e   : > { %v418_v14 = vpop.permute.xlu0 %417 }
 0x1ff   : > { %v509_v38 = vpop.f32.mrb[0].mxu1 }
 0x200   : > { %v510_v39 = vadd.f32 %v509_v38, %v418_v14  ;;  %v468_v40 = vpop.f32.mrb[0].mxu0  ;;  %v620_v41 = vpop.f32.mrb[1].mxu1 }
 0x201   : > { %v469_v42 = vadd.f32 %v468_v40, %v418_v14  ;;  %v470_v43 = vpop.f32.mrb[1].mxu0  ;;  %v512_v44 = vpop.f32.mrb[2].mxu1 }
 0x202   : > { %v601_v45 = vpack.c.bf16 %v510_v39, %v510_v39  ;;  %v471_v46 = vadd.f32 %v470_v43, %v418_v14  ;;  %v472_v47 = vpop.f32.mrb[2].mxu0  ;;  %v621_v48 = vpop.f32.mrb[3].mxu1 }
 0x203   : > { %v473_v49 = vpop.f32.mrb[3].mxu0 }
 0x204   : > { %530 = vst.msk [vmem:[%s251_s25 + $0x8] sm:$0xf] %vm529_vm11, %v601_v45  ;;  %v600_v50 = vpack.c.bf16 %v471_v46, %v469_v42 }
 0x206   : > { %528 = vst [vmem:[%s251_s25] sm:$0xff] %v600_v50 }
 0x207 PF: > { %s16_s21 = sadd.s32 1, %s689_s21  }
 0x208   : > { %p13_p4 = scmp.ge.s32.totalorder %s16_s21, 4  }
 0x20a   :  { %15 = sbr.rel (!%p13_p4) target bundleno = 1 (0x1), region = 74 }

// kernel: sequence_gru_forward.10
= control target key start
LH: loop header
LB: loop body
LE: loop exit
PB: predicated region body
PF: predicated region fallthrough
CT: control target
= control target key end

     0   :  { %s810_s24 = smov 0   ;;  %s858_s0 = inlined_call_operand.vmem [shape: bf16[2,8,384], index: 0, kind: input, shape index: {}]   ;;  %s859_s1 = inlined_call_operand.vmem [shape: bf16[8,72], index: 1, kind: input, shape index: {}]   ;;  %s860_s2 = inlined_call_operand.vmem [shape: f32[8,1], index: 2, kind: input, shape index: {}]   ;;  %s861_s3 = inlined_call_operand.vmem [shape: f32[8,1], index: 3, kind: input, shape index: {}]   ;;  %s862_s4 = inlined_call_operand.vmem [shape: f32[8,1], index: 4, kind: input, shape index: {}]   ;;  %s863_s5 = inlined_call_operand.vmem [shape: f32[1,384], index: 5, kind: input, shape index: {}]   ;;  %s864_s6 = inlined_call_operand.vmem [shape: bf16[2,8,288], index: 6, kind: input, shape index: {}]   ;;  %s865_s7 = inlined_call_operand.vmem [shape: bf16[2,8,288], index: 7, kind: output, shape index: {}]  }
   0x1 LB: > { %s653_s25 = sadd.s32 4294967295, %s757_s24   ;;  %p657_p0 = scmp.ge.s32.totalorder %s757_s24, 1  ;;  %s757_s24 = sphi %s810_s24, %s17_s24  }
   0x2   : > { %p247_p1 = scmp.lt.s32.totalorder %s757_s24, 3 }
   0x4   : > { %p248_p2 = pnand %p657_p0, %p247_p1 }
   0x5   : > { %v305_v0 = vld [vmem:[%s861_s3] sm:$0xff] (!%p248_p2)  ;;  %v759_v1 = vmov (!%p248_p2), 0   ;;  %p284_p3 = scmp.lt.s32.totalorder (!%p248_p2), %s653_s25, 1  ;;  %v328_v3 = vlaneseq (!%p248_p2)  ;;  %v760_v14 = vmov (!%p248_p2), 0.0   ;;  %s761_s13 = smov (!%p248_p2), 126   ;;  %vm769_vm0 = vmmov (!%p248_p2), 0  }
   0x6   : > { %251 = sbr.rel (%p248_p2) target bundleno = 521 (0x209), region = 48  ;;  %710 = vset.pattern.permute.xlu0 (!%p248_p2), %v759_v1  ;;  %513 = vmatprep.mubr.bf16.mxu0 (!%p248_p2), %v759_v1  ;;  %v314_v2 = vld [vmem:[%s862_s4] sm:$0xff] (!%p248_p2)  ;;  %s762_s14 = smov (!%p248_p2), 127   ;;  %vm355_vm1 = vcmask (!%p248_p2), 1039360   ;;  %vm367_vm2 = vcmask (!%p248_p2), 1031168   ;;  %vm379_vm3 = vcmask (!%p248_p2), 900096  }
   0x7   : > { %308 = vperm.xlu0 (!%p248_p2), %710, %v305_v0   ;;  %v329_v6 = vshrl.u32 (!%p248_p2), %v328_v3, 7  ;;  %v326_v12 = vld [vmem:[%s863_s5] sm:$0x7] (!%p248_p2)  ;;  %676 = vmatprep.subr.bf16.mxu1 (!%p248_p2), %v760_v14  ;;  %s763_s15 = smov (!%p248_p2), 109   ;;  %s764_s16 = smov (!%p248_p2), 110   ;;  %vm391_vm4 = vcmask (!%p248_p2), 891904  }
   0x8   : > { %s765_s17 = smov (!%p248_p2), 92   ;;  %s766_s18 = smov (!%p248_p2), 108   ;;  %v461_v34 = vld [vmem:[%s860_s2] sm:$0xff] (!%p248_p2)  ;;  %686 = vmatprep.mubr.msk.bf16.mxu1 (!%p248_p2), %vm769_vm0, %v760_v14  ;;  %vm403_vm5 = vcmask (!%p248_p2), 883712   ;;  %vm415_vm6 = vcmask (!%p248_p2), 752640   ;;  %vm427_vm7 = vcmask (!%p248_p2), 744448  }
   0x9   : > { %v334_v10 = vsub.s32 (!%p248_p2), 1, %v329_v6  ;;  %v338_v13 = vsub.s32 (!%p248_p2), 2, %v329_v6  ;;  %v330_v23 = vsub.s32 (!%p248_p2), 0, %v329_v6  ;;  %s767_s19 = smov (!%p248_p2), 90   ;;  %s768_s20 = smov (!%p248_p2), 91   ;;  %vm439_vm8 = vcmask (!%p248_p2), 736256  }
   0xa   : > { %vm471_vm9 = vcmask (!%p248_p2), 1043456   ;;  %vm467_vm10 = vcmask (!%p248_p2), 588800   ;;  %vm584_vm11 = vcmask (!%p248_p2), 257024  }
   0xb   : > { %317 = vperm.xlu0 (!%p248_p2), %710, %v314_v2   ;;  %v335_v17 = vrot.slane (!%p248_p2), %v326_v12, %v334_v10  ;;  %v339_v20 = vrot.slane (!%p248_p2), %v326_v12, %v338_v13  ;;  %v331_v29 = vrot.slane (!%p248_p2), %v326_v12, %v330_v23 }
   0xd   : > { %s867_s25 = smov (!%p284_p3, %s653_s25), 1 }
   0xe   : > { %s824_s30 = smul.u32 12, %s867_s25 }
  0x10   : > { %s288_s10 = scalar_lea.vmem %s858_s0, %s824_s30  ;;  %s293_s28 = scalar_lea.vmem %s864_s6, %s824_s30 }
  0x11   : > { %v300_v4 = vld [vmem:[%s288_s10] sm:$0xff]  ;;  %v301_v5 = vld [vmem:[%s288_s10 + $0x8] sm:$0xf]  ;;  %s298_s9 = scalar_lea.vmem %s865_s7, %s824_s30 }
  0x12   : > { %v303_v7 = vunpack.c.h.bf16 %v300_v4  ;;  %v304_v8 = vunpack.c.l.bf16 %v301_v5  ;;  %v302_v11 = vunpack.c.l.bf16 %v300_v4 }
  0x86   : > { %v309_v9 = vpop.permute.xlu0 %308 }
  0x87   : > { %v312_v15 = vmul.f32 %v309_v9, %v303_v7  ;;  %v313_v16 = vmul.f32 %v309_v9, %v304_v8  ;;  %v311_v19 = vmul.f32 %v309_v9, %v302_v11 }
  0x8a   : > { %v318_v18 = vpop.permute.xlu0 %317 }
  0x8b   : > { %v321_v21 = vadd.f32 %v318_v18, %v312_v15  ;;  %v322_v22 = vadd.f32 %v318_v18, %v313_v16  ;;  %v320_v24 = vadd.f32 %v318_v18, %v311_v19 }
  0x8d   : > { %v324_v25 = vmax.f32 %v321_v21, 0.0  ;;  %v325_v26 = vmax.f32 %v322_v22, 0.0  ;;  %v323_v30 = vmax.f32 %v320_v24, 0.0 }
  0x8f   : > { %v344_v27 = vmul.f32 %v335_v17, %v324_v25  ;;  %v345_v28 = vmul.f32 %v339_v20, %v325_v26  ;;  %v343_v32 = vmul.f32 %v331_v29, %v323_v30 }
  0x91   : > { %v716_v31 = vpack.i.bf16 %v345_v28, %v344_v27  ;;  %v746_v33 = vpack.i.bf16 %v344_v27, %v343_v32 }
  0x93   : > { %717 = vrot.lane.b32.xlu0 %v716_v31, %s761_s13  ;;  %712 = vrot.lane.b32.xlu1 %v716_v31, %s762_s14 }
  0x97   : > { %361 = vrot.lane.b32.xlu0 %v343_v32, %s761_s13  ;;  %349 = vrot.lane.b32.xlu1 %v343_v32, %s762_s14 }
  0x9b   : > { %727 = vrot.lane.b32.xlu0 %v716_v31, %s763_s15  ;;  %722 = vrot.lane.b32.xlu1 %v716_v31, %s764_s16 }
  0x9f   : > { %385 = vrot.lane.b32.xlu0 %v343_v32, %s763_s15  ;;  %373 = vrot.lane.b32.xlu1 %v343_v32, %s764_s16 }
  0xa3   : > { %737 = vrot.lane.b32.xlu0 %v716_v31, %s765_s17  ;;  %732 = vrot.lane.b32.xlu1 %v716_v31, %s766_s18 }
  0xa7   : > { %409 = vrot.lane.b32.xlu0 %v343_v32, %s765_s17  ;;  %397 = vrot.lane.b32.xlu1 %v343_v32, %s766_s18 }
  0xab   : > { %747 = vrot.lane.b32.xlu0 %v746_v33, %s767_s19  ;;  %742 = vrot.lane.b32.xlu1 %v716_v31, %s768_s20 }
  0xaf   : > { %464 = vperm.xlu0 %710, %v461_v34   ;;  %421 = vrot.lane.b32.xlu1 %v343_v32, %s768_s20 }
  0xb3   : > { %437 = vrot.lane.b32.xlu1 %v345_v28, %s767_s19 }
 0x105   : > { %v718_v35 = vpop.permute.xlu0 %717  ;;  %v713_v36 = vpop.permute.xlu1 %712 }
 0x106   : > { %v715_v37 = vunpack.i.h.bf16 %v713_v36  ;;  %v714_v38 = vunpack.i.l.bf16 %v713_v36  ;;  %v720_v46 = vunpack.i.h.bf16 %v718_v35  ;;  %v719_v47 = vunpack.i.l.bf16 %v718_v35 }
 0x108   : > { %v448_v39 = vpack.c.bf16 %v715_v37, %v345_v28  ;;  %v357_v40 = vsel %vm355_vm1, %v714_v38, %v715_v37  ;;  %v369_v53 = vsel %vm367_vm2, %v719_v47, %v720_v46  ;;  %v445_v37 = vld [vmem:[%s859_s1] sm:$0xf] }
 0x109   : > { %v362_v41 = vpop.permute.xlu0 %361  ;;  %v350_v42 = vpop.permute.xlu1 %349  ;;  %v447_v43 = vpack.c.bf16 %v357_v40, %v344_v27 }
 0x10a   : > { %v356_v44 = vsel %vm355_vm1, %v350_v42, %v714_v38  ;;  %677 = vmatpush3.bf16.msra.mxu1 %v448_v39  ;;  %v368_v58 = vsel %vm367_vm2, %v362_v41, %v719_v47  ;;  %v562_v38 = vld [vmem:[%s293_s28] sm:$0xff] }
 0x10b   : > { %481 = vmatprep.subr.bf16.mxu0 %v447_v43  ;;  %v446_v45 = vpack.c.bf16 %v356_v44, %v343_v32  ;;  %678 = vmatprep.subr.bf16.mxu1 %v760_v14  ;;  %v564_v42 = vunpack.c.l.bf16 %v562_v38 }
 0x10d   : > { %v728_v48 = vpop.permute.xlu0 %727  ;;  %482 = vmatpush1.bf16.msra.mxu0 %v446_v45  ;;  %v723_v49 = vpop.permute.xlu1 %722 }
 0x10e   : > { %v725_v50 = vunpack.i.h.bf16 %v723_v49  ;;  %v724_v51 = vunpack.i.l.bf16 %v723_v49  ;;  %v730_v61 = vunpack.i.h.bf16 %v728_v48  ;;  %v729_v62 = vunpack.i.l.bf16 %v728_v48 }
 0x110   : > { %v451_v52 = vpack.c.bf16 %v725_v50, %v720_v46  ;;  %v381_v54 = vsel %vm379_vm3, %v724_v51, %v725_v50  ;;  %v393_v4 = vsel %vm391_vm4, %v729_v62, %v730_v61  ;;  %v565_v46 = vunpack.c.h.bf16 %v562_v38 }
 0x111   : > { %v386_v55 = vpop.permute.xlu0 %385  ;;  %v374_v56 = vpop.permute.xlu1 %373  ;;  %v450_v57 = vpack.c.bf16 %v381_v54, %v369_v53 }
 0x112   : > { %v380_v59 = vsel %vm379_vm3, %v374_v56, %v724_v51  ;;  %679 = vmatpush3.bf16.msra.mxu1 %v451_v52  ;;  %v392_v9 = vsel %vm391_vm4, %v386_v55, %v729_v62 }
 0x113   : > { %v449_v60 = vpack.c.bf16 %v380_v59, %v368_v58  ;;  %483 = vmatprep.subr.bf16.mxu0 %v450_v57  ;;  %680 = vmatprep.subr.bf16.mxu1 %v760_v14 }
 0x115   : > { %v738_v63 = vpop.permute.xlu0 %737  ;;  %v733_v0 = vpop.permute.xlu1 %732  ;;  %484 = vmatpush1.bf16.msra.mxu0 %v449_v60 }
 0x116   : > { %v735_v1 = vunpack.i.h.bf16 %v733_v0  ;;  %v734_v2 = vunpack.i.l.bf16 %v733_v0  ;;  %v740_v12 = vunpack.i.h.bf16 %v738_v63  ;;  %v739_v13 = vunpack.i.l.bf16 %v738_v63 }
 0x118   : > { %v454_v3 = vpack.c.bf16 %v735_v1, %v730_v61  ;;  %v405_v5 = vsel %vm403_vm5, %v734_v2, %v735_v1  ;;  %v417_v22 = vsel %vm415_vm6, %v739_v13, %v740_v12 }
 0x119   : > { %v410_v6 = vpop.permute.xlu0 %409  ;;  %v398_v7 = vpop.permute.xlu1 %397  ;;  %v453_v8 = vpack.c.bf16 %v405_v5, %v393_v4 }
 0x11a   : > { %v404_v10 = vsel %vm403_vm5, %v398_v7, %v734_v2  ;;  %681 = vmatpush3.bf16.msra.mxu1 %v454_v3  ;;  %v416_v26 = vsel %vm415_vm6, %v410_v6, %v739_v13 }
 0x11b   : > { %v452_v11 = vpack.c.bf16 %v404_v10, %v392_v9  ;;  %485 = vmatprep.subr.bf16.mxu0 %v453_v8  ;;  %682 = vmatprep.subr.bf16.mxu1 %v760_v14 }
 0x11d   : > { %v748_v15 = vpop.permute.xlu0 %747  ;;  %v743_v16 = vpop.permute.xlu1 %742  ;;  %486 = vmatpush1.bf16.msra.mxu0 %v452_v11 }
 0x11e   : > { %v750_v17 = vunpack.i.h.bf16 %v748_v15  ;;  %v749_v18 = vunpack.i.l.bf16 %v748_v15  ;;  %v745_v19 = vunpack.i.h.bf16 %v743_v16  ;;  %v744_v20 = vunpack.i.l.bf16 %v743_v16 }
 0x120   : > { %v457_v21 = vpack.c.bf16 %v745_v19, %v740_v12  ;;  %v429_v23 = vsel %vm427_vm7, %v744_v20, %v745_v19  ;;  %v440_v28 = vsel %vm439_vm8, %v749_v18, %v750_v17 }
 0x121   : > { %v422_v24 = vpop.permute.xlu1 %421  ;;  %v456_v25 = vpack.c.bf16 %v429_v23, %v417_v22  ;;  %v458_v31 = vpack.c.bf16 %v440_v28, %v440_v28 }
 0x122   : > { %v428_v27 = vsel %vm427_vm7, %v422_v24, %v744_v20  ;;  %683 = vmatpush3.bf16.msra.mxu1 %v457_v21 }
 0x123   : > { %v455_v29 = vpack.c.bf16 %v428_v27, %v416_v26  ;;  %487 = vmatprep.subr.bf16.mxu0 %v456_v25  ;;  %684 = vmatprep.subr.bf16.mxu1 %v760_v14  ;;  %v473_v36 = vsel %vm471_vm9, %v458_v31, 0  ;;  %v563_v14 = vld [vmem:[%s293_s28 + $0x8] sm:$0xf] }
 0x124   : > { %v566_v39 = vunpack.c.l.bf16 %v563_v14 }
 0x125   : > { %v438_v30 = vpop.permute.xlu1 %437  ;;  %488 = vmatpush1.bf16.msra.mxu0 %v455_v29 }
 0x126   : > { %v441_v32 = vsel %vm439_vm8, %v750_v17, %v438_v30  ;;  %v460_v33 = vpack.c.bf16 %v438_v30, %v438_v30 }
 0x127   : > { %v459_v34 = vpack.c.bf16 %v441_v32, %v441_v32 }
 0x128   : > { %v479_v35 = vsel %vm471_vm9, %v460_v33, 0 }
 0x129   : > { %661 = vmatprep.subr.msk.bf16.mxu0 %vm471_vm9, %v459_v34  ;;  %685 = vmatpush3.bf16.msra.mxu1 %v479_v35 }
 0x12a   : > { %490 = vmatpush1.bf16.msra.mxu0 %v473_v36 }
 0x12c   : > { %687 = vmatmul.mubr.msk.bf16.vlgmr.msra.gmra.mrb[0].mxu1 %vm467_vm10, %v445_v37 }
 0x12d   : > { %662 = vmatmul.mubr.msk.bf16.vlgmr.msra.gmra.mrb[0].mxu0 %vm467_vm10, %v445_v37 }
 0x12e   : > { %v465_v40 = vpop.permute.xlu0 %464 }
 0x1ff   : > { %v556_v41 = vpop.f32.mrb[0].mxu1 }
 0x200   : > { %v557_v43 = vadd.f32 %v556_v41, %v465_v40  ;;  %v515_v44 = vpop.f32.mrb[0].mxu0  ;;  %v688_v45 = vpop.f32.mrb[1].mxu1 }
 0x201   : > { %v516_v47 = vadd.f32 %v515_v44, %v465_v40  ;;  %v517_v48 = vpop.f32.mrb[1].mxu0  ;;  %v559_v49 = vpop.f32.mrb[2].mxu1 }
 0x202   : > { %v569_v50 = vadd.f32 %v566_v39, %v557_v43  ;;  %v518_v51 = vadd.f32 %v517_v48, %v465_v40  ;;  %v519_v52 = vpop.f32.mrb[2].mxu0  ;;  %v689_v53 = vpop.f32.mrb[3].mxu1 }
 0x203   : > { %v567_v54 = vadd.f32 %v564_v42, %v516_v47  ;;  %v520_v55 = vpop.f32.mrb[3].mxu0 }
 0x204   : > { %v669_v56 = vpack.c.bf16 %v569_v50, %v569_v50  ;;  %v568_v57 = vadd.f32 %v565_v46, %v518_v51 }
 0x206   : > { %585 = vst.msk [vmem:[%s298_s9 + $0x8] sm:$0xf] %vm584_vm11, %v669_v56  ;;  %v668_v58 = vpack.c.bf16 %v568_v57, %v567_v54 }
 0x208   : > { %583 = vst [vmem:[%s298_s9] sm:$0xff] %v668_v58 }
 0x209 PF: > { %s17_s24 = sadd.s32 1, %s757_s24  }
 0x20a   : > { %p14_p4 = scmp.ge.s32.totalorder %s17_s24, 4  }
 0x20c   :  { %16 = sbr.rel (!%p14_p4) target bundleno = 1 (0x1), region = 81 }

// kernel: sequence_gru_forward.12
= control target key start
LH: loop header
LB: loop body
LE: loop exit
PB: predicated region body
PF: predicated region fallthrough
CT: control target
= control target key end

     0   :  { %s1352_s21 = smov 0   ;;  %s1784_s0 = inlined_call_operand.vmem [shape: bf16[2,8,1280], index: 0, kind: input, shape index: {}]   ;;  %s1785_s1 = inlined_call_operand.vmem [shape: bf16[8,72], index: 1, kind: input, shape index: {}]   ;;  %s1786_s2 = inlined_call_operand.vmem [shape: f32[8,1], index: 2, kind: input, shape index: {}]   ;;  %s1787_s3 = inlined_call_operand.vmem [shape: f32[8,1], index: 3, kind: input, shape index: {}]   ;;  %s1788_s4 = inlined_call_operand.vmem [shape: f32[8,1], index: 4, kind: input, shape index: {}]   ;;  %s1789_s5 = inlined_call_operand.vmem [shape: f32[1,1280], index: 5, kind: input, shape index: {}]   ;;  %s1790_s6 = inlined_call_operand.vmem [shape: bf16[2,8,1088], index: 6, kind: output, shape index: {}]  }
   0x1 LB: > { %s1067_s22 = sadd.s32 4294967295, %s1304_s21   ;;  %p1071_p0 = scmp.ge.s32.totalorder %s1304_s21, 1  ;;  %s1304_s21 = sphi %s1352_s21, %s16_s21  }
   0x2   : > { %p212_p1 = scmp.lt.s32.totalorder %s1304_s21, 3 }
   0x4   : > { %p213_p2 = pnand %p1071_p0, %p212_p1 }
   0x5   : > { %v268_v0 = vld [vmem:[%s1787_s3] sm:$0xff] (!%p213_p2)  ;;  %v1306_v1 = vmov (!%p213_p2), 0   ;;  %p242_p3 = scmp.lt.s32.totalorder (!%p213_p2), %s1067_s22, 1  ;;  %v314_v3 = vlaneseq (!%p213_p2)  ;;  %s1307_s9 = smov (!%p213_p2), 126   ;;  %v1428_v41 = vld [vmem:[%s1789_s5 + $0x8] sm:$0x3] (!%p213_p2) }
   0x6   : > { %216 = sbr.rel (%p213_p2) target bundleno = 573 (0x23d), region = 44  ;;  %1136 = vset.pattern.permute.xlu0 (!%p213_p2), %v1306_v1  ;;  %797 = vmatprep.mubr.bf16.mxu0 (!%p213_p2), %v1306_v1  ;;  %v284_v2 = vld [vmem:[%s1788_s4] sm:$0xff] (!%p213_p2)  ;;  %s1308_s10 = smov (!%p213_p2), 127   ;;  %vm401_vm0 = vcmask (!%p213_p2), 1039360   ;;  %vm437_vm1 = vcmask (!%p213_p2), 1031168   ;;  %vm473_vm2 = vcmask (!%p213_p2), 769024  }
   0x7   : > { %271 = vperm.xlu0 (!%p213_p2), %1136, %v268_v0   ;;  %838 = vmatprep.mubr.bf16.mxu1 (!%p213_p2), %v1306_v1  ;;  %v1380_v6 = vshrl.u32 (!%p213_p2), %v314_v3, 7  ;;  %v1388_v13 = vld [vmem:[%s1789_s5] sm:$0xff] (!%p213_p2)  ;;  %s1309_s13 = smov (!%p213_p2), 93   ;;  %s1310_s14 = smov (!%p213_p2), 94   ;;  %vm509_vm3 = vcmask (!%p213_p2), 760832   ;;  %vm545_vm4 = vcmask (!%p213_p2), 752640  }
   0x8   : > { %1297 = vset.pattern.permute.xlu1 (!%p213_p2), %v1306_v1  ;;  %s1311_s15 = smov (!%p213_p2), 60   ;;  %s1312_s16 = smov (!%p213_p2), 92   ;;  %vm584_vm5 = vcmask (!%p213_p2), 490496   ;;  %vm623_vm6 = vcmask (!%p213_p2), 482304   ;;  %vm662_vm7 = vcmask (!%p213_p2), 474112   ;;  %vm737_vm8 = vcmask (!%p213_p2), 1043456  }
   0x9   : > { %v320_v12 = vsub.s32 (!%p213_p2), 1, %v1380_v6  ;;  %v324_v14 = vsub.s32 (!%p213_p2), 2, %v1380_v6  ;;  %v316_v19 = vsub.s32 (!%p213_p2), 0, %v1380_v6  ;;  %v328_v21 = vsub.s32 (!%p213_p2), 3, %v1380_v6  ;;  %s1313_s17 = smov (!%p213_p2), 58   ;;  %s1314_s18 = smov (!%p213_p2), 59  }
   0xa   : > { %v332_v54 = vsub.s32 (!%p213_p2), 4, %v1380_v6  ;;  %v336_v55 = vsub.s32 (!%p213_p2), 5, %v1380_v6  ;;  %v340_v3 = vsub.s32 (!%p213_p2), 6, %v1380_v6  ;;  %vm733_vm9 = vcmask (!%p213_p2), 588800  }
   0xb   : > { %287 = vperm.xlu0 (!%p213_p2), %1136, %v284_v2   ;;  %v321_v20 = vrot.slane (!%p213_p2), %v1388_v13, %v320_v12  ;;  %v325_v27 = vrot.slane (!%p213_p2), %v1388_v13, %v324_v14  ;;  %v317_v30 = vrot.slane (!%p213_p2), %v1388_v13, %v316_v19  ;;  %v329_v31 = vrot.slane (!%p213_p2), %v1388_v13, %v328_v21 }
   0xc   : > { %v353_v46 = vrot.slane (!%p213_p2), %v1428_v41, %v320_v12  ;;  %v333_v60 = vrot.slane (!%p213_p2), %v1388_v13, %v332_v54  ;;  %v337_v61 = vrot.slane (!%p213_p2), %v1388_v13, %v336_v55  ;;  %v341_v12 = vrot.slane (!%p213_p2), %v1388_v13, %v340_v3 }
   0xd   : > { %s1792_s22 = smov (!%p242_p3, %s1067_s22), 1  ;;  %vm1316_vm10 = vmmov 0   ;;  %vm1010_vm11 = vcmask 519168  }
   0xe   : > { %s1115_s27 = smul.u32 40, %s1792_s22 }
   0xf   : > { %s1116_s25 = smul.u32 36, %s1792_s22 }
  0x10   : > { %s1376_s30 = scalar_lea.vmem %s1784_s0, %s1115_s27 }
  0x11   : > { %v253_v4 = vld [vmem:[%s1376_s30] sm:$0xff]  ;;  %v254_v5 = vld [vmem:[%s1376_s30 + $0x8] sm:$0xff]  ;;  %v255_v44 = vld [vmem:[%s1376_s30 + $0x10] sm:$0xff]  ;;  %s1774_s28 = scalar_lea.vmem %s1790_s6, %s1116_s25 }
  0x12   : > { %v258_v7 = vunpack.c.l.bf16 %v253_v4  ;;  %v259_v8 = vunpack.c.h.bf16 %v253_v4  ;;  %v260_v9 = vunpack.c.l.bf16 %v254_v5  ;;  %v261_v10 = vunpack.c.h.bf16 %v254_v5  ;;  %v1412_v35 = vld [vmem:[%s1376_s30 + $0x20] sm:$0xff]  ;;  %v256_v51 = vld [vmem:[%s1376_s30 + $0x18] sm:$0xff] }
  0x13   : > { %v267_v40 = vunpack.c.h.bf16 %v1412_v35  ;;  %v262_v48 = vunpack.c.l.bf16 %v255_v44  ;;  %v263_v49 = vunpack.c.h.bf16 %v255_v44  ;;  %v264_v58 = vunpack.c.l.bf16 %v256_v51 }
  0x14   : > { %v265_v59 = vunpack.c.h.bf16 %v256_v51  ;;  %v344_v4 = vsub.s32 7, %v1380_v6  ;;  %v727_v6 = vld [vmem:[%s1786_s2] sm:$0xff] }
  0x16   : > { %v345_v14 = vrot.slane %v1388_v13, %v344_v4 }
  0x86   : > { %v1382_v11 = vpop.permute.xlu0 %271 }
  0x87   : > { %v274_v15 = vmul.f32 %v1382_v11, %v258_v7  ;;  %v275_v16 = vmul.f32 %v1382_v11, %v259_v8  ;;  %v276_v17 = vmul.f32 %v1382_v11, %v260_v9  ;;  %v277_v18 = vmul.f32 %v1382_v11, %v261_v10 }
  0x88   : > { %v283_v43 = vmul.f32 %v1382_v11, %v267_v40  ;;  %v278_v52 = vmul.f32 %v1382_v11, %v262_v48  ;;  %v279_v53 = vmul.f32 %v1382_v11, %v263_v49  ;;  %v280_v0 = vmul.f32 %v1382_v11, %v264_v58 }
  0x89   : > { %v281_v2 = vmul.f32 %v1382_v11, %v265_v59 }
  0x8a   : > { %v1398_v22 = vpop.permute.xlu0 %287 }
  0x8b   : > { %v290_v23 = vadd.f32 %v1398_v22, %v274_v15  ;;  %v291_v24 = vadd.f32 %v1398_v22, %v275_v16  ;;  %v292_v25 = vadd.f32 %v1398_v22, %v276_v17  ;;  %v293_v26 = vadd.f32 %v1398_v22, %v277_v18 }
  0x8c   : > { %v299_v45 = vadd.f32 %v1398_v22, %v283_v43  ;;  %v294_v56 = vadd.f32 %v1398_v22, %v278_v52  ;;  %v295_v57 = vadd.f32 %v1398_v22, %v279_v53  ;;  %v296_v5 = vadd.f32 %v1398_v22, %v280_v0 }
  0x8d   : > { %v301_v28 = vmax.f32 %v291_v24, 0.0  ;;  %v302_v29 = vmax.f32 %v292_v25, 0.0  ;;  %v300_v32 = vmax.f32 %v290_v23, 0.0  ;;  %v303_v33 = vmax.f32 %v293_v26, 0.0 }
  0x8e   : > { %v309_v47 = vmax.f32 %v299_v45, 0.0  ;;  %v304_v62 = vmax.f32 %v294_v56, 0.0  ;;  %v305_v63 = vmax.f32 %v295_v57, 0.0  ;;  %v297_v7 = vadd.f32 %v1398_v22, %v281_v2 }
  0x8f   : > { %v1409_v34 = vmul.f32 %v321_v20, %v301_v28  ;;  %v1414_v36 = vmul.f32 %v325_v27, %v302_v29  ;;  %v1416_v37 = vmul.f32 %v317_v30, %v300_v32  ;;  %v1418_v38 = vmul.f32 %v329_v31, %v303_v33 }
  0x90   : > { %v1440_v50 = vmul.f32 %v353_v46, %v309_v47  ;;  %v1463_v8 = vmul.f32 %v333_v60, %v304_v62  ;;  %v1465_v9 = vmul.f32 %v337_v61, %v305_v63  ;;  %v306_v15 = vmax.f32 %v296_v5, 0.0 }
  0x91   : > { %v1147_v39 = vpack.i.bf16 %v1414_v36, %v1409_v34  ;;  %v1157_v42 = vpack.i.bf16 %v1418_v38, %v1416_v37  ;;  %v1207_v10 = vpack.i.bf16 %v1409_v34, %v1416_v37  ;;  %v307_v16 = vmax.f32 %v297_v7, 0.0 }
  0x92   : > { %v1217_v17 = vpack.i.bf16 %v1465_v9, %v1463_v8  ;;  %v1477_v18 = vmul.f32 %v341_v12, %v306_v15  ;;  %v1212_v21 = vpack.i.bf16 %v1418_v38, %v1414_v36  ;;  %v266_v23 = vunpack.c.l.bf16 %v1412_v35 }
  0x93   : > { %1148 = vrot.lane.b32.xlu0 %v1147_v39, %s1307_s9  ;;  %1138 = vrot.lane.b32.xlu1 %v1147_v39, %s1308_s10  ;;  %v1479_v20 = vmul.f32 %v345_v14, %v307_v16  ;;  %v349_v26 = vrot.slane %v1428_v41, %v316_v19 }
  0x94   : > { %v282_v24 = vmul.f32 %v1382_v11, %v266_v23 }
  0x95   : > { %v1237_v13 = vpack.i.bf16 %v1479_v20, %v1477_v18 }
  0x96   : > { %v298_v25 = vadd.f32 %v1398_v22, %v282_v24 }
  0x97   : > { %1158 = vrot.lane.b32.xlu0 %v1157_v42, %s1307_s9  ;;  %1143 = vrot.lane.b32.xlu1 %v1157_v42, %s1308_s10 }
  0x98   : > { %v308_v27 = vmax.f32 %v298_v25, 0.0 }
  0x9a   : > { %v1509_v11 = vmul.f32 %v349_v26, %v308_v27 }
  0x9b   : > { %1168 = vrot.lane.b32.xlu0 %v1147_v39, %s1309_s13  ;;  %1153 = vrot.lane.b32.xlu1 %v1147_v39, %s1310_s14 }
  0x9c   : > { %v1267_v22 = vpack.i.bf16 %v1509_v11, %v1479_v20 }
  0x9f   : > { %1178 = vrot.lane.b32.xlu0 %v1157_v42, %s1309_s13  ;;  %1163 = vrot.lane.b32.xlu1 %v1157_v42, %s1310_s14 }
  0xa3   : > { %1188 = vrot.lane.b32.xlu0 %v1147_v39, %s1311_s15  ;;  %1173 = vrot.lane.b32.xlu1 %v1147_v39, %s1312_s16 }
  0xa7   : > { %1198 = vrot.lane.b32.xlu0 %v1157_v42, %s1311_s15  ;;  %1183 = vrot.lane.b32.xlu1 %v1157_v42, %s1312_s16 }
  0xab   : > { %1208 = vrot.lane.b32.xlu0 %v1207_v10, %s1313_s17  ;;  %1193 = vrot.lane.b32.xlu1 %v1147_v39, %s1314_s18 }
  0xaf   : > { %1218 = vrot.lane.b32.xlu0 %v1217_v17, %s1308_s10  ;;  %1203 = vrot.lane.b32.xlu1 %v1157_v42, %s1314_s18 }
  0xb3   : > { %1228 = vrot.lane.b32.xlu0 %v1217_v17, %s1307_s9  ;;  %1213 = vrot.lane.b32.xlu1 %v1212_v21, %s1313_s17 }
  0xb7   : > { %1238 = vrot.lane.b32.xlu0 %v1237_v13, %s1307_s9  ;;  %1223 = vrot.lane.b32.xlu1 %v1237_v13, %s1308_s10 }
  0xbb   : > { %1243 = vrot.lane.b32.xlu0 %v1217_v17, %s1309_s13  ;;  %1233 = vrot.lane.b32.xlu1 %v1217_v17, %s1310_s14 }
  0xbf   : > { %503 = vrot.lane.b32.xlu0 %v1477_v18, %s1309_s13  ;;  %467 = vrot.lane.b32.xlu1 %v1477_v18, %s1310_s14 }
  0xc3   : > { %1253 = vrot.lane.b32.xlu0 %v1217_v17, %s1311_s15  ;;  %1248 = vrot.lane.b32.xlu1 %v1217_v17, %s1312_s16 }
  0xc7   : > { %576 = vrot.lane.b32.xlu0 %v1477_v18, %s1311_s15  ;;  %539 = vrot.lane.b32.xlu1 %v1477_v18, %s1312_s16 }
  0xcb   : > { %1263 = vrot.lane.b32.xlu0 %v1217_v17, %s1313_s17  ;;  %1258 = vrot.lane.b32.xlu1 %v1217_v17, %s1314_s18 }
  0xcf   : > { %399 = vrot.lane.b32.xlu0 %v1509_v11, %s1308_s10  ;;  %615 = vrot.lane.b32.xlu1 %v1477_v18, %s1314_s18 }
  0xd3   : > { %1268 = vrot.lane.b32.xlu0 %v1267_v22, %s1310_s14  ;;  %654 = vrot.lane.b32.xlu1 %v1477_v18, %s1313_s17 }
  0xd7   : > { %1278 = vrot.lane.b32.xlu0 %v1267_v22, %s1312_s16  ;;  %435 = vrot.lane.b32.xlu1 %v1509_v11, %s1307_s9 }
  0xdb   : > { %1288 = vrot.lane.b32.xlu0 %v1267_v22, %s1314_s18  ;;  %1273 = vrot.lane.b32.xlu1 %v1267_v22, %s1309_s13 }
  0xdf   : > { %621 = vrot.lane.b32.xlu0 %v1440_v50, %s1314_s18  ;;  %1283 = vrot.lane.b32.xlu1 %v1267_v22, %s1311_s15 }
  0xe3   : > { %660 = vrot.lane.b32.xlu0 %v1440_v50, %s1313_s17  ;;  %582 = vrot.lane.b32.xlu1 %v1440_v50, %s1311_s15 }
  0xe7   : > { %1293 = vrot.lane.b32.xlu1 %v1267_v22, %s1313_s17 }
  0xeb   : > { %730 = vperm.xlu1 %1297, %v727_v6  }
 0x105   : > { %v1536_v19 = vpop.permute.xlu0 %1148  ;;  %v1538_v28 = vpop.permute.xlu1 %1138 }
 0x106   : > { %v1141_v29 = vunpack.i.h.bf16 %v1538_v28  ;;  %v1140_v30 = vunpack.i.l.bf16 %v1538_v28  ;;  %v1151_v40 = vunpack.i.h.bf16 %v1536_v19  ;;  %v1150_v41 = vunpack.i.l.bf16 %v1536_v19 }
 0x108   : > { %v403_v31 = vsel %vm401_vm0, %v1140_v30, %v1141_v29  ;;  %v439_v48 = vsel %vm437_vm1, %v1150_v41, %v1151_v40 }
 0x109   : > { %v1545_v32 = vpop.permute.xlu0 %1158  ;;  %v1547_v33 = vpop.permute.xlu1 %1143  ;;  %v683_v35 = vpack.c.bf16 %v403_v31, %v1409_v34 }
 0x10a   : > { %v1145_v39 = vunpack.i.l.bf16 %v1547_v33  ;;  %v1160_v47 = vunpack.i.l.bf16 %v1545_v32  ;;  %v1146_v23 = vunpack.i.h.bf16 %v1547_v33 }
 0x10b   : > { %765 = vmatprep.subr.bf16.mxu0 %v683_v35 }
 0x10c   : > { %v402_v42 = vsel %vm401_vm0, %v1145_v39, %v1140_v30  ;;  %v438_v55 = vsel %vm437_vm1, %v1160_v47, %v1150_v41  ;;  %v404_v39 = vsel %vm401_vm0, %v1141_v29, %v1146_v23 }
 0x10d   : > { %v1554_v43 = vpop.permute.xlu0 %1168  ;;  %v1556_v44 = vpop.permute.xlu1 %1153  ;;  %v682_v45 = vpack.c.bf16 %v402_v42, %v1416_v37  ;;  %v684_v28 = vpack.c.bf16 %v404_v39, %v1414_v36 }
 0x10e   : > { %v1156_v46 = vunpack.i.h.bf16 %v1556_v44  ;;  %v1155_v34 = vunpack.i.l.bf16 %v1556_v44  ;;  %v1171_v53 = vunpack.i.h.bf16 %v1554_v43  ;;  %v1170_v54 = vunpack.i.l.bf16 %v1554_v43 }
 0x10f   : > { %766 = vmatpush1.bf16.msra.mxu0 %v682_v45 }
 0x110   : > { %v475_v49 = vsel %vm473_vm2, %v1155_v34, %v1156_v46  ;;  %v511_v63 = vsel %vm509_vm3, %v1170_v54, %v1171_v53 }
 0x111   : > { %v1568_v50 = vpop.permute.xlu0 %1178  ;;  %v1570_v37 = vpop.permute.xlu1 %1163  ;;  %v692_v51 = vpack.c.bf16 %v475_v49, %v439_v48 }
 0x112   : > { %v1165_v52 = vunpack.i.l.bf16 %v1570_v37  ;;  %v1180_v62 = vunpack.i.l.bf16 %v1568_v50 }
 0x113   : > { %767 = vmatprep.subr.bf16.mxu0 %v692_v51 }
 0x114   : > { %v474_v56 = vsel %vm473_vm2, %v1165_v52, %v1155_v34  ;;  %v510_v12 = vsel %vm509_vm3, %v1180_v62, %v1170_v54  ;;  %v1166_v62 = vunpack.i.h.bf16 %v1570_v37  ;;  %v1161_v37 = vunpack.i.h.bf16 %v1545_v32 }
 0x115   : > { %v1577_v57 = vpop.permute.xlu0 %1188  ;;  %v1579_v58 = vpop.permute.xlu1 %1173  ;;  %v691_v59 = vpack.c.bf16 %v474_v56, %v438_v55 }
 0x116   : > { %v1176_v60 = vunpack.i.h.bf16 %v1579_v58  ;;  %v1175_v61 = vunpack.i.l.bf16 %v1579_v58  ;;  %v1191_v7 = vunpack.i.h.bf16 %v1577_v57  ;;  %v1190_v10 = vunpack.i.l.bf16 %v1577_v57 }
 0x117   : > { %768 = vmatpush1.bf16.msra.mxu0 %v691_v59 }
 0x118   : > { %v547_v0 = vsel %vm545_vm4, %v1175_v61, %v1176_v60  ;;  %v586_v24 = vsel %vm584_vm5, %v1190_v10, %v1191_v7 }
 0x119   : > { %v1590_v2 = vpop.permute.xlu0 %1198  ;;  %v1592_v3 = vpop.permute.xlu1 %1183  ;;  %v701_v4 = vpack.c.bf16 %v547_v0, %v511_v63 }
 0x11a   : > { %v1185_v5 = vunpack.i.l.bf16 %v1592_v3  ;;  %v1200_v25 = vunpack.i.l.bf16 %v1590_v2 }
 0x11b   : > { %769 = vmatprep.subr.bf16.mxu0 %v701_v4 }
 0x11c   : > { %v546_v14 = vsel %vm545_vm4, %v1185_v5, %v1175_v61  ;;  %v585_v41 = vsel %vm584_vm5, %v1200_v25, %v1190_v10  ;;  %v1644_v5 = vld [vmem:[%s1785_s1] sm:$0xf]  ;;  %v476_v25 = vsel %vm473_vm2, %v1156_v46, %v1166_v62 }
 0x11d   : > { %v1209_v15 = vpop.permute.xlu0 %1208  ;;  %v1599_v16 = vpop.permute.xlu1 %1193  ;;  %v700_v17 = vpack.c.bf16 %v546_v14, %v510_v12 }
 0x11e   : > { %v1196_v21 = vunpack.i.h.bf16 %v1599_v16  ;;  %v1195_v13 = vunpack.i.l.bf16 %v1599_v16  ;;  %v1211_v26 = vunpack.i.h.bf16 %v1209_v15  ;;  %v1210_v27 = vunpack.i.l.bf16 %v1209_v15 }
 0x11f   : > { %770 = vmatpush1.bf16.msra.mxu0 %v700_v17 }
 0x120   : > { %v625_v22 = vsel %vm623_vm6, %v1195_v13, %v1196_v21  ;;  %v663_v34 = vsel %vm662_vm7, %v1210_v27, %v1211_v26 }
 0x121   : > { %v1219_v6 = vpop.permute.xlu0 %1218  ;;  %v1611_v30 = vpop.permute.xlu1 %1203  ;;  %v710_v31 = vpack.c.bf16 %v625_v22, %v586_v24  ;;  %v718_v29 = vpack.c.bf16 %v663_v34, %v663_v34 }
 0x122   : > { %v1220_v35 = vunpack.i.l.bf16 %v1219_v6  ;;  %v1205_v33 = vunpack.i.l.bf16 %v1611_v30  ;;  %v1221_v54 = vunpack.i.h.bf16 %v1219_v6  ;;  %v440_v6 = vsel %vm437_vm1, %v1151_v40, %v1161_v37 }
 0x123   : > { %771 = vmatprep.subr.bf16.mxu0 %v710_v31  ;;  %v739_v63 = vsel %vm737_vm8, %v718_v29, 0  ;;  %v693_v31 = vpack.c.bf16 %v476_v25, %v440_v6  ;;  %v1181_v40 = vunpack.i.h.bf16 %v1568_v50 }
 0x124   : > { %v624_v42 = vsel %vm623_vm6, %v1205_v33, %v1195_v13  ;;  %v405_v45 = vsel %vm401_vm0, %v1146_v23, %v1220_v35  ;;  %v406_v36 = vsel %vm401_vm0, %v1220_v35, %v1221_v54  ;;  %v1186_v35 = vunpack.i.h.bf16 %v1592_v3 }
 0x125   : > { %v1229_v47 = vpop.permute.xlu0 %1228  ;;  %v1621_v48 = vpop.permute.xlu1 %1213  ;;  %v709_v49 = vpack.c.bf16 %v624_v42, %v585_v41  ;;  %v685_v51 = vpack.c.bf16 %v405_v45, %v1418_v38  ;;  %v686_v15 = vpack.c.bf16 %v406_v36, %v1463_v8 }
 0x126   : > { %v1215_v52 = vunpack.i.l.bf16 %v1621_v48  ;;  %v1230_v0 = vunpack.i.l.bf16 %v1229_v47  ;;  %v1231_v24 = vunpack.i.h.bf16 %v1229_v47  ;;  %v548_v3 = vsel %vm545_vm4, %v1176_v60, %v1186_v35 }
 0x127   : > { %772 = vmatpush1.bf16.msra.mxu0 %v709_v49  ;;  %806 = vmatprep.subr.bf16.mxu1 %v685_v51 }
 0x128   : > { %v664_v55 = vsel %vm662_vm7, %v1211_v26, %v1215_v52  ;;  %807 = vmatpush1.bf16.msra.mxu1 %v684_v28  ;;  %v441_v32 = vsel %vm437_vm1, %v1161_v37, %v1230_v0  ;;  %v442_v33 = vsel %vm437_vm1, %v1230_v0, %v1231_v24 }
 0x129   : > { %v719_v56 = vpack.c.bf16 %v664_v55, %v664_v55  ;;  %v1629_v59 = vpop.permute.xlu0 %1238  ;;  %v1631_v61 = vpop.permute.xlu1 %1223 }
 0x12a   : > { %v1225_v38 = vunpack.i.l.bf16 %v1631_v61  ;;  %v1240_v17 = vunpack.i.l.bf16 %v1629_v59  ;;  %v1226_v57 = vunpack.i.h.bf16 %v1631_v61 }
 0x12b   : > { %1074 = vmatprep.subr.msk.bf16.mxu0 %vm737_vm8, %v719_v56 }
 0x12c   : > { %774 = vmatpush1.bf16.msra.mxu0 %v739_v63  ;;  %v407_v4 = vsel %vm401_vm0, %v1221_v54, %v1225_v38  ;;  %v443_v44 = vsel %vm437_vm1, %v1231_v24, %v1240_v17  ;;  %v1206_v54 = vunpack.i.h.bf16 %v1611_v30  ;;  %v1201_v30 = vunpack.i.h.bf16 %v1590_v2 }
 0x12d   : > { %v1244_v10 = vpop.permute.xlu0 %1243  ;;  %v1234_v12 = vpop.permute.xlu1 %1233  ;;  %v687_v14 = vpack.c.bf16 %v407_v4, %v1465_v9  ;;  %v1216_v4 = vunpack.i.h.bf16 %v1621_v48 }
 0x12e   : > { %v1236_v13 = vunpack.i.h.bf16 %v1234_v12  ;;  %v1235_v23 = vunpack.i.l.bf16 %v1234_v12  ;;  %v1245_v41 = vunpack.i.l.bf16 %v1244_v10  ;;  %v1246_v49 = vunpack.i.h.bf16 %v1244_v10 }
 0x12f   : > { %847 = vmatprep.subr.bf16.mxu0 %v687_v14  ;;  %1075 = vmatmul.mubr.msk.bf16.vlgmr.msra.gmra.mrb[0].mxu0 %vm733_vm9, %v1644_v5  ;;  %v626_v12 = vsel %vm623_vm6, %v1196_v21, %v1206_v54  ;;  %v587_v24 = vsel %vm584_vm5, %v1191_v7, %v1201_v30  ;;  %v665_v16 = vsel %vm662_vm7, %v1215_v52, %v1216_v4 }
 0x130   : > { %848 = vmatpush1.bf16.msra.mxu0 %v686_v15  ;;  %v477_v9 = vsel %vm473_vm2, %v1166_v62, %v1235_v23  ;;  %v478_v8 = vsel %vm473_vm2, %v1235_v23, %v1236_v13  ;;  %879 = vmatprep.mubr.bf16.mxu0 %v1306_v1  ;;  %v513_v51 = vsel %vm509_vm3, %v1181_v40, %v1245_v41 }
 0x131   : > { %v1658_v26 = vpop.permute.xlu0 %503  ;;  %v1660_v27 = vpop.permute.xlu1 %467  ;;  %v694_v22 = vpack.c.bf16 %v477_v9, %v441_v32  ;;  %v695_v19 = vpack.c.bf16 %v478_v8, %v442_v33  ;;  %v512_v62 = vsel %vm509_vm3, %v1171_v53, %v1181_v40  ;;  %v514_v63 = vsel %vm509_vm3, %v1245_v41, %v1246_v49 }
 0x132   : > { %v479_v46 = vsel %vm473_vm2, %v1236_v13, %v1660_v27  ;;  %v515_v58 = vsel %vm509_vm3, %v1246_v49, %v1658_v26  ;;  %v702_v36 = vpack.c.bf16 %v548_v3, %v512_v62  ;;  %v720_v33 = vpack.c.bf16 %v665_v16, %v665_v16 }
 0x133   : > { %v696_v39 = vpack.c.bf16 %v479_v46, %v443_v44  ;;  %808 = vmatprep.subr.bf16.mxu1 %v694_v22  ;;  %v711_v44 = vpack.c.bf16 %v626_v12, %v587_v24  ;;  %v408_v49 = vsel %vm401_vm0, %v1225_v38, %v1226_v57 }
 0x134   : > { %809 = vmatpush1.bf16.msra.mxu1 %v693_v31 }
 0x135   : > { %v1254_v42 = vpop.permute.xlu0 %1253  ;;  %v1249_v45 = vpop.permute.xlu1 %1248  ;;  %849 = vmatprep.subr.bf16.mxu0 %v696_v39 }
 0x136   : > { %v1251_v34 = vunpack.i.h.bf16 %v1249_v45  ;;  %v1250_v47 = vunpack.i.l.bf16 %v1249_v45  ;;  %850 = vmatpush1.bf16.msra.mxu0 %v695_v19  ;;  %v1255_v37 = vunpack.i.l.bf16 %v1254_v42  ;;  %v1256_v23 = vunpack.i.h.bf16 %v1254_v42 }
 0x138   : > { %v549_v28 = vsel %vm545_vm4, %v1186_v35, %v1250_v47  ;;  %v550_v29 = vsel %vm545_vm4, %v1250_v47, %v1251_v34  ;;  %v588_v32 = vsel %vm584_vm5, %v1201_v30, %v1255_v37  ;;  %v589_v48 = vsel %vm584_vm5, %v1255_v37, %v1256_v23 }
 0x139   : > { %v1681_v50 = vpop.permute.xlu0 %576  ;;  %v1683_v55 = vpop.permute.xlu1 %539  ;;  %v703_v56 = vpack.c.bf16 %v549_v28, %v513_v51  ;;  %v704_v10 = vpack.c.bf16 %v550_v29, %v514_v63  ;;  %v745_v28 = vsel %vm737_vm8, %v720_v33, 0  ;;  %v1315_v30 = vmov 0.0  }
 0x13a   : > { %v551_v60 = vsel %vm545_vm4, %v1251_v34, %v1683_v55  ;;  %v590_v7 = vsel %vm584_vm5, %v1256_v23, %v1681_v50 }
 0x13b   : > { %v705_v0 = vpack.c.bf16 %v551_v60, %v515_v58  ;;  %810 = vmatprep.subr.bf16.mxu1 %v703_v56  ;;  %v688_v58 = vpack.c.bf16 %v408_v49, %v1477_v18 }
 0x13c   : > { %811 = vmatpush1.bf16.msra.mxu1 %v702_v36 }
 0x13d   : > { %v1264_v43 = vpop.permute.xlu0 %1263  ;;  %v1259_v53 = vpop.permute.xlu1 %1258  ;;  %851 = vmatprep.subr.bf16.mxu0 %v705_v0 }
 0x13e   : > { %v1266_v14 = vunpack.i.h.bf16 %v1264_v43  ;;  %v1265_v15 = vunpack.i.l.bf16 %v1264_v43  ;;  %v1261_v13 = vunpack.i.h.bf16 %v1259_v53  ;;  %v1260_v2 = vunpack.i.l.bf16 %v1259_v53  ;;  %852 = vmatpush1.bf16.msra.mxu0 %v704_v10 }
 0x140   : > { %v666_v25 = vsel %vm662_vm7, %v1216_v4, %v1265_v15  ;;  %v627_v9 = vsel %vm623_vm6, %v1206_v54, %v1260_v2  ;;  %v628_v21 = vsel %vm623_vm6, %v1260_v2, %v1261_v13  ;;  %v667_v31 = vsel %vm662_vm7, %v1265_v15, %v1266_v14 }
 0x141   : > { %v400_v8 = vpop.permute.xlu0 %399  ;;  %v1708_v22 = vpop.permute.xlu1 %615  ;;  %v712_v6 = vpack.c.bf16 %v627_v9, %v588_v32  ;;  %v721_v52 = vpack.c.bf16 %v666_v25, %v666_v25  ;;  %v713_v39 = vpack.c.bf16 %v628_v21, %v589_v48  ;;  %v722_v42 = vpack.c.bf16 %v667_v31, %v667_v31 }
 0x142   : > { %v629_v46 = vsel %vm623_vm6, %v1261_v13, %v1708_v22  ;;  %v409_v41 = vsel %vm401_vm0, %v1226_v57, %v400_v8  ;;  %v1241_v54 = vunpack.i.h.bf16 %v1629_v59  ;;  %v690_v63 = vpack.c.bf16 %v400_v8, %v1509_v11 }
 0x143   : > { %v714_v35 = vpack.c.bf16 %v629_v46, %v590_v7  ;;  %812 = vmatprep.subr.bf16.mxu1 %v712_v6  ;;  %v689_v3 = vpack.c.bf16 %v409_v41, %v1479_v20  ;;  %v751_v62 = vsel %vm737_vm8, %v722_v42, 0 }
 0x144   : > { %813 = vmatpush1.bf16.msra.mxu1 %v711_v44  ;;  %v444_v18 = vsel %vm437_vm1, %v1240_v17, %v1241_v54 }
 0x145   : > { %v1269_v19 = vpop.permute.xlu0 %1268  ;;  %v1718_v40 = vpop.permute.xlu1 %654  ;;  %1076 = vmatprep.subr.msk.bf16.mxu1 %vm737_vm8, %v721_v52  ;;  %853 = vmatprep.subr.bf16.mxu0 %v714_v35 }
 0x146   : > { %v1271_v45 = vunpack.i.h.bf16 %v1269_v19  ;;  %v1270_v34 = vunpack.i.l.bf16 %v1269_v19  ;;  %v668_v47 = vsel %vm662_vm7, %v1266_v14, %v1718_v40  ;;  %854 = vmatpush1.bf16.msra.mxu0 %v713_v39 }
 0x147   : > { %v723_v51 = vpack.c.bf16 %v668_v47, %v668_v47 }
 0x148   : > { %815 = vmatpush1.bf16.msra.mxu1 %v745_v28  ;;  %v481_v61 = vsel %vm473_vm2, %v1270_v34, %v1271_v45  ;;  %v480_v20 = vsel %vm473_vm2, %v1660_v27, %v1270_v34 }
 0x149   : > { %v1279_v29 = vpop.permute.xlu0 %1278  ;;  %v436_v56 = vpop.permute.xlu1 %435  ;;  %1078 = vmatprep.subr.msk.bf16.mxu0 %vm737_vm8, %v723_v51  ;;  %888 = vmatprep.subr.bf16.mxu1 %v689_v3  ;;  %v697_v27 = vpack.c.bf16 %v480_v20, %v444_v18 }
 0x14a   : > { %v445_v38 = vsel %vm437_vm1, %v1241_v54, %v436_v56  ;;  %856 = vmatpush1.bf16.msra.mxu0 %v751_v62  ;;  %v1280_v60 = vunpack.i.l.bf16 %v1279_v29  ;;  %v1281_v0 = vunpack.i.h.bf16 %v1279_v29 }
 0x14b   : > { %v698_v36 = vpack.c.bf16 %v481_v61, %v445_v38  ;;  %1077 = vmatmul.mubr.msk.bf16.vlgmr.msra.gmra.mrb[0].mxu1 %vm733_vm9, %v1644_v5  ;;  %1101 = vmatprep.subr.bf16.mxu0 %v1315_v30 }
 0x14c   : > { %889 = vmatpush1.bf16.msra.mxu1 %v688_v58  ;;  %920 = vmatprep.mubr.bf16.mxu1 %v1306_v1  ;;  %v552_v11 = vsel %vm545_vm4, %v1683_v55, %v1280_v60  ;;  %v699_v1 = vpack.c.bf16 %v1271_v45, %v436_v56  ;;  %v553_v14 = vsel %vm545_vm4, %v1280_v60, %v1281_v0 }
 0x14d   : > { %v1289_v4 = vpop.permute.xlu0 %1288  ;;  %v1274_v37 = vpop.permute.xlu1 %1273  ;;  %890 = vmatprep.subr.bf16.mxu1 %v698_v36  ;;  %1079 = vmatmul.mubr.msk.bf16.vlgmr.msra.gmra.mrb[4].mxu0 %vm733_vm9, %v1644_v5 }
 0x14e   : > { %v1276_v10 = vunpack.i.h.bf16 %v1274_v37  ;;  %v1275_v43 = vunpack.i.l.bf16 %v1274_v37  ;;  %1102 = vmatpush3.bf16.msra.mxu0 %v690_v63  ;;  %1111 = vmatprep.mubr.msk.bf16.mxu0 %vm1316_vm10, %v1315_v30  ;;  %v1290_v53 = vunpack.i.l.bf16 %v1289_v4  ;;  %v1291_v59 = vunpack.i.h.bf16 %v1289_v4 }
 0x14f   : > { %1103 = vmatprep.subr.bf16.mxu0 %v1315_v30 }
 0x150   : > { %v516_v17 = vsel %vm509_vm3, %v1658_v26, %v1275_v43  ;;  %891 = vmatpush1.bf16.msra.mxu1 %v697_v27  ;;  %v517_v12 = vsel %vm509_vm3, %v1275_v43, %v1276_v10  ;;  %v630_v55 = vsel %vm623_vm6, %v1708_v22, %v1290_v53  ;;  %v708_v32 = vpack.c.bf16 %v1281_v0, %v1276_v10 }
 0x151   : > { %v706_v15 = vpack.c.bf16 %v552_v11, %v516_v17  ;;  %v1284_v13 = vpop.permute.xlu1 %1283  ;;  %v707_v2 = vpack.c.bf16 %v553_v14, %v517_v12  ;;  %v622_v25 = vpop.permute.xlu0 %621  ;;  %v631_v16 = vsel %vm623_vm6, %v1290_v53, %v1291_v59 }
 0x152   : > { %v1286_v23 = vunpack.i.h.bf16 %v1284_v13  ;;  %v1285_v24 = vunpack.i.l.bf16 %v1284_v13  ;;  %1104 = vmatpush3.bf16.msra.mxu0 %v699_v1  ;;  %v632_v44 = vsel %vm623_vm6, %v1291_v59, %v622_v25 }
 0x153   : > { %892 = vmatprep.subr.bf16.mxu1 %v707_v2  ;;  %1105 = vmatprep.subr.bf16.mxu0 %v1315_v30 }
 0x154   : > { %v591_v26 = vsel %vm584_vm5, %v1681_v50, %v1285_v24  ;;  %893 = vmatpush1.bf16.msra.mxu1 %v706_v15  ;;  %v592_v9 = vsel %vm584_vm5, %v1285_v24, %v1286_v23 }
 0x155   : > { %v715_v21 = vpack.c.bf16 %v630_v55, %v591_v26  ;;  %v583_v8 = vpop.permute.xlu1 %582  ;;  %v716_v6 = vpack.c.bf16 %v631_v16, %v592_v9  ;;  %v661_v31 = vpop.permute.xlu0 %660 }
 0x156   : > { %v593_v57 = vsel %vm584_vm5, %v1286_v23, %v583_v8  ;;  %1106 = vmatpush3.bf16.msra.mxu0 %v708_v32 }
 0x157   : > { %v717_v22 = vpack.c.bf16 %v632_v44, %v593_v57  ;;  %894 = vmatprep.subr.bf16.mxu1 %v716_v6  ;;  %1107 = vmatprep.subr.bf16.mxu0 %v1315_v30 }
 0x158   : > { %895 = vmatpush1.bf16.msra.mxu1 %v715_v21 }
 0x159   : > { %v1294_v7 = vpop.permute.xlu1 %1293 }
 0x15a   : > { %v1296_v46 = vunpack.i.h.bf16 %v1294_v7  ;;  %v1295_v50 = vunpack.i.l.bf16 %v1294_v7  ;;  %1108 = vmatpush3.bf16.msra.mxu0 %v717_v22 }
 0x15b   : > { %1109 = vmatprep.subr.bf16.mxu0 %v1315_v30 }
 0x15c   : > { %v670_v48 = vsel %vm662_vm7, %v1295_v50, %v1296_v46  ;;  %v669_v52 = vsel %vm662_vm7, %v1718_v40, %v1295_v50  ;;  %v671_v35 = vsel %vm662_vm7, %v1296_v46, %v661_v31 }
 0x15d   : > { %v725_v33 = vpack.c.bf16 %v670_v48, %v670_v48  ;;  %v724_v39 = vpack.c.bf16 %v669_v52, %v669_v52  ;;  %v726_v41 = vpack.c.bf16 %v671_v35, %v671_v35 }
 0x15f   : > { %1080 = vmatprep.subr.msk.bf16.mxu1 %vm737_vm8, %v725_v33  ;;  %v757_v19 = vsel %vm737_vm8, %v724_v39, 0  ;;  %v763_v42 = vsel %vm737_vm8, %v726_v41, 0 }
 0x160   : > { %897 = vmatpush1.bf16.msra.mxu1 %v757_v19  ;;  %1110 = vmatpush3.bf16.msra.mxu0 %v763_v42 }
 0x163   : > { %1081 = vmatmul.mubr.msk.bf16.vlgmr.msra.gmra.mrb[4].mxu1 %vm733_vm9, %v1644_v5  ;;  %1112 = vmatmul.mubr.msk.bf16.vlgmr.msra.gmra.mrb[8].mxu0 %vm733_vm9, %v1644_v5 }
 0x16a   : > { %v731_v40 = vpop.permute.xlu1 %730 }
 0x202   : > { %v799_v45 = vpop.f32.mrb[0].mxu0 }
 0x203   : > { %v801_v34 = vpop.f32.mrb[1].mxu0  ;;  %v800_v47 = vadd.f32 %v799_v45, %v731_v40 }
 0x204   : > { %v803_v49 = vpop.f32.mrb[2].mxu0  ;;  %v802_v3 = vadd.f32 %v801_v34, %v731_v40 }
 0x205   : > { %v804_v51 = vpop.f32.mrb[3].mxu0 }
 0x206   : > { %v1090_v28 = vpack.c.bf16 %v802_v3, %v800_v47 }
 0x208   : > { %1006 = vst [vmem:[%s1774_s28] sm:$0xff] %v1090_v28 }
 0x21e   : > { %v840_v54 = vpop.f32.mrb[0].mxu1 }
 0x21f   : > { %v841_v5 = vadd.f32 %v840_v54, %v731_v40  ;;  %v842_v29 = vpop.f32.mrb[1].mxu1 }
 0x220   : > { %v843_v56 = vadd.f32 %v842_v29, %v731_v40  ;;  %v881_v62 = vpop.f32.mrb[4].mxu0  ;;  %v844_v58 = vpop.f32.mrb[2].mxu1 }
 0x221   : > { %v882_v61 = vadd.f32 %v881_v62, %v731_v40  ;;  %v883_v38 = vpop.f32.mrb[5].mxu0  ;;  %v845_v20 = vpop.f32.mrb[3].mxu1 }
 0x222   : > { %v1091_v60 = vpack.c.bf16 %v843_v56, %v841_v5  ;;  %v884_v36 = vadd.f32 %v883_v38, %v731_v40  ;;  %v885_v30 = vpop.f32.mrb[6].mxu0 }
 0x223   : > { %v886_v63 = vpop.f32.mrb[7].mxu0 }
 0x224   : > { %1007 = vst [vmem:[%s1774_s28 + $0x8] sm:$0xff] %v1091_v60  ;;  %v1092_v0 = vpack.c.bf16 %v884_v36, %v882_v61 }
 0x226   : > { %1008 = vst [vmem:[%s1774_s28 + $0x10] sm:$0xff] %v1092_v0 }
 0x236   : > { %v922_v18 = vpop.f32.mrb[4].mxu1  ;;  %v963_v4 = vpop.f32.mrb[8].mxu0 }
 0x237   : > { %v923_v37 = vadd.f32 %v922_v18, %v731_v40  ;;  %v964_v27 = vadd.f32 %v963_v4, %v731_v40  ;;  %v924_v10 = vpop.f32.mrb[5].mxu1  ;;  %v1113_v43 = vpop.f32.mrb[9].mxu0 }
 0x238   : > { %v925_v11 = vadd.f32 %v924_v10, %v731_v40  ;;  %v926_v1 = vpop.f32.mrb[6].mxu1  ;;  %v966_v53 = vpop.f32.mrb[10].mxu0 }
 0x239   : > { %v1094_v59 = vpack.c.bf16 %v964_v27, %v964_v27  ;;  %v927_v17 = vpop.f32.mrb[7].mxu1  ;;  %v1114_v12 = vpop.f32.mrb[11].mxu0 }
 0x23a   : > { %v1093_v14 = vpack.c.bf16 %v925_v11, %v923_v37 }
 0x23b   : > { %1011 = vst.msk [vmem:[%s1774_s28 + $0x20] sm:$0xf] %vm1010_vm11, %v1094_v59 }
 0x23c   : > { %1009 = vst [vmem:[%s1774_s28 + $0x18] sm:$0xff] %v1093_v14 }
 0x23d PF: > { %s16_s21 = sadd.s32 1, %s1304_s21  }
 0x23e   : > { %p13_p4 = scmp.ge.s32.totalorder %s16_s21, 4  }
 0x240   :  { %15 = sbr.rel (!%p13_p4) target bundleno = 1 (0x1), region = 74 }

// kernel: sequence_gru_forward.13
= control target key start
LH: loop header
LB: loop body
LE: loop exit
PB: predicated region body
PF: predicated region fallthrough
CT: control target
= control target key end

     0   :  { %s1440_s24 = smov 0   ;;  %s1882_s0 = inlined_call_operand.vmem [shape: bf16[2,8,1280], index: 0, kind: input, shape index: {}]   ;;  %s1883_s1 = inlined_call_operand.vmem [shape: bf16[8,72], index: 1, kind: input, shape index: {}]   ;;  %s1884_s2 = inlined_call_operand.vmem [shape: f32[8,1], index: 2, kind: input, shape index: {}]   ;;  %s1885_s3 = inlined_call_operand.vmem [shape: f32[8,1], index: 3, kind: input, shape index: {}]   ;;  %s1886_s4 = inlined_call_operand.vmem [shape: f32[8,1], index: 4, kind: input, shape index: {}]   ;;  %s1887_s5 = inlined_call_operand.vmem [shape: f32[1,1280], index: 5, kind: input, shape index: {}]   ;;  %s1888_s6 = inlined_call_operand.vmem [shape: bf16[2,8,1088], index: 6, kind: input, shape index: {}]   ;;  %s1889_s7 = inlined_call_operand.vmem [shape: bf16[2,8,1088], index: 7, kind: output, shape index: {}]  }
   0x1 LB: > { %s1149_s25 = sadd.s32 4294967295, %s1387_s24   ;;  %p1153_p0 = scmp.ge.s32.totalorder %s1387_s24, 1  ;;  %s1387_s24 = sphi %s1440_s24, %s17_s24  }
   0x2   : > { %p247_p1 = scmp.lt.s32.totalorder %s1387_s24, 3 }
   0x4   : > { %p248_p2 = pnand %p1153_p0, %p247_p1 }
   0x5   : > { %v315_v0 = vld [vmem:[%s1885_s3] sm:$0xff] (!%p248_p2)  ;;  %v1389_v1 = vmov (!%p248_p2), 0   ;;  %p284_p3 = scmp.lt.s32.totalorder (!%p248_p2), %s1149_s25, 1  ;;  %v361_v3 = vlaneseq (!%p248_p2)  ;;  %s1390_s13 = smov (!%p248_p2), 126   ;;  %v1516_v41 = vld [vmem:[%s1887_s5 + $0x8] sm:$0x3] (!%p248_p2) }
   0x6   : > { %251 = sbr.rel (%p248_p2) target bundleno = 575 (0x23f), region = 48  ;;  %1219 = vset.pattern.permute.xlu0 (!%p248_p2), %v1389_v1  ;;  %844 = vmatprep.mubr.bf16.mxu0 (!%p248_p2), %v1389_v1  ;;  %v331_v2 = vld [vmem:[%s1886_s4] sm:$0xff] (!%p248_p2)  ;;  %s1391_s14 = smov (!%p248_p2), 127   ;;  %vm448_vm0 = vcmask (!%p248_p2), 1039360   ;;  %vm484_vm1 = vcmask (!%p248_p2), 1031168   ;;  %vm520_vm2 = vcmask (!%p248_p2), 769024  }
   0x7   : > { %318 = vperm.xlu0 (!%p248_p2), %1219, %v315_v0   ;;  %885 = vmatprep.mubr.bf16.mxu1 (!%p248_p2), %v1389_v1  ;;  %v1468_v6 = vshrl.u32 (!%p248_p2), %v361_v3, 7  ;;  %v1476_v13 = vld [vmem:[%s1887_s5] sm:$0xff] (!%p248_p2)  ;;  %s1392_s17 = smov (!%p248_p2), 93   ;;  %s1393_s18 = smov (!%p248_p2), 94   ;;  %vm556_vm3 = vcmask (!%p248_p2), 760832   ;;  %vm592_vm4 = vcmask (!%p248_p2), 752640  }
   0x8   : > { %1380 = vset.pattern.permute.xlu1 (!%p248_p2), %v1389_v1  ;;  %s1394_s19 = smov (!%p248_p2), 60   ;;  %s1395_s20 = smov (!%p248_p2), 92   ;;  %vm631_vm5 = vcmask (!%p248_p2), 490496   ;;  %vm670_vm6 = vcmask (!%p248_p2), 482304   ;;  %vm709_vm7 = vcmask (!%p248_p2), 474112   ;;  %vm784_vm8 = vcmask (!%p248_p2), 1043456  }
   0x9   : > { %v367_v12 = vsub.s32 (!%p248_p2), 1, %v1468_v6  ;;  %v371_v14 = vsub.s32 (!%p248_p2), 2, %v1468_v6  ;;  %v363_v19 = vsub.s32 (!%p248_p2), 0, %v1468_v6  ;;  %v375_v21 = vsub.s32 (!%p248_p2), 3, %v1468_v6  ;;  %s1396_s21 = smov (!%p248_p2), 58   ;;  %s1397_s22 = smov (!%p248_p2), 59  }
   0xa   : > { %v379_v54 = vsub.s32 (!%p248_p2), 4, %v1468_v6  ;;  %v383_v55 = vsub.s32 (!%p248_p2), 5, %v1468_v6  ;;  %v387_v3 = vsub.s32 (!%p248_p2), 6, %v1468_v6  ;;  %vm780_vm9 = vcmask (!%p248_p2), 588800  }
   0xb   : > { %334 = vperm.xlu0 (!%p248_p2), %1219, %v331_v2   ;;  %v368_v20 = vrot.slane (!%p248_p2), %v1476_v13, %v367_v12  ;;  %v372_v27 = vrot.slane (!%p248_p2), %v1476_v13, %v371_v14  ;;  %v364_v30 = vrot.slane (!%p248_p2), %v1476_v13, %v363_v19  ;;  %v376_v31 = vrot.slane (!%p248_p2), %v1476_v13, %v375_v21 }
   0xc   : > { %v400_v46 = vrot.slane (!%p248_p2), %v1516_v41, %v367_v12  ;;  %v380_v60 = vrot.slane (!%p248_p2), %v1476_v13, %v379_v54  ;;  %v384_v61 = vrot.slane (!%p248_p2), %v1476_v13, %v383_v55  ;;  %v388_v12 = vrot.slane (!%p248_p2), %v1476_v13, %v387_v3 }
   0xd   : > { %s1891_s25 = smov (!%p284_p3, %s1149_s25), 1  ;;  %vm1399_vm10 = vmmov 0   ;;  %vm1080_vm11 = vcmask 519168  }
   0xe   : > { %s1198_s30 = smul.u32 40, %s1891_s25 }
   0xf   : > { %s1199_s29 = smul.u32 36, %s1891_s25 }
  0x10   : > { %s1464_s10 = scalar_lea.vmem %s1882_s0, %s1198_s30 }
  0x11   : > { %v300_v4 = vld [vmem:[%s1464_s10] sm:$0xff]  ;;  %v301_v5 = vld [vmem:[%s1464_s10 + $0x8] sm:$0xff]  ;;  %v302_v44 = vld [vmem:[%s1464_s10 + $0x10] sm:$0xff]  ;;  %s1862_s9 = scalar_lea.vmem %s1888_s6, %s1199_s29  ;;  %s1868_s11 = scalar_lea.vmem %s1889_s7, %s1199_s29 }
  0x12   : > { %v305_v7 = vunpack.c.l.bf16 %v300_v4  ;;  %v306_v8 = vunpack.c.h.bf16 %v300_v4  ;;  %v307_v9 = vunpack.c.l.bf16 %v301_v5  ;;  %v308_v10 = vunpack.c.h.bf16 %v301_v5  ;;  %v1500_v35 = vld [vmem:[%s1464_s10 + $0x20] sm:$0xff]  ;;  %v303_v51 = vld [vmem:[%s1464_s10 + $0x18] sm:$0xff] }
  0x13   : > { %v314_v40 = vunpack.c.h.bf16 %v1500_v35  ;;  %v309_v48 = vunpack.c.l.bf16 %v302_v44  ;;  %v310_v49 = vunpack.c.h.bf16 %v302_v44  ;;  %v311_v58 = vunpack.c.l.bf16 %v303_v51 }
  0x14   : > { %v312_v59 = vunpack.c.h.bf16 %v303_v51  ;;  %v391_v4 = vsub.s32 7, %v1468_v6  ;;  %v774_v6 = vld [vmem:[%s1884_s2] sm:$0xff] }
  0x16   : > { %v392_v14 = vrot.slane %v1476_v13, %v391_v4 }
  0x86   : > { %v1470_v11 = vpop.permute.xlu0 %318 }
  0x87   : > { %v321_v15 = vmul.f32 %v1470_v11, %v305_v7  ;;  %v322_v16 = vmul.f32 %v1470_v11, %v306_v8  ;;  %v323_v17 = vmul.f32 %v1470_v11, %v307_v9  ;;  %v324_v18 = vmul.f32 %v1470_v11, %v308_v10 }
  0x88   : > { %v330_v43 = vmul.f32 %v1470_v11, %v314_v40  ;;  %v325_v52 = vmul.f32 %v1470_v11, %v309_v48  ;;  %v326_v53 = vmul.f32 %v1470_v11, %v310_v49  ;;  %v327_v0 = vmul.f32 %v1470_v11, %v311_v58 }
  0x89   : > { %v328_v2 = vmul.f32 %v1470_v11, %v312_v59 }
  0x8a   : > { %v1486_v22 = vpop.permute.xlu0 %334 }
  0x8b   : > { %v337_v23 = vadd.f32 %v1486_v22, %v321_v15  ;;  %v338_v24 = vadd.f32 %v1486_v22, %v322_v16  ;;  %v339_v25 = vadd.f32 %v1486_v22, %v323_v17  ;;  %v340_v26 = vadd.f32 %v1486_v22, %v324_v18 }
  0x8c   : > { %v346_v45 = vadd.f32 %v1486_v22, %v330_v43  ;;  %v341_v56 = vadd.f32 %v1486_v22, %v325_v52  ;;  %v342_v57 = vadd.f32 %v1486_v22, %v326_v53  ;;  %v343_v5 = vadd.f32 %v1486_v22, %v327_v0 }
  0x8d   : > { %v348_v28 = vmax.f32 %v338_v24, 0.0  ;;  %v349_v29 = vmax.f32 %v339_v25, 0.0  ;;  %v347_v32 = vmax.f32 %v337_v23, 0.0  ;;  %v350_v33 = vmax.f32 %v340_v26, 0.0 }
  0x8e   : > { %v356_v47 = vmax.f32 %v346_v45, 0.0  ;;  %v351_v62 = vmax.f32 %v341_v56, 0.0  ;;  %v352_v63 = vmax.f32 %v342_v57, 0.0  ;;  %v344_v7 = vadd.f32 %v1486_v22, %v328_v2 }
  0x8f   : > { %v1497_v34 = vmul.f32 %v368_v20, %v348_v28  ;;  %v1502_v36 = vmul.f32 %v372_v27, %v349_v29  ;;  %v1504_v37 = vmul.f32 %v364_v30, %v347_v32  ;;  %v1506_v38 = vmul.f32 %v376_v31, %v350_v33 }
  0x90   : > { %v1528_v50 = vmul.f32 %v400_v46, %v356_v47  ;;  %v1551_v8 = vmul.f32 %v380_v60, %v351_v62  ;;  %v1553_v9 = vmul.f32 %v384_v61, %v352_v63  ;;  %v353_v15 = vmax.f32 %v343_v5, 0.0 }
  0x91   : > { %v1230_v39 = vpack.i.bf16 %v1502_v36, %v1497_v34  ;;  %v1240_v42 = vpack.i.bf16 %v1506_v38, %v1504_v37  ;;  %v1290_v10 = vpack.i.bf16 %v1497_v34, %v1504_v37  ;;  %v354_v16 = vmax.f32 %v344_v7, 0.0 }
  0x92   : > { %v1300_v17 = vpack.i.bf16 %v1553_v9, %v1551_v8  ;;  %v1565_v18 = vmul.f32 %v388_v12, %v353_v15  ;;  %v1295_v21 = vpack.i.bf16 %v1506_v38, %v1502_v36  ;;  %v313_v23 = vunpack.c.l.bf16 %v1500_v35 }
  0x93   : > { %1231 = vrot.lane.b32.xlu0 %v1230_v39, %s1390_s13  ;;  %1221 = vrot.lane.b32.xlu1 %v1230_v39, %s1391_s14  ;;  %v1567_v20 = vmul.f32 %v392_v14, %v354_v16  ;;  %v396_v26 = vrot.slane %v1516_v41, %v363_v19 }
  0x94   : > { %v329_v24 = vmul.f32 %v1470_v11, %v313_v23 }
  0x95   : > { %v1320_v13 = vpack.i.bf16 %v1567_v20, %v1565_v18 }
  0x96   : > { %v345_v25 = vadd.f32 %v1486_v22, %v329_v24 }
  0x97   : > { %1241 = vrot.lane.b32.xlu0 %v1240_v42, %s1390_s13  ;;  %1226 = vrot.lane.b32.xlu1 %v1240_v42, %s1391_s14 }
  0x98   : > { %v355_v27 = vmax.f32 %v345_v25, 0.0 }
  0x9a   : > { %v1597_v11 = vmul.f32 %v396_v26, %v355_v27 }
  0x9b   : > { %1251 = vrot.lane.b32.xlu0 %v1230_v39, %s1392_s17  ;;  %1236 = vrot.lane.b32.xlu1 %v1230_v39, %s1393_s18 }
  0x9c   : > { %v1350_v22 = vpack.i.bf16 %v1597_v11, %v1567_v20 }
  0x9f   : > { %1261 = vrot.lane.b32.xlu0 %v1240_v42, %s1392_s17  ;;  %1246 = vrot.lane.b32.xlu1 %v1240_v42, %s1393_s18 }
  0xa3   : > { %1271 = vrot.lane.b32.xlu0 %v1230_v39, %s1394_s19  ;;  %1256 = vrot.lane.b32.xlu1 %v1230_v39, %s1395_s20 }
  0xa7   : > { %1281 = vrot.lane.b32.xlu0 %v1240_v42, %s1394_s19  ;;  %1266 = vrot.lane.b32.xlu1 %v1240_v42, %s1395_s20 }
  0xab   : > { %1291 = vrot.lane.b32.xlu0 %v1290_v10, %s1396_s21  ;;  %1276 = vrot.lane.b32.xlu1 %v1230_v39, %s1397_s22 }
  0xaf   : > { %1301 = vrot.lane.b32.xlu0 %v1300_v17, %s1391_s14  ;;  %1286 = vrot.lane.b32.xlu1 %v1240_v42, %s1397_s22 }
  0xb3   : > { %1311 = vrot.lane.b32.xlu0 %v1300_v17, %s1390_s13  ;;  %1296 = vrot.lane.b32.xlu1 %v1295_v21, %s1396_s21 }
  0xb7   : > { %1321 = vrot.lane.b32.xlu0 %v1320_v13, %s1390_s13  ;;  %1306 = vrot.lane.b32.xlu1 %v1320_v13, %s1391_s14 }
  0xbb   : > { %1326 = vrot.lane.b32.xlu0 %v1300_v17, %s1392_s17  ;;  %1316 = vrot.lane.b32.xlu1 %v1300_v17, %s1393_s18 }
  0xbf   : > { %550 = vrot.lane.b32.xlu0 %v1565_v18, %s1392_s17  ;;  %514 = vrot.lane.b32.xlu1 %v1565_v18, %s1393_s18 }
  0xc3   : > { %1336 = vrot.lane.b32.xlu0 %v1300_v17, %s1394_s19  ;;  %1331 = vrot.lane.b32.xlu1 %v1300_v17, %s1395_s20 }
  0xc7   : > { %623 = vrot.lane.b32.xlu0 %v1565_v18, %s1394_s19  ;;  %586 = vrot.lane.b32.xlu1 %v1565_v18, %s1395_s20 }
  0xcb   : > { %1346 = vrot.lane.b32.xlu0 %v1300_v17, %s1396_s21  ;;  %1341 = vrot.lane.b32.xlu1 %v1300_v17, %s1397_s22 }
  0xcf   : > { %446 = vrot.lane.b32.xlu0 %v1597_v11, %s1391_s14  ;;  %662 = vrot.lane.b32.xlu1 %v1565_v18, %s1397_s22 }
  0xd3   : > { %1351 = vrot.lane.b32.xlu0 %v1350_v22, %s1393_s18  ;;  %701 = vrot.lane.b32.xlu1 %v1565_v18, %s1396_s21 }
  0xd7   : > { %1361 = vrot.lane.b32.xlu0 %v1350_v22, %s1395_s20  ;;  %482 = vrot.lane.b32.xlu1 %v1597_v11, %s1390_s13 }
  0xdb   : > { %1371 = vrot.lane.b32.xlu0 %v1350_v22, %s1397_s22  ;;  %1356 = vrot.lane.b32.xlu1 %v1350_v22, %s1392_s17 }
  0xdf   : > { %668 = vrot.lane.b32.xlu0 %v1528_v50, %s1397_s22  ;;  %1366 = vrot.lane.b32.xlu1 %v1350_v22, %s1394_s19 }
  0xe3   : > { %707 = vrot.lane.b32.xlu0 %v1528_v50, %s1396_s21  ;;  %629 = vrot.lane.b32.xlu1 %v1528_v50, %s1394_s19 }
  0xe7   : > { %1376 = vrot.lane.b32.xlu1 %v1350_v22, %s1396_s21 }
  0xeb   : > { %777 = vperm.xlu1 %1380, %v774_v6  }
 0x105   : > { %v1624_v19 = vpop.permute.xlu0 %1231  ;;  %v1626_v28 = vpop.permute.xlu1 %1221 }
 0x106   : > { %v1224_v29 = vunpack.i.h.bf16 %v1626_v28  ;;  %v1223_v30 = vunpack.i.l.bf16 %v1626_v28  ;;  %v1234_v40 = vunpack.i.h.bf16 %v1624_v19  ;;  %v1233_v41 = vunpack.i.l.bf16 %v1624_v19 }
 0x108   : > { %v450_v31 = vsel %vm448_vm0, %v1223_v30, %v1224_v29  ;;  %v486_v48 = vsel %vm484_vm1, %v1233_v41, %v1234_v40 }
 0x109   : > { %v1633_v32 = vpop.permute.xlu0 %1241  ;;  %v1635_v33 = vpop.permute.xlu1 %1226  ;;  %v730_v35 = vpack.c.bf16 %v450_v31, %v1497_v34 }
 0x10a   : > { %v1228_v39 = vunpack.i.l.bf16 %v1635_v33  ;;  %v1243_v47 = vunpack.i.l.bf16 %v1633_v32  ;;  %v1229_v23 = vunpack.i.h.bf16 %v1635_v33 }
 0x10b   : > { %812 = vmatprep.subr.bf16.mxu0 %v730_v35 }
 0x10c   : > { %v449_v42 = vsel %vm448_vm0, %v1228_v39, %v1223_v30  ;;  %v485_v55 = vsel %vm484_vm1, %v1243_v47, %v1233_v41  ;;  %v451_v39 = vsel %vm448_vm0, %v1224_v29, %v1229_v23 }
 0x10d   : > { %v1642_v43 = vpop.permute.xlu0 %1251  ;;  %v1644_v44 = vpop.permute.xlu1 %1236  ;;  %v729_v45 = vpack.c.bf16 %v449_v42, %v1504_v37  ;;  %v731_v28 = vpack.c.bf16 %v451_v39, %v1502_v36 }
 0x10e   : > { %v1239_v46 = vunpack.i.h.bf16 %v1644_v44  ;;  %v1238_v34 = vunpack.i.l.bf16 %v1644_v44  ;;  %v1254_v53 = vunpack.i.h.bf16 %v1642_v43  ;;  %v1253_v54 = vunpack.i.l.bf16 %v1642_v43 }
 0x10f   : > { %813 = vmatpush1.bf16.msra.mxu0 %v729_v45 }
 0x110   : > { %v522_v49 = vsel %vm520_vm2, %v1238_v34, %v1239_v46  ;;  %v558_v63 = vsel %vm556_vm3, %v1253_v54, %v1254_v53 }
 0x111   : > { %v1656_v50 = vpop.permute.xlu0 %1261  ;;  %v1658_v37 = vpop.permute.xlu1 %1246  ;;  %v739_v51 = vpack.c.bf16 %v522_v49, %v486_v48 }
 0x112   : > { %v1248_v52 = vunpack.i.l.bf16 %v1658_v37  ;;  %v1263_v62 = vunpack.i.l.bf16 %v1656_v50 }
 0x113   : > { %814 = vmatprep.subr.bf16.mxu0 %v739_v51 }
 0x114   : > { %v521_v56 = vsel %vm520_vm2, %v1248_v52, %v1238_v34  ;;  %v557_v12 = vsel %vm556_vm3, %v1263_v62, %v1253_v54  ;;  %v1249_v62 = vunpack.i.h.bf16 %v1658_v37  ;;  %v1244_v37 = vunpack.i.h.bf16 %v1633_v32 }
 0x115   : > { %v1665_v57 = vpop.permute.xlu0 %1271  ;;  %v1667_v58 = vpop.permute.xlu1 %1256  ;;  %v738_v59 = vpack.c.bf16 %v521_v56, %v485_v55 }
 0x116   : > { %v1259_v60 = vunpack.i.h.bf16 %v1667_v58  ;;  %v1258_v61 = vunpack.i.l.bf16 %v1667_v58  ;;  %v1274_v7 = vunpack.i.h.bf16 %v1665_v57  ;;  %v1273_v10 = vunpack.i.l.bf16 %v1665_v57 }
 0x117   : > { %815 = vmatpush1.bf16.msra.mxu0 %v738_v59 }
 0x118   : > { %v594_v0 = vsel %vm592_vm4, %v1258_v61, %v1259_v60  ;;  %v633_v24 = vsel %vm631_vm5, %v1273_v10, %v1274_v7 }
 0x119   : > { %v1678_v2 = vpop.permute.xlu0 %1281  ;;  %v1680_v3 = vpop.permute.xlu1 %1266  ;;  %v748_v4 = vpack.c.bf16 %v594_v0, %v558_v63 }
 0x11a   : > { %v1268_v5 = vunpack.i.l.bf16 %v1680_v3  ;;  %v1283_v25 = vunpack.i.l.bf16 %v1678_v2 }
 0x11b   : > { %816 = vmatprep.subr.bf16.mxu0 %v748_v4 }
 0x11c   : > { %v593_v14 = vsel %vm592_vm4, %v1268_v5, %v1258_v61  ;;  %v632_v41 = vsel %vm631_vm5, %v1283_v25, %v1273_v10  ;;  %v1732_v5 = vld [vmem:[%s1883_s1] sm:$0xf]  ;;  %v523_v25 = vsel %vm520_vm2, %v1239_v46, %v1249_v62 }
 0x11d   : > { %v1292_v15 = vpop.permute.xlu0 %1291  ;;  %v1687_v16 = vpop.permute.xlu1 %1276  ;;  %v747_v17 = vpack.c.bf16 %v593_v14, %v557_v12 }
 0x11e   : > { %v1279_v21 = vunpack.i.h.bf16 %v1687_v16  ;;  %v1278_v13 = vunpack.i.l.bf16 %v1687_v16  ;;  %v1294_v26 = vunpack.i.h.bf16 %v1292_v15  ;;  %v1293_v27 = vunpack.i.l.bf16 %v1292_v15 }
 0x11f   : > { %817 = vmatpush1.bf16.msra.mxu0 %v747_v17 }
 0x120   : > { %v672_v22 = vsel %vm670_vm6, %v1278_v13, %v1279_v21  ;;  %v710_v34 = vsel %vm709_vm7, %v1293_v27, %v1294_v26 }
 0x121   : > { %v1302_v6 = vpop.permute.xlu0 %1301  ;;  %v1699_v30 = vpop.permute.xlu1 %1286  ;;  %v757_v31 = vpack.c.bf16 %v672_v22, %v633_v24  ;;  %v765_v29 = vpack.c.bf16 %v710_v34, %v710_v34 }
 0x122   : > { %v1303_v35 = vunpack.i.l.bf16 %v1302_v6  ;;  %v1288_v33 = vunpack.i.l.bf16 %v1699_v30  ;;  %v1304_v54 = vunpack.i.h.bf16 %v1302_v6  ;;  %v487_v6 = vsel %vm484_vm1, %v1234_v40, %v1244_v37 }
 0x123   : > { %818 = vmatprep.subr.bf16.mxu0 %v757_v31  ;;  %v786_v63 = vsel %vm784_vm8, %v765_v29, 0  ;;  %v740_v31 = vpack.c.bf16 %v523_v25, %v487_v6  ;;  %v1264_v40 = vunpack.i.h.bf16 %v1656_v50 }
 0x124   : > { %v671_v42 = vsel %vm670_vm6, %v1288_v33, %v1278_v13  ;;  %v452_v45 = vsel %vm448_vm0, %v1229_v23, %v1303_v35  ;;  %v453_v36 = vsel %vm448_vm0, %v1303_v35, %v1304_v54  ;;  %v1269_v35 = vunpack.i.h.bf16 %v1680_v3 }
 0x125   : > { %v1312_v47 = vpop.permute.xlu0 %1311  ;;  %v1709_v48 = vpop.permute.xlu1 %1296  ;;  %v756_v49 = vpack.c.bf16 %v671_v42, %v632_v41  ;;  %v732_v51 = vpack.c.bf16 %v452_v45, %v1506_v38  ;;  %v733_v15 = vpack.c.bf16 %v453_v36, %v1551_v8 }
 0x126   : > { %v1298_v52 = vunpack.i.l.bf16 %v1709_v48  ;;  %v1313_v0 = vunpack.i.l.bf16 %v1312_v47  ;;  %v1314_v24 = vunpack.i.h.bf16 %v1312_v47  ;;  %v595_v3 = vsel %vm592_vm4, %v1259_v60, %v1269_v35 }
 0x127   : > { %819 = vmatpush1.bf16.msra.mxu0 %v756_v49  ;;  %853 = vmatprep.subr.bf16.mxu1 %v732_v51 }
 0x128   : > { %v711_v55 = vsel %vm709_vm7, %v1294_v26, %v1298_v52  ;;  %854 = vmatpush1.bf16.msra.mxu1 %v731_v28  ;;  %v488_v32 = vsel %vm484_vm1, %v1244_v37, %v1313_v0  ;;  %v489_v33 = vsel %vm484_vm1, %v1313_v0, %v1314_v24 }
 0x129   : > { %v766_v56 = vpack.c.bf16 %v711_v55, %v711_v55  ;;  %v1717_v59 = vpop.permute.xlu0 %1321  ;;  %v1719_v61 = vpop.permute.xlu1 %1306 }
 0x12a   : > { %v1308_v38 = vunpack.i.l.bf16 %v1719_v61  ;;  %v1323_v17 = vunpack.i.l.bf16 %v1717_v59  ;;  %v1309_v57 = vunpack.i.h.bf16 %v1719_v61 }
 0x12b   : > { %1157 = vmatprep.subr.msk.bf16.mxu0 %vm784_vm8, %v766_v56 }
 0x12c   : > { %821 = vmatpush1.bf16.msra.mxu0 %v786_v63  ;;  %v454_v4 = vsel %vm448_vm0, %v1304_v54, %v1308_v38  ;;  %v490_v44 = vsel %vm484_vm1, %v1314_v24, %v1323_v17  ;;  %v1289_v54 = vunpack.i.h.bf16 %v1699_v30  ;;  %v1284_v30 = vunpack.i.h.bf16 %v1678_v2 }
 0x12d   : > { %v1327_v10 = vpop.permute.xlu0 %1326  ;;  %v1317_v12 = vpop.permute.xlu1 %1316  ;;  %v734_v14 = vpack.c.bf16 %v454_v4, %v1553_v9  ;;  %v1299_v4 = vunpack.i.h.bf16 %v1709_v48 }
 0x12e   : > { %v1319_v13 = vunpack.i.h.bf16 %v1317_v12  ;;  %v1318_v23 = vunpack.i.l.bf16 %v1317_v12  ;;  %v1328_v41 = vunpack.i.l.bf16 %v1327_v10  ;;  %v1329_v49 = vunpack.i.h.bf16 %v1327_v10 }
 0x12f   : > { %894 = vmatprep.subr.bf16.mxu0 %v734_v14  ;;  %1158 = vmatmul.mubr.msk.bf16.vlgmr.msra.gmra.mrb[0].mxu0 %vm780_vm9, %v1732_v5  ;;  %v673_v12 = vsel %vm670_vm6, %v1279_v21, %v1289_v54  ;;  %v634_v24 = vsel %vm631_vm5, %v1274_v7, %v1284_v30  ;;  %v712_v16 = vsel %vm709_vm7, %v1298_v52, %v1299_v4 }
 0x130   : > { %895 = vmatpush1.bf16.msra.mxu0 %v733_v15  ;;  %v524_v9 = vsel %vm520_vm2, %v1249_v62, %v1318_v23  ;;  %v525_v8 = vsel %vm520_vm2, %v1318_v23, %v1319_v13  ;;  %926 = vmatprep.mubr.bf16.mxu0 %v1389_v1  ;;  %v560_v51 = vsel %vm556_vm3, %v1264_v40, %v1328_v41 }
 0x131   : > { %v1746_v26 = vpop.permute.xlu0 %550  ;;  %v1748_v27 = vpop.permute.xlu1 %514  ;;  %v741_v22 = vpack.c.bf16 %v524_v9, %v488_v32  ;;  %v742_v19 = vpack.c.bf16 %v525_v8, %v489_v33  ;;  %v559_v62 = vsel %vm556_vm3, %v1254_v53, %v1264_v40  ;;  %v561_v63 = vsel %vm556_vm3, %v1328_v41, %v1329_v49 }
 0x132   : > { %v526_v46 = vsel %vm520_vm2, %v1319_v13, %v1748_v27  ;;  %v562_v58 = vsel %vm556_vm3, %v1329_v49, %v1746_v26  ;;  %v749_v36 = vpack.c.bf16 %v595_v3, %v559_v62  ;;  %v767_v33 = vpack.c.bf16 %v712_v16, %v712_v16 }
 0x133   : > { %v743_v39 = vpack.c.bf16 %v526_v46, %v490_v44  ;;  %855 = vmatprep.subr.bf16.mxu1 %v741_v22  ;;  %v758_v44 = vpack.c.bf16 %v673_v12, %v634_v24  ;;  %v455_v49 = vsel %vm448_vm0, %v1308_v38, %v1309_v57 }
 0x134   : > { %856 = vmatpush1.bf16.msra.mxu1 %v740_v31 }
 0x135   : > { %v1337_v42 = vpop.permute.xlu0 %1336  ;;  %v1332_v45 = vpop.permute.xlu1 %1331  ;;  %896 = vmatprep.subr.bf16.mxu0 %v743_v39 }
 0x136   : > { %v1334_v34 = vunpack.i.h.bf16 %v1332_v45  ;;  %v1333_v47 = vunpack.i.l.bf16 %v1332_v45  ;;  %897 = vmatpush1.bf16.msra.mxu0 %v742_v19  ;;  %v1338_v37 = vunpack.i.l.bf16 %v1337_v42  ;;  %v1339_v23 = vunpack.i.h.bf16 %v1337_v42 }
 0x138   : > { %v596_v28 = vsel %vm592_vm4, %v1269_v35, %v1333_v47  ;;  %v597_v29 = vsel %vm592_vm4, %v1333_v47, %v1334_v34  ;;  %v635_v32 = vsel %vm631_vm5, %v1284_v30, %v1338_v37  ;;  %v636_v48 = vsel %vm631_vm5, %v1338_v37, %v1339_v23 }
 0x139   : > { %v1769_v50 = vpop.permute.xlu0 %623  ;;  %v1771_v55 = vpop.permute.xlu1 %586  ;;  %v750_v56 = vpack.c.bf16 %v596_v28, %v560_v51  ;;  %v751_v10 = vpack.c.bf16 %v597_v29, %v561_v63  ;;  %v792_v28 = vsel %vm784_vm8, %v767_v33, 0  ;;  %v1398_v30 = vmov 0.0  }
 0x13a   : > { %v598_v60 = vsel %vm592_vm4, %v1334_v34, %v1771_v55  ;;  %v637_v7 = vsel %vm631_vm5, %v1339_v23, %v1769_v50 }
 0x13b   : > { %v752_v0 = vpack.c.bf16 %v598_v60, %v562_v58  ;;  %857 = vmatprep.subr.bf16.mxu1 %v750_v56  ;;  %v735_v58 = vpack.c.bf16 %v455_v49, %v1565_v18 }
 0x13c   : > { %858 = vmatpush1.bf16.msra.mxu1 %v749_v36 }
 0x13d   : > { %v1347_v43 = vpop.permute.xlu0 %1346  ;;  %v1342_v53 = vpop.permute.xlu1 %1341  ;;  %898 = vmatprep.subr.bf16.mxu0 %v752_v0 }
 0x13e   : > { %v1349_v14 = vunpack.i.h.bf16 %v1347_v43  ;;  %v1348_v15 = vunpack.i.l.bf16 %v1347_v43  ;;  %v1344_v13 = vunpack.i.h.bf16 %v1342_v53  ;;  %v1343_v2 = vunpack.i.l.bf16 %v1342_v53  ;;  %899 = vmatpush1.bf16.msra.mxu0 %v751_v10 }
 0x140   : > { %v713_v25 = vsel %vm709_vm7, %v1299_v4, %v1348_v15  ;;  %v674_v9 = vsel %vm670_vm6, %v1289_v54, %v1343_v2  ;;  %v675_v21 = vsel %vm670_vm6, %v1343_v2, %v1344_v13  ;;  %v714_v31 = vsel %vm709_vm7, %v1348_v15, %v1349_v14 }
 0x141   : > { %v447_v8 = vpop.permute.xlu0 %446  ;;  %v1796_v22 = vpop.permute.xlu1 %662  ;;  %v759_v6 = vpack.c.bf16 %v674_v9, %v635_v32  ;;  %v768_v52 = vpack.c.bf16 %v713_v25, %v713_v25  ;;  %v760_v39 = vpack.c.bf16 %v675_v21, %v636_v48  ;;  %v769_v42 = vpack.c.bf16 %v714_v31, %v714_v31 }
 0x142   : > { %v676_v46 = vsel %vm670_vm6, %v1344_v13, %v1796_v22  ;;  %v456_v41 = vsel %vm448_vm0, %v1309_v57, %v447_v8  ;;  %v1324_v54 = vunpack.i.h.bf16 %v1717_v59  ;;  %v737_v63 = vpack.c.bf16 %v447_v8, %v1597_v11 }
 0x143   : > { %v761_v35 = vpack.c.bf16 %v676_v46, %v637_v7  ;;  %859 = vmatprep.subr.bf16.mxu1 %v759_v6  ;;  %v736_v3 = vpack.c.bf16 %v456_v41, %v1567_v20  ;;  %v798_v62 = vsel %vm784_vm8, %v769_v42, 0 }
 0x144   : > { %860 = vmatpush1.bf16.msra.mxu1 %v758_v44  ;;  %v491_v18 = vsel %vm484_vm1, %v1323_v17, %v1324_v54 }
 0x145   : > { %v1352_v19 = vpop.permute.xlu0 %1351  ;;  %v1806_v40 = vpop.permute.xlu1 %701  ;;  %1159 = vmatprep.subr.msk.bf16.mxu1 %vm784_vm8, %v768_v52  ;;  %900 = vmatprep.subr.bf16.mxu0 %v761_v35 }
 0x146   : > { %v1354_v45 = vunpack.i.h.bf16 %v1352_v19  ;;  %v1353_v34 = vunpack.i.l.bf16 %v1352_v19  ;;  %v715_v47 = vsel %vm709_vm7, %v1349_v14, %v1806_v40  ;;  %901 = vmatpush1.bf16.msra.mxu0 %v760_v39 }
 0x147   : > { %v770_v51 = vpack.c.bf16 %v715_v47, %v715_v47 }
 0x148   : > { %862 = vmatpush1.bf16.msra.mxu1 %v792_v28  ;;  %v528_v61 = vsel %vm520_vm2, %v1353_v34, %v1354_v45  ;;  %v527_v20 = vsel %vm520_vm2, %v1748_v27, %v1353_v34 }
 0x149   : > { %v1362_v29 = vpop.permute.xlu0 %1361  ;;  %v483_v56 = vpop.permute.xlu1 %482  ;;  %1161 = vmatprep.subr.msk.bf16.mxu0 %vm784_vm8, %v770_v51  ;;  %935 = vmatprep.subr.bf16.mxu1 %v736_v3  ;;  %v744_v27 = vpack.c.bf16 %v527_v20, %v491_v18 }
 0x14a   : > { %v492_v38 = vsel %vm484_vm1, %v1324_v54, %v483_v56  ;;  %903 = vmatpush1.bf16.msra.mxu0 %v798_v62  ;;  %v1363_v60 = vunpack.i.l.bf16 %v1362_v29  ;;  %v1364_v0 = vunpack.i.h.bf16 %v1362_v29 }
 0x14b   : > { %v745_v36 = vpack.c.bf16 %v528_v61, %v492_v38  ;;  %1160 = vmatmul.mubr.msk.bf16.vlgmr.msra.gmra.mrb[0].mxu1 %vm780_vm9, %v1732_v5  ;;  %1184 = vmatprep.subr.bf16.mxu0 %v1398_v30  ;;  %v1018_v61 = vld [vmem:[%s1862_s9 + $0x10] sm:$0xff] }
 0x14c   : > { %936 = vmatpush1.bf16.msra.mxu1 %v735_v58  ;;  %967 = vmatprep.mubr.bf16.mxu1 %v1389_v1  ;;  %v599_v11 = vsel %vm592_vm4, %v1771_v55, %v1363_v60  ;;  %v746_v1 = vpack.c.bf16 %v1354_v45, %v483_v56  ;;  %v600_v14 = vsel %vm592_vm4, %v1363_v60, %v1364_v0  ;;  %v1017_v58 = vld [vmem:[%s1862_s9 + $0x8] sm:$0xff] }
 0x14d   : > { %v1372_v4 = vpop.permute.xlu0 %1371  ;;  %v1357_v37 = vpop.permute.xlu1 %1356  ;;  %937 = vmatprep.subr.bf16.mxu1 %v745_v36  ;;  %1162 = vmatmul.mubr.msk.bf16.vlgmr.msra.gmra.mrb[4].mxu0 %vm780_vm9, %v1732_v5  ;;  %v1023_v38 = vunpack.c.l.bf16 %v1017_v58  ;;  %v1024_v60 = vunpack.c.h.bf16 %v1017_v58 }
 0x14e   : > { %v1359_v10 = vunpack.i.h.bf16 %v1357_v37  ;;  %v1358_v43 = vunpack.i.l.bf16 %v1357_v37  ;;  %1185 = vmatpush3.bf16.msra.mxu0 %v737_v63  ;;  %1194 = vmatprep.mubr.msk.bf16.mxu0 %vm1399_vm10, %v1398_v30  ;;  %v1373_v53 = vunpack.i.l.bf16 %v1372_v4  ;;  %v1374_v59 = vunpack.i.h.bf16 %v1372_v4 }
 0x14f   : > { %1186 = vmatprep.subr.bf16.mxu0 %v1398_v30  ;;  %v1025_v63 = vunpack.c.l.bf16 %v1018_v61  ;;  %v1026_v37 = vunpack.c.h.bf16 %v1018_v61 }
 0x150   : > { %v563_v17 = vsel %vm556_vm3, %v1746_v26, %v1358_v43  ;;  %938 = vmatpush1.bf16.msra.mxu1 %v744_v27  ;;  %v564_v12 = vsel %vm556_vm3, %v1358_v43, %v1359_v10  ;;  %v677_v55 = vsel %vm670_vm6, %v1796_v22, %v1373_v53  ;;  %v755_v32 = vpack.c.bf16 %v1364_v0, %v1359_v10 }
 0x151   : > { %v753_v15 = vpack.c.bf16 %v599_v11, %v563_v17  ;;  %v1367_v13 = vpop.permute.xlu1 %1366  ;;  %v754_v2 = vpack.c.bf16 %v600_v14, %v564_v12  ;;  %v669_v25 = vpop.permute.xlu0 %668  ;;  %v678_v16 = vsel %vm670_vm6, %v1373_v53, %v1374_v59 }
 0x152   : > { %v1369_v23 = vunpack.i.h.bf16 %v1367_v13  ;;  %v1368_v24 = vunpack.i.l.bf16 %v1367_v13  ;;  %1187 = vmatpush3.bf16.msra.mxu0 %v746_v1  ;;  %v679_v44 = vsel %vm670_vm6, %v1374_v59, %v669_v25 }
 0x153   : > { %939 = vmatprep.subr.bf16.mxu1 %v754_v2  ;;  %1188 = vmatprep.subr.bf16.mxu0 %v1398_v30  ;;  %v1019_v2 = vld [vmem:[%s1862_s9 + $0x18] sm:$0xff] }
 0x154   : > { %v638_v26 = vsel %vm631_vm5, %v1769_v50, %v1368_v24  ;;  %940 = vmatpush1.bf16.msra.mxu1 %v753_v15  ;;  %v639_v9 = vsel %vm631_vm5, %v1368_v24, %v1369_v23  ;;  %v1027_v24 = vunpack.c.l.bf16 %v1019_v2 }
 0x155   : > { %v762_v21 = vpack.c.bf16 %v677_v55, %v638_v26  ;;  %v630_v8 = vpop.permute.xlu1 %629  ;;  %v763_v6 = vpack.c.bf16 %v678_v16, %v639_v9  ;;  %v708_v31 = vpop.permute.xlu0 %707  ;;  %v1028_v26 = vunpack.c.h.bf16 %v1019_v2 }
 0x156   : > { %v640_v57 = vsel %vm631_vm5, %v1369_v23, %v630_v8  ;;  %1189 = vmatpush3.bf16.msra.mxu0 %v755_v32  ;;  %v1020_v23 = vld [vmem:[%s1862_s9 + $0x20] sm:$0xf] }
 0x157   : > { %v764_v22 = vpack.c.bf16 %v679_v44, %v640_v57  ;;  %941 = vmatprep.subr.bf16.mxu1 %v763_v6  ;;  %1190 = vmatprep.subr.bf16.mxu0 %v1398_v30  ;;  %v1029_v55 = vunpack.c.l.bf16 %v1020_v23 }
 0x158   : > { %942 = vmatpush1.bf16.msra.mxu1 %v762_v21 }
 0x159   : > { %v1377_v7 = vpop.permute.xlu1 %1376 }
 0x15a   : > { %v1379_v46 = vunpack.i.h.bf16 %v1377_v7  ;;  %v1378_v50 = vunpack.i.l.bf16 %v1377_v7  ;;  %1191 = vmatpush3.bf16.msra.mxu0 %v764_v22 }
 0x15b   : > { %1192 = vmatprep.subr.bf16.mxu0 %v1398_v30 }
 0x15c   : > { %v717_v48 = vsel %vm709_vm7, %v1378_v50, %v1379_v46  ;;  %v716_v52 = vsel %vm709_vm7, %v1806_v40, %v1378_v50  ;;  %v718_v35 = vsel %vm709_vm7, %v1379_v46, %v708_v31  ;;  %v1016_v40 = vld [vmem:[%s1862_s9] sm:$0xff] }
 0x15d   : > { %v772_v33 = vpack.c.bf16 %v717_v48, %v717_v48  ;;  %v771_v39 = vpack.c.bf16 %v716_v52, %v716_v52  ;;  %v773_v41 = vpack.c.bf16 %v718_v35, %v718_v35  ;;  %v1021_v34 = vunpack.c.l.bf16 %v1016_v40 }
 0x15e   : > { %v1022_v49 = vunpack.c.h.bf16 %v1016_v40 }
 0x15f   : > { %1163 = vmatprep.subr.msk.bf16.mxu1 %vm784_vm8, %v772_v33  ;;  %v804_v19 = vsel %vm784_vm8, %v771_v39, 0  ;;  %v810_v42 = vsel %vm784_vm8, %v773_v41, 0 }
 0x160   : > { %944 = vmatpush1.bf16.msra.mxu1 %v804_v19  ;;  %1193 = vmatpush3.bf16.msra.mxu0 %v810_v42 }
 0x163   : > { %1164 = vmatmul.mubr.msk.bf16.vlgmr.msra.gmra.mrb[4].mxu1 %vm780_vm9, %v1732_v5  ;;  %1195 = vmatmul.mubr.msk.bf16.vlgmr.msra.gmra.mrb[8].mxu0 %vm780_vm9, %v1732_v5 }
 0x16a   : > { %v778_v45 = vpop.permute.xlu1 %777 }
 0x202   : > { %v846_v47 = vpop.f32.mrb[0].mxu0 }
 0x203   : > { %v848_v3 = vpop.f32.mrb[1].mxu0  ;;  %v847_v51 = vadd.f32 %v846_v47, %v778_v45 }
 0x204   : > { %v850_v28 = vpop.f32.mrb[2].mxu0  ;;  %v849_v54 = vadd.f32 %v848_v3, %v778_v45 }
 0x205   : > { %v851_v29 = vpop.f32.mrb[3].mxu0  ;;  %v1030_v5 = vadd.f32 %v1021_v34, %v847_v51 }
 0x206   : > { %v1031_v56 = vadd.f32 %v1022_v49, %v849_v54 }
 0x208   : > { %v1173_v62 = vpack.c.bf16 %v1031_v56, %v1030_v5 }
 0x20a   : > { %1076 = vst [vmem:[%s1868_s11] sm:$0xff] %v1173_v62 }
 0x21e   : > { %v887_v20 = vpop.f32.mrb[0].mxu1 }
 0x21f   : > { %v888_v36 = vadd.f32 %v887_v20, %v778_v45  ;;  %v889_v30 = vpop.f32.mrb[1].mxu1 }
 0x220   : > { %v890_v0 = vadd.f32 %v889_v30, %v778_v45  ;;  %v928_v18 = vpop.f32.mrb[4].mxu0  ;;  %v891_v4 = vpop.f32.mrb[2].mxu1 }
 0x221   : > { %v1032_v27 = vadd.f32 %v1023_v38, %v888_v36  ;;  %v929_v10 = vadd.f32 %v928_v18, %v778_v45  ;;  %v930_v43 = vpop.f32.mrb[5].mxu0  ;;  %v892_v11 = vpop.f32.mrb[3].mxu1 }
 0x222   : > { %v1033_v1 = vadd.f32 %v1024_v60, %v890_v0  ;;  %v931_v53 = vadd.f32 %v930_v43, %v778_v45  ;;  %v932_v59 = vpop.f32.mrb[6].mxu0 }
 0x223   : > { %v1034_v17 = vadd.f32 %v1025_v63, %v929_v10  ;;  %v933_v12 = vpop.f32.mrb[7].mxu0 }
 0x224   : > { %v1174_v14 = vpack.c.bf16 %v1033_v1, %v1032_v27  ;;  %v1035_v15 = vadd.f32 %v1026_v37, %v931_v53 }
 0x226   : > { %1077 = vst [vmem:[%s1868_s11 + $0x8] sm:$0xff] %v1174_v14  ;;  %v1175_v13 = vpack.c.bf16 %v1035_v15, %v1034_v17 }
 0x228   : > { %1078 = vst [vmem:[%s1868_s11 + $0x10] sm:$0xff] %v1175_v13 }
 0x236   : > { %v969_v25 = vpop.f32.mrb[4].mxu1  ;;  %v1010_v32 = vpop.f32.mrb[8].mxu0 }
 0x237   : > { %v970_v9 = vadd.f32 %v969_v25, %v778_v45  ;;  %v1011_v16 = vadd.f32 %v1010_v32, %v778_v45  ;;  %v971_v21 = vpop.f32.mrb[5].mxu1  ;;  %v1196_v8 = vpop.f32.mrb[9].mxu0 }
 0x238   : > { %v972_v6 = vadd.f32 %v971_v21, %v778_v45  ;;  %v973_v44 = vpop.f32.mrb[6].mxu1  ;;  %v1013_v57 = vpop.f32.mrb[10].mxu0 }
 0x239   : > { %v1036_v22 = vadd.f32 %v1027_v24, %v970_v9  ;;  %v1038_v7 = vadd.f32 %v1029_v55, %v1011_v16  ;;  %v974_v46 = vpop.f32.mrb[7].mxu1  ;;  %v1197_v50 = vpop.f32.mrb[11].mxu0 }
 0x23a   : > { %v1037_v31 = vadd.f32 %v1028_v26, %v972_v6 }
 0x23b   : > { %v1177_v48 = vpack.c.bf16 %v1038_v7, %v1038_v7 }
 0x23c   : > { %v1176_v52 = vpack.c.bf16 %v1037_v31, %v1036_v22 }
 0x23d   : > { %1081 = vst.msk [vmem:[%s1868_s11 + $0x20] sm:$0xf] %vm1080_vm11, %v1177_v48 }
 0x23e   : > { %1079 = vst [vmem:[%s1868_s11 + $0x18] sm:$0xff] %v1176_v52 }
 0x23f PF: > { %s17_s24 = sadd.s32 1, %s1387_s24  }
 0x240   : > { %p14_p4 = scmp.ge.s32.totalorder %s17_s24, 4  }
 0x242   :  { %16 = sbr.rel (!%p14_p4) target bundleno = 1 (0x1), region = 81 }

</bundles_post_ra>
